<compile_context>
chip_gen: v6e
topology: v6e:2x2x1
jax: 0.10.0
libtpu: 0.0.40
codegen_flags: <defaults>
</compile_context>

<pallas_src>
import functools
import numpy as np
import jax
import jax.numpy as jnp
from jax import lax
from jax.experimental import pallas as pl
from jax.experimental.pallas import tpu as pltpu

_GN_GROUPS = 32
_GN_EPS = 1e-5


def _gelu_exact(x):
    # Exact GELU via erf (Abramowitz & Stegun 7.1.26, |abs err| <= 1.5e-7); the divide is
    # an EUP approx-reciprocal (error far below test tolerance).
    a1, a2, a3, a4, a5 = 0.254829592, -0.284496736, 1.421413741, -1.453152027, 1.061405429
    p = 0.3275911
    u = x * 0.7071067811865476
    au = jnp.abs(u)
    t = pl.reciprocal(1.0 + p * au, approx=True)
    poly = ((((a5 * t + a4) * t + a3) * t + a2) * t + a1) * t
    erf_abs = 1.0 - poly * jnp.exp(-au * au)
    erf = jnp.where(u < 0.0, -erf_abs, erf_abs)
    return 0.5 * x * (1.0 + erf)


def _decoder_block_kernel(H, W, cin, cout,
                          x_ref, w1_ref, b1_ref, g1_ref, be1_ref,
                          w2_ref, b2_ref, g2_ref, be2_ref,
                          wt_ref, bt_ref, o_ref):
    HW = H * W
    gsize = cout // _GN_GROUPS

    # Column-validity masks for the kw=-1 / kw=+1 taps (row boundaries are handled by the
    # zero rows concatenated around the flat image, so only column wrap needs masking).
    col = lax.broadcasted_iota(jnp.int32, (HW, 1), 0) % W
    mask_l = col > 0          # tap at column offset -1 is invalid at j == 0
    mask_r = col < (W - 1)    # tap at column offset +1 is invalid at j == W-1

    def conv3x3(xf, w_ref, b_row):
        # xf: (HW, C_in) f32 flat row-major image.  Returns (HW, cout) f32.
        c_in = xf.shape[-1]
        pad = W + 1
        zp = jnp.zeros((pad, c_in), jnp.float32)
        xp = jnp.concatenate([zp, xf, zp], axis=0)           # (HW + 2W + 2, C_in)
        acc = jnp.broadcast_to(b_row, (HW, cout))            # bias-initialized accumulator
        for k in range(9):
            kh, kw = k // 3, k % 3
            start = kh * W + kw                              # static, in-range by construction
            win = lax.slice_in_dim(xp, start, start + HW, axis=0)
            contrib = jnp.dot(win.astype(jnp.bfloat16), w_ref[k],
                              preferred_element_type=jnp.float32)
            if kw == 0:
                contrib = jnp.where(mask_l, contrib, 0.0)
            elif kw == 2:
                contrib = jnp.where(mask_r, contrib, 0.0)
            acc = acc + contrib
        return acc

    def group_norm(h, gamma, beta):
        sum_c = jnp.sum(h, axis=0, keepdims=True)            # (1, C)
        sq_c = jnp.sum(h * h, axis=0, keepdims=True)         # (1, C)
        if gsize == 1:                                       # per-channel stats (C == 32)
            n = float(HW)
            mean_c = sum_c / n
            var_c = sq_c / n - mean_c * mean_c
        else:                                                # general per-group reduce on VPU/XLU
            n = float(HW * gsize)
            sum_g = jnp.sum(sum_c.reshape(_GN_GROUPS, gsize), axis=1, keepdims=True)
            sq_g = jnp.sum(sq_c.reshape(_GN_GROUPS, gsize), axis=1, keepdims=True)
            mean_g = sum_g / n
            var_g = sq_g / n - mean_g * mean_g
            mean_c = jnp.broadcast_to(mean_g, (_GN_GROUPS, gsize)).reshape(1, cout)
            var_c = jnp.broadcast_to(var_g, (_GN_GROUPS, gsize)).reshape(1, cout)
        var_c = jnp.maximum(var_c, 0.0)                      # guard E[x^2]-E[x]^2 cancellation
        inv = lax.rsqrt(var_c + _GN_EPS)
        return (h - mean_c) * inv * gamma + beta

    xf = x_ref[...]                                          # (HW, cin) f32
    h1 = _gelu_exact(group_norm(conv3x3(xf, w1_ref, b1_ref[...]),
                                g1_ref[...], be1_ref[...]))
    h2 = _gelu_exact(group_norm(conv3x3(h1, w2_ref, b2_ref[...]),
                                g2_ref[...], be2_ref[...]))

    # ConvTranspose2d(k=2, s=2): all 4 taps fused into one (HW, 4*cout) lane-dense matmul.
    y = jnp.dot(h2.astype(jnp.bfloat16), wt_ref[...],
                preferred_element_type=jnp.float32) + bt_ref[...]
    o_ref[...] = y.astype(o_ref.dtype)


def decoder_block_forward(x_nchw, params):
    B, cin, H, W = x_nchw.shape
    cout = params["b1"].shape[0]
    assert cout % _GN_GROUPS == 0, "GroupNorm(32, C) requires C % 32 == 0"
    HW = H * W

    # NCHW -> flat NHWC (B, HW, C); spatial padding is handled inside the kernel.
    x = jnp.transpose(x_nchw, (0, 2, 3, 1)).reshape(B, HW, cin).astype(jnp.float32)

    # Weights as bf16 for the MXU; biases / GN affine stay f32.
    w1 = params["w1"].reshape(9, cin, cout).astype(jnp.bfloat16)
    w2 = params["w2"].reshape(9, cout, cout).astype(jnp.bfloat16)
    # ConvT (a,b,cin,cout) -> (cin, 4*cout); output chunk idx = a*2 + b -> lane-dense slab.
    wt = jnp.transpose(params["wt"], (2, 0, 1, 3)).reshape(cout, 4 * cout).astype(jnp.bfloat16)
    b1 = params["b1"].reshape(1, cout).astype(jnp.float32)
    b2 = params["b2"].reshape(1, cout).astype(jnp.float32)
    g1 = params["g1"].reshape(1, cout).astype(jnp.float32)
    be1 = params["be1"].reshape(1, cout).astype(jnp.float32)
    g2 = params["g2"].reshape(1, cout).astype(jnp.float32)
    be2 = params["be2"].reshape(1, cout).astype(jnp.float32)
    bt = jnp.tile(params["bt"].reshape(1, 1, cout), (1, 4, 1)).reshape(1, 4 * cout).astype(jnp.float32)

    kernel = functools.partial(_decoder_block_kernel, H, W, cin, cout)
    vec = pl.BlockSpec((1, cout), lambda b: (0, 0))

    flops = 2 * B * HW * (9 * cin * cout + 13 * cout * cout)
    bytes_accessed = int(sum(a.size * a.dtype.itemsize
                             for a in (x, w1, w2, wt, b1, b2, g1, be1, g2, be2, bt))
                         + B * HW * 4 * cout * 4)
    cost = pl.CostEstimate(flops=flops, transcendentals=4 * B * HW * cout,
                           bytes_accessed=bytes_accessed)

    out = pl.pallas_call(
        kernel,
        out_shape=jax.ShapeDtypeStruct((B, HW, 4 * cout), jnp.float32),
        grid_spec=pltpu.PrefetchScalarGridSpec(
            num_scalar_prefetch=0,
            grid=(B,),
            in_specs=[
                pl.BlockSpec((None, HW, cin), lambda b: (b, 0, 0)),
                pl.BlockSpec((9, cin, cout), lambda b: (0, 0, 0)),
                vec, vec, vec,
                pl.BlockSpec((9, cout, cout), lambda b: (0, 0, 0)),
                vec, vec, vec,
                pl.BlockSpec((cout, 4 * cout), lambda b: (0, 0)),
                pl.BlockSpec((1, 4 * cout), lambda b: (0, 0)),
            ],
            out_specs=pl.BlockSpec((None, HW, 4 * cout), lambda b: (b, 0, 0)),
        ),
        compiler_params=pltpu.CompilerParams(dimension_semantics=("parallel",)),
        cost_estimate=cost,
    )(x, w1, b1, g1, be1, w2, b2, g2, be2, wt, bt)

    # (B, i*W+j, (a*2+b)*cout + c) -> (B, 2H, 2W, C) -> NCHW
    out = out.reshape(B, H, W, 2, 2, cout)
    out = out.transpose(0, 1, 3, 2, 4, 5).reshape(B, 2 * H, 2 * W, cout)
    return jnp.transpose(out, (0, 3, 1, 2))


def init_params(key, cin, cout):
    ks = jax.random.split(key, 10)
    s = 0.05
    return {
        "w1": jax.random.normal(ks[0], (3, 3, cin, cout), jnp.float32) * s,
        "b1": jax.random.normal(ks[1], (cout,), jnp.float32) * s,
        "g1": 1.0 + 0.1 * jax.random.normal(ks[2], (cout,), jnp.float32),
        "be1": 0.1 * jax.random.normal(ks[3], (cout,), jnp.float32),
        "w2": jax.random.normal(ks[4], (3, 3, cout, cout), jnp.float32) * s,
        "b2": jax.random.normal(ks[5], (cout,), jnp.float32) * s,
        "g2": 1.0 + 0.1 * jax.random.normal(ks[6], (cout,), jnp.float32),
        "be2": 0.1 * jax.random.normal(ks[7], (cout,), jnp.float32),
        "wt": jax.random.normal(ks[8], (2, 2, cout, cout), jnp.float32) * s,  # (a,b,cin,cout)
        "bt": jax.random.normal(ks[9], (cout,), jnp.float32) * s,
    }


def ref_forward(x_nchw, p):
    """Pure-JAX reference (NHWC internally), matches PyTorch semantics."""
    x = jnp.transpose(x_nchw, (0, 2, 3, 1)).astype(jnp.float32)

    def conv3x3(t, w, b):
        y = lax.conv_general_dilated(t, w, (1, 1), ((1, 1), (1, 1)),
                                     dimension_numbers=("NHWC", "HWIO", "NHWC"),
                                     precision=lax.Precision.HIGHEST)
        return y + b

    def gn(t, gamma, beta):
        B, H, W, C = t.shape
        g = C // _GN_GROUPS
        tr = t.reshape(B, H, W, _GN_GROUPS, g)
        m = tr.mean(axis=(1, 2, 4), keepdims=True)
        v = tr.var(axis=(1, 2, 4), keepdims=True)
        tn = (tr - m) * lax.rsqrt(v + _GN_EPS)
        return tn.reshape(B, H, W, C) * gamma + beta

    gelu = lambda t: jax.nn.gelu(t, approximate=False)
    h = gelu(gn(conv3x3(x, p["w1"], p["b1"]), p["g1"], p["be1"]))
    h = gelu(gn(conv3x3(h, p["w2"], p["b2"]), p["g2"], p["be2"]))
    y = jnp.einsum("nhwc,abcd->nhawbd", h, p["wt"], precision=lax.Precision.HIGHEST)
    B, H, _, W, _, C = y.shape
    y = y.reshape(B, 2 * H, 2 * W, C) + p["bt"]
    return jnp.transpose(y, (0, 3, 1, 2))


if __name__ == "__main__":
    B, CIN, COUT, H, W = 2, 64, 32, 8, 8
    key = jax.random.PRNGKey(0)
    pkey, xkey = jax.random.split(key)
    params = init_params(pkey, CIN, COUT)
    x = jax.random.normal(xkey, (B, CIN, H, W), jnp.float32)

    out = decoder_block_forward(x, params)
    out = jax.block_until_ready(out)
    assert out.shape == (B, COUT, 2 * H, 2 * W), out.shape

    ref = jax.block_until_ready(ref_forward(x, params))
    np.testing.assert_allclose(np.asarray(out), np.asarray(ref), rtol=2e-2, atol=2e-2)
    print("KERNEL_OK")
</pallas_src>

<mosaic_0001>
module attributes {stable_mosaic.version = 11 : i64} {
  func.func @_decoder_block_kernel(%arg0: i32, %arg1: memref<1x64x64xf32, #tpu.memory_space<vmem>>, %arg2: memref<9x64x32xbf16, #tpu.memory_space<vmem>>, %arg3: memref<1x32xf32, #tpu.memory_space<vmem>>, %arg4: memref<1x32xf32, #tpu.memory_space<vmem>>, %arg5: memref<1x32xf32, #tpu.memory_space<vmem>>, %arg6: memref<9x32x32xbf16, #tpu.memory_space<vmem>>, %arg7: memref<1x32xf32, #tpu.memory_space<vmem>>, %arg8: memref<1x32xf32, #tpu.memory_space<vmem>>, %arg9: memref<1x32xf32, #tpu.memory_space<vmem>>, %arg10: memref<32x128xbf16, #tpu.memory_space<vmem>>, %arg11: memref<1x128xf32, #tpu.memory_space<vmem>>, %arg12: memref<1x64x128xf32, #tpu.memory_space<vmem>>) attributes {dimension_semantics = [#tpu.dimension_semantics<parallel>], iteration_bounds = array<i64: 2>, scalar_prefetch = 0 : i64, scratch_operands = 0 : i64, tpu.core_type = #tpu.core_type<tc>, window_params = [{transform_indices = @transform_0, window_bounds = array<i64: 1, 64, 64>}, {pipeline_mode = #tpu.pipeline_mode<synchronous>, transform_indices = @transform_1, window_bounds = array<i64: 9, 64, 32>}, {pipeline_mode = #tpu.pipeline_mode<synchronous>, transform_indices = @transform_2, window_bounds = array<i64: 1, 32>}, {pipeline_mode = #tpu.pipeline_mode<synchronous>, transform_indices = @transform_3, window_bounds = array<i64: 1, 32>}, {pipeline_mode = #tpu.pipeline_mode<synchronous>, transform_indices = @transform_4, window_bounds = array<i64: 1, 32>}, {pipeline_mode = #tpu.pipeline_mode<synchronous>, transform_indices = @transform_5, window_bounds = array<i64: 9, 32, 32>}, {pipeline_mode = #tpu.pipeline_mode<synchronous>, transform_indices = @transform_6, window_bounds = array<i64: 1, 32>}, {pipeline_mode = #tpu.pipeline_mode<synchronous>, transform_indices = @transform_7, window_bounds = array<i64: 1, 32>}, {pipeline_mode = #tpu.pipeline_mode<synchronous>, transform_indices = @transform_8, window_bounds = array<i64: 1, 32>}, {pipeline_mode = #tpu.pipeline_mode<synchronous>, transform_indices = @transform_9, window_bounds = array<i64: 32, 128>}, {pipeline_mode = #tpu.pipeline_mode<synchronous>, transform_indices = @transform_10, window_bounds = array<i64: 1, 128>}, {transform_indices = @transform_11, window_bounds = array<i64: 1, 64, 128>}]} {
    %0 = tpu.iota {dimensions = array<i32: 0>} : vector<64x1xi32>
    %c8_i32 = arith.constant 8 : i32
    %c0_i32 = arith.constant 0 : i32
    %1 = arith.cmpi eq, %c8_i32, %c0_i32 : i32
    %c1_i32 = arith.constant 1 : i32
    %2 = arith.select %1, %c1_i32, %c8_i32 : i32
    %3 = vector.broadcast %2 : i32 to vector<64x1xi32>
    %4 = arith.remsi %0, %3 : vector<64x1xi32>
    %c0_i32_0 = arith.constant 0 : i32
    %5 = vector.broadcast %c0_i32_0 : i32 to vector<64x1xi32>
    %6 = arith.cmpi ne, %4, %5 : vector<64x1xi32>
    %c0_i32_1 = arith.constant 0 : i32
    %7 = vector.broadcast %c0_i32_1 : i32 to vector<64x1xi32>
    %8 = arith.cmpi slt, %4, %7 : vector<64x1xi32>
    %c0_i32_2 = arith.constant 0 : i32
    %9 = arith.cmpi slt, %2, %c0_i32_2 : i32
    %10 = vector.broadcast %9 : i1 to vector<64x1xi1>
    %11 = vector.broadcast %10 : vector<64x1xi1> to vector<64x1xi1>
    %12 = arith.xori %8, %11 : vector<64x1xi1>
    %13 = arith.andi %12, %6 : vector<64x1xi1>
    %14 = vector.broadcast %2 : i32 to vector<64x1xi32>
    %15 = arith.addi %4, %14 : vector<64x1xi32>
    %16 = arith.select %13, %15, %4 : vector<64x1xi1>, vector<64x1xi32>
    %c0_i32_3 = arith.constant 0 : i32
    %17 = vector.broadcast %c0_i32_3 : i32 to vector<64x1xi32>
    %18 = arith.cmpi sgt, %16, %17 : vector<64x1xi32>
    %c7_i32 = arith.constant 7 : i32
    %19 = vector.broadcast %c7_i32 : i32 to vector<64x1xi32>
    %20 = arith.cmpi slt, %16, %19 : vector<64x1xi32>
    %c0 = arith.constant 0 : index
    %c0_4 = arith.constant 0 : index
    %c0_5 = arith.constant 0 : index
    %21 = vector.load %arg1[%c0, %c0_4, %c0_5] : memref<1x64x64xf32, #tpu.memory_space<vmem>>, vector<1x64x64xf32>
    %22 = vector.shape_cast %21 : vector<1x64x64xf32> to vector<64x64xf32>
    %c0_6 = arith.constant 0 : index
    %c0_7 = arith.constant 0 : index
    %23 = vector.load %arg3[%c0_6, %c0_7] : memref<1x32xf32, #tpu.memory_space<vmem>>, vector<1x32xf32>
    %cst = arith.constant 0.000000e+00 : f32
    %24 = vector.broadcast %cst : f32 to vector<9x64xf32>
    %25 = tpu.concatenate %24, %22, %24 in 0 : vector<9x64xf32>, vector<64x64xf32>, vector<9x64xf32> -> vector<82x64xf32>
    %26 = vector.shape_cast %23 : vector<1x32xf32> to vector<1x32xf32>
    %27 = vector.broadcast %26 : vector<1x32xf32> to vector<64x32xf32>
    %28 = vector.extract_strided_slice %25 {offsets = [0, 0], sizes = [64, 64], strides = [1, 1]} : vector<82x64xf32> to vector<64x64xf32>
    %29 = arith.truncf %28 : vector<64x64xf32> to vector<64x64xbf16>
    %c0_8 = arith.constant 0 : index
    %c0_9 = arith.constant 0 : index
    %c0_10 = arith.constant 0 : index
    %30 = vector.load %arg2[%c0_8, %c0_9, %c0_10] : memref<9x64x32xbf16, #tpu.memory_space<vmem>>, vector<1x64x32xbf16>
    %31 = vector.shape_cast %30 : vector<1x64x32xbf16> to vector<64x32xbf16>
    %cst_11 = arith.constant dense<0.000000e+00> : vector<64x32xf32>
    %32 = tpu.matmul %29, %31, %cst_11 {dimension_numbers = #tpu.dot_dimension_numbers<[1], [0], [0], [1], [0, 0, 1, 1], [], []>} : vector<64x64xbf16>, vector<64x32xbf16>, vector<64x32xf32> -> vector<64x32xf32>
    %cst_12 = arith.constant 0.000000e+00 : f32
    %33 = vector.shape_cast %18 : vector<64x1xi1> to vector<64x1xi1>
    %34 = vector.broadcast %33 : vector<64x1xi1> to vector<64x32xi1>
    %35 = vector.broadcast %cst_12 : f32 to vector<64x32xf32>
    %36 = arith.select %34, %32, %35 : vector<64x32xi1>, vector<64x32xf32>
    %37 = arith.addf %27, %36 : vector<64x32xf32>
    %38 = vector.extract_strided_slice %25 {offsets = [1, 0], sizes = [64, 64], strides = [1, 1]} : vector<82x64xf32> to vector<64x64xf32>
    %39 = arith.truncf %38 : vector<64x64xf32> to vector<64x64xbf16>
    %c1 = arith.constant 1 : index
    %c0_13 = arith.constant 0 : index
    %c0_14 = arith.constant 0 : index
    %40 = vector.load %arg2[%c1, %c0_13, %c0_14] : memref<9x64x32xbf16, #tpu.memory_space<vmem>>, vector<1x64x32xbf16>
    %41 = vector.shape_cast %40 : vector<1x64x32xbf16> to vector<64x32xbf16>
    %cst_15 = arith.constant dense<0.000000e+00> : vector<64x32xf32>
    %42 = tpu.matmul %39, %41, %cst_15 {dimension_numbers = #tpu.dot_dimension_numbers<[1], [0], [0], [1], [0, 0, 1, 1], [], []>} : vector<64x64xbf16>, vector<64x32xbf16>, vector<64x32xf32> -> vector<64x32xf32>
    %43 = arith.addf %37, %42 : vector<64x32xf32>
    %44 = vector.extract_strided_slice %25 {offsets = [2, 0], sizes = [64, 64], strides = [1, 1]} : vector<82x64xf32> to vector<64x64xf32>
    %45 = arith.truncf %44 : vector<64x64xf32> to vector<64x64xbf16>
    %c2 = arith.constant 2 : index
    %c0_16 = arith.constant 0 : index
    %c0_17 = arith.constant 0 : index
    %46 = vector.load %arg2[%c2, %c0_16, %c0_17] : memref<9x64x32xbf16, #tpu.memory_space<vmem>>, vector<1x64x32xbf16>
    %47 = vector.shape_cast %46 : vector<1x64x32xbf16> to vector<64x32xbf16>
    %cst_18 = arith.constant dense<0.000000e+00> : vector<64x32xf32>
    %48 = tpu.matmul %45, %47, %cst_18 {dimension_numbers = #tpu.dot_dimension_numbers<[1], [0], [0], [1], [0, 0, 1, 1], [], []>} : vector<64x64xbf16>, vector<64x32xbf16>, vector<64x32xf32> -> vector<64x32xf32>
    %cst_19 = arith.constant 0.000000e+00 : f32
    %49 = vector.shape_cast %20 : vector<64x1xi1> to vector<64x1xi1>
    %50 = vector.broadcast %49 : vector<64x1xi1> to vector<64x32xi1>
    %51 = vector.broadcast %cst_19 : f32 to vector<64x32xf32>
    %52 = arith.select %50, %48, %51 : vector<64x32xi1>, vector<64x32xf32>
    %53 = arith.addf %43, %52 : vector<64x32xf32>
    %54 = vector.extract_strided_slice %25 {offsets = [8, 0], sizes = [64, 64], strides = [1, 1]} : vector<82x64xf32> to vector<64x64xf32>
    %55 = arith.truncf %54 : vector<64x64xf32> to vector<64x64xbf16>
    %c3 = arith.constant 3 : index
    %c0_20 = arith.constant 0 : index
    %c0_21 = arith.constant 0 : index
    %56 = vector.load %arg2[%c3, %c0_20, %c0_21] : memref<9x64x32xbf16, #tpu.memory_space<vmem>>, vector<1x64x32xbf16>
    %57 = vector.shape_cast %56 : vector<1x64x32xbf16> to vector<64x32xbf16>
    %cst_22 = arith.constant dense<0.000000e+00> : vector<64x32xf32>
    %58 = tpu.matmul %55, %57, %cst_22 {dimension_numbers = #tpu.dot_dimension_numbers<[1], [0], [0], [1], [0, 0, 1, 1], [], []>} : vector<64x64xbf16>, vector<64x32xbf16>, vector<64x32xf32> -> vector<64x32xf32>
    %cst_23 = arith.constant 0.000000e+00 : f32
    %59 = vector.shape_cast %18 : vector<64x1xi1> to vector<64x1xi1>
    %60 = vector.broadcast %59 : vector<64x1xi1> to vector<64x32xi1>
    %61 = vector.broadcast %cst_23 : f32 to vector<64x32xf32>
    %62 = arith.select %60, %58, %61 : vector<64x32xi1>, vector<64x32xf32>
    %63 = arith.addf %53, %62 : vector<64x32xf32>
    %64 = vector.extract_strided_slice %25 {offsets = [9, 0], sizes = [64, 64], strides = [1, 1]} : vector<82x64xf32> to vector<64x64xf32>
    %65 = arith.truncf %64 : vector<64x64xf32> to vector<64x64xbf16>
    %c4 = arith.constant 4 : index
    %c0_24 = arith.constant 0 : index
    %c0_25 = arith.constant 0 : index
    %66 = vector.load %arg2[%c4, %c0_24, %c0_25] : memref<9x64x32xbf16, #tpu.memory_space<vmem>>, vector<1x64x32xbf16>
    %67 = vector.shape_cast %66 : vector<1x64x32xbf16> to vector<64x32xbf16>
    %cst_26 = arith.constant dense<0.000000e+00> : vector<64x32xf32>
    %68 = tpu.matmul %65, %67, %cst_26 {dimension_numbers = #tpu.dot_dimension_numbers<[1], [0], [0], [1], [0, 0, 1, 1], [], []>} : vector<64x64xbf16>, vector<64x32xbf16>, vector<64x32xf32> -> vector<64x32xf32>
    %69 = arith.addf %63, %68 : vector<64x32xf32>
    %70 = vector.extract_strided_slice %25 {offsets = [10, 0], sizes = [64, 64], strides = [1, 1]} : vector<82x64xf32> to vector<64x64xf32>
    %71 = arith.truncf %70 : vector<64x64xf32> to vector<64x64xbf16>
    %c5 = arith.constant 5 : index
    %c0_27 = arith.constant 0 : index
    %c0_28 = arith.constant 0 : index
    %72 = vector.load %arg2[%c5, %c0_27, %c0_28] : memref<9x64x32xbf16, #tpu.memory_space<vmem>>, vector<1x64x32xbf16>
    %73 = vector.shape_cast %72 : vector<1x64x32xbf16> to vector<64x32xbf16>
    %cst_29 = arith.constant dense<0.000000e+00> : vector<64x32xf32>
    %74 = tpu.matmul %71, %73, %cst_29 {dimension_numbers = #tpu.dot_dimension_numbers<[1], [0], [0], [1], [0, 0, 1, 1], [], []>} : vector<64x64xbf16>, vector<64x32xbf16>, vector<64x32xf32> -> vector<64x32xf32>
    %cst_30 = arith.constant 0.000000e+00 : f32
    %75 = vector.shape_cast %20 : vector<64x1xi1> to vector<64x1xi1>
    %76 = vector.broadcast %75 : vector<64x1xi1> to vector<64x32xi1>
    %77 = vector.broadcast %cst_30 : f32 to vector<64x32xf32>
    %78 = arith.select %76, %74, %77 : vector<64x32xi1>, vector<64x32xf32>
    %79 = arith.addf %69, %78 : vector<64x32xf32>
    %80 = vector.extract_strided_slice %25 {offsets = [16, 0], sizes = [64, 64], strides = [1, 1]} : vector<82x64xf32> to vector<64x64xf32>
    %81 = arith.truncf %80 : vector<64x64xf32> to vector<64x64xbf16>
    %c6 = arith.constant 6 : index
    %c0_31 = arith.constant 0 : index
    %c0_32 = arith.constant 0 : index
    %82 = vector.load %arg2[%c6, %c0_31, %c0_32] : memref<9x64x32xbf16, #tpu.memory_space<vmem>>, vector<1x64x32xbf16>
    %83 = vector.shape_cast %82 : vector<1x64x32xbf16> to vector<64x32xbf16>
    %cst_33 = arith.constant dense<0.000000e+00> : vector<64x32xf32>
    %84 = tpu.matmul %81, %83, %cst_33 {dimension_numbers = #tpu.dot_dimension_numbers<[1], [0], [0], [1], [0, 0, 1, 1], [], []>} : vector<64x64xbf16>, vector<64x32xbf16>, vector<64x32xf32> -> vector<64x32xf32>
    %cst_34 = arith.constant 0.000000e+00 : f32
    %85 = vector.shape_cast %18 : vector<64x1xi1> to vector<64x1xi1>
    %86 = vector.broadcast %85 : vector<64x1xi1> to vector<64x32xi1>
    %87 = vector.broadcast %cst_34 : f32 to vector<64x32xf32>
    %88 = arith.select %86, %84, %87 : vector<64x32xi1>, vector<64x32xf32>
    %89 = arith.addf %79, %88 : vector<64x32xf32>
    %90 = vector.extract_strided_slice %25 {offsets = [17, 0], sizes = [64, 64], strides = [1, 1]} : vector<82x64xf32> to vector<64x64xf32>
    %91 = arith.truncf %90 : vector<64x64xf32> to vector<64x64xbf16>
    %c7 = arith.constant 7 : index
    %c0_35 = arith.constant 0 : index
    %c0_36 = arith.constant 0 : index
    %92 = vector.load %arg2[%c7, %c0_35, %c0_36] : memref<9x64x32xbf16, #tpu.memory_space<vmem>>, vector<1x64x32xbf16>
    %93 = vector.shape_cast %92 : vector<1x64x32xbf16> to vector<64x32xbf16>
    %cst_37 = arith.constant dense<0.000000e+00> : vector<64x32xf32>
    %94 = tpu.matmul %91, %93, %cst_37 {dimension_numbers = #tpu.dot_dimension_numbers<[1], [0], [0], [1], [0, 0, 1, 1], [], []>} : vector<64x64xbf16>, vector<64x32xbf16>, vector<64x32xf32> -> vector<64x32xf32>
    %95 = arith.addf %89, %94 : vector<64x32xf32>
    %96 = vector.extract_strided_slice %25 {offsets = [18, 0], sizes = [64, 64], strides = [1, 1]} : vector<82x64xf32> to vector<64x64xf32>
    %97 = arith.truncf %96 : vector<64x64xf32> to vector<64x64xbf16>
    %c8 = arith.constant 8 : index
    %c0_38 = arith.constant 0 : index
    %c0_39 = arith.constant 0 : index
    %98 = vector.load %arg2[%c8, %c0_38, %c0_39] : memref<9x64x32xbf16, #tpu.memory_space<vmem>>, vector<1x64x32xbf16>
    %99 = vector.shape_cast %98 : vector<1x64x32xbf16> to vector<64x32xbf16>
    %cst_40 = arith.constant dense<0.000000e+00> : vector<64x32xf32>
    %100 = tpu.matmul %97, %99, %cst_40 {dimension_numbers = #tpu.dot_dimension_numbers<[1], [0], [0], [1], [0, 0, 1, 1], [], []>} : vector<64x64xbf16>, vector<64x32xbf16>, vector<64x32xf32> -> vector<64x32xf32>
    %cst_41 = arith.constant 0.000000e+00 : f32
    %101 = vector.shape_cast %20 : vector<64x1xi1> to vector<64x1xi1>
    %102 = vector.broadcast %101 : vector<64x1xi1> to vector<64x32xi1>
    %103 = vector.broadcast %cst_41 : f32 to vector<64x32xf32>
    %104 = arith.select %102, %100, %103 : vector<64x32xi1>, vector<64x32xf32>
    %105 = arith.addf %95, %104 : vector<64x32xf32>
    %c0_42 = arith.constant 0 : index
    %c0_43 = arith.constant 0 : index
    %106 = vector.load %arg4[%c0_42, %c0_43] : memref<1x32xf32, #tpu.memory_space<vmem>>, vector<1x32xf32>
    %c0_44 = arith.constant 0 : index
    %c0_45 = arith.constant 0 : index
    %107 = vector.load %arg5[%c0_44, %c0_45] : memref<1x32xf32, #tpu.memory_space<vmem>>, vector<1x32xf32>
    %cst_46 = arith.constant dense<0.000000e+00> : vector<32xf32>
    %108 = vector.multi_reduction <add>, %105, %cst_46 [0] : vector<64x32xf32> to vector<32xf32>
    %109 = vector.shape_cast %108 : vector<32xf32> to vector<1x32xf32>
    %110 = arith.mulf %105, %105 : vector<64x32xf32>
    %cst_47 = arith.constant dense<0.000000e+00> : vector<32xf32>
    %111 = vector.multi_reduction <add>, %110, %cst_47 [0] : vector<64x32xf32> to vector<32xf32>
    %112 = vector.shape_cast %111 : vector<32xf32> to vector<1x32xf32>
    %cst_48 = arith.constant 6.400000e+01 : f32
    %113 = vector.broadcast %cst_48 : f32 to vector<1x32xf32>
    %114 = arith.divf %109, %113 : vector<1x32xf32>
    %cst_49 = arith.constant 6.400000e+01 : f32
    %115 = vector.broadcast %cst_49 : f32 to vector<1x32xf32>
    %116 = arith.divf %112, %115 : vector<1x32xf32>
    %117 = arith.mulf %114, %114 : vector<1x32xf32>
    %118 = arith.subf %116, %117 : vector<1x32xf32>
    %cst_50 = arith.constant 0.000000e+00 : f32
    %119 = vector.broadcast %cst_50 : f32 to vector<1x32xf32>
    %120 = arith.maximumf %118, %119 : vector<1x32xf32>
    %cst_51 = arith.constant 9.99999974E-6 : f32
    %121 = vector.broadcast %cst_51 : f32 to vector<1x32xf32>
    %122 = arith.addf %120, %121 : vector<1x32xf32>
    %123 = math.rsqrt %122 : vector<1x32xf32>
    %124 = vector.broadcast %114 : vector<1x32xf32> to vector<64x32xf32>
    %125 = arith.subf %105, %124 : vector<64x32xf32>
    %126 = vector.broadcast %123 : vector<1x32xf32> to vector<64x32xf32>
    %127 = arith.mulf %125, %126 : vector<64x32xf32>
    %128 = vector.broadcast %106 : vector<1x32xf32> to vector<64x32xf32>
    %129 = arith.mulf %127, %128 : vector<64x32xf32>
    %130 = vector.broadcast %107 : vector<1x32xf32> to vector<64x32xf32>
    %131 = arith.addf %129, %130 : vector<64x32xf32>
    %cst_52 = arith.constant 0.707106769 : f32
    %132 = vector.broadcast %cst_52 : f32 to vector<64x32xf32>
    %133 = arith.mulf %131, %132 : vector<64x32xf32>
    %134 = math.absf %133 : vector<64x32xf32>
    %cst_53 = arith.constant 0.327591091 : f32
    %135 = vector.broadcast %cst_53 : f32 to vector<64x32xf32>
    %136 = arith.mulf %135, %134 : vector<64x32xf32>
    %cst_54 = arith.constant 1.000000e+00 : f32
    %137 = vector.broadcast %cst_54 : f32 to vector<64x32xf32>
    %138 = arith.addf %137, %136 : vector<64x32xf32>
    %139 = tpu.reciprocal %138 {approx = true} : vector<64x32xf32> -> vector<64x32xf32>
    %cst_55 = arith.constant 1.06140542 : f32
    %140 = vector.broadcast %cst_55 : f32 to vector<64x32xf32>
    %141 = arith.mulf %140, %139 : vector<64x32xf32>
    %cst_56 = arith.constant -1.45315206 : f32
    %142 = vector.broadcast %cst_56 : f32 to vector<64x32xf32>
    %143 = arith.addf %141, %142 : vector<64x32xf32>
    %144 = arith.mulf %143, %139 : vector<64x32xf32>
    %cst_57 = arith.constant 1.42141378 : f32
    %145 = vector.broadcast %cst_57 : f32 to vector<64x32xf32>
    %146 = arith.addf %144, %145 : vector<64x32xf32>
    %147 = arith.mulf %146, %139 : vector<64x32xf32>
    %cst_58 = arith.constant -0.284496725 : f32
    %148 = vector.broadcast %cst_58 : f32 to vector<64x32xf32>
    %149 = arith.addf %147, %148 : vector<64x32xf32>
    %150 = arith.mulf %149, %139 : vector<64x32xf32>
    %cst_59 = arith.constant 0.254829586 : f32
    %151 = vector.broadcast %cst_59 : f32 to vector<64x32xf32>
    %152 = arith.addf %150, %151 : vector<64x32xf32>
    %153 = arith.mulf %152, %139 : vector<64x32xf32>
    %cst_60 = arith.constant 0.000000e+00 : f32
    %154 = vector.broadcast %cst_60 : f32 to vector<64x32xf32>
    %155 = arith.subf %154, %134 : vector<64x32xf32>
    %156 = arith.mulf %155, %134 : vector<64x32xf32>
    %157 = math.exp %156 : vector<64x32xf32>
    %158 = arith.mulf %153, %157 : vector<64x32xf32>
    %cst_61 = arith.constant 1.000000e+00 : f32
    %159 = vector.broadcast %cst_61 : f32 to vector<64x32xf32>
    %160 = arith.subf %159, %158 : vector<64x32xf32>
    %cst_62 = arith.constant 0.000000e+00 : f32
    %161 = vector.broadcast %cst_62 : f32 to vector<64x32xf32>
    %162 = arith.cmpf olt, %133, %161 : vector<64x32xf32>
    %cst_63 = arith.constant 0.000000e+00 : f32
    %163 = vector.broadcast %cst_63 : f32 to vector<64x32xf32>
    %164 = arith.subf %163, %160 : vector<64x32xf32>
    %165 = arith.select %162, %164, %160 : vector<64x32xi1>, vector<64x32xf32>
    %cst_64 = arith.constant 5.000000e-01 : f32
    %166 = vector.broadcast %cst_64 : f32 to vector<64x32xf32>
    %167 = arith.mulf %166, %131 : vector<64x32xf32>
    %cst_65 = arith.constant 1.000000e+00 : f32
    %168 = vector.broadcast %cst_65 : f32 to vector<64x32xf32>
    %169 = arith.addf %168, %165 : vector<64x32xf32>
    %170 = arith.mulf %167, %169 : vector<64x32xf32>
    %c0_66 = arith.constant 0 : index
    %c0_67 = arith.constant 0 : index
    %171 = vector.load %arg7[%c0_66, %c0_67] : memref<1x32xf32, #tpu.memory_space<vmem>>, vector<1x32xf32>
    %cst_68 = arith.constant 0.000000e+00 : f32
    %172 = vector.broadcast %cst_68 : f32 to vector<9x32xf32>
    %173 = tpu.concatenate %172, %170, %172 in 0 : vector<9x32xf32>, vector<64x32xf32>, vector<9x32xf32> -> vector<82x32xf32>
    %174 = vector.shape_cast %171 : vector<1x32xf32> to vector<1x32xf32>
    %175 = vector.broadcast %174 : vector<1x32xf32> to vector<64x32xf32>
    %176 = vector.extract_strided_slice %173 {offsets = [0, 0], sizes = [64, 32], strides = [1, 1]} : vector<82x32xf32> to vector<64x32xf32>
    %177 = arith.truncf %176 : vector<64x32xf32> to vector<64x32xbf16>
    %c0_69 = arith.constant 0 : index
    %c0_70 = arith.constant 0 : index
    %c0_71 = arith.constant 0 : index
    %178 = vector.load %arg6[%c0_69, %c0_70, %c0_71] : memref<9x32x32xbf16, #tpu.memory_space<vmem>>, vector<1x32x32xbf16>
    %179 = vector.shape_cast %178 : vector<1x32x32xbf16> to vector<32x32xbf16>
    %cst_72 = arith.constant dense<0.000000e+00> : vector<64x32xf32>
    %180 = tpu.matmul %177, %179, %cst_72 {dimension_numbers = #tpu.dot_dimension_numbers<[1], [0], [0], [1], [0, 0, 1, 1], [], []>} : vector<64x32xbf16>, vector<32x32xbf16>, vector<64x32xf32> -> vector<64x32xf32>
    %cst_73 = arith.constant 0.000000e+00 : f32
    %181 = vector.shape_cast %18 : vector<64x1xi1> to vector<64x1xi1>
    %182 = vector.broadcast %181 : vector<64x1xi1> to vector<64x32xi1>
    %183 = vector.broadcast %cst_73 : f32 to vector<64x32xf32>
    %184 = arith.select %182, %180, %183 : vector<64x32xi1>, vector<64x32xf32>
    %185 = arith.addf %175, %184 : vector<64x32xf32>
    %186 = vector.extract_strided_slice %173 {offsets = [1, 0], sizes = [64, 32], strides = [1, 1]} : vector<82x32xf32> to vector<64x32xf32>
    %187 = arith.truncf %186 : vector<64x32xf32> to vector<64x32xbf16>
    %c1_74 = arith.constant 1 : index
    %c0_75 = arith.constant 0 : index
    %c0_76 = arith.constant 0 : index
    %188 = vector.load %arg6[%c1_74, %c0_75, %c0_76] : memref<9x32x32xbf16, #tpu.memory_space<vmem>>, vector<1x32x32xbf16>
    %189 = vector.shape_cast %188 : vector<1x32x32xbf16> to vector<32x32xbf16>
    %cst_77 = arith.constant dense<0.000000e+00> : vector<64x32xf32>
    %190 = tpu.matmul %187, %189, %cst_77 {dimension_numbers = #tpu.dot_dimension_numbers<[1], [0], [0], [1], [0, 0, 1, 1], [], []>} : vector<64x32xbf16>, vector<32x32xbf16>, vector<64x32xf32> -> vector<64x32xf32>
    %191 = arith.addf %185, %190 : vector<64x32xf32>
    %192 = vector.extract_strided_slice %173 {offsets = [2, 0], sizes = [64, 32], strides = [1, 1]} : vector<82x32xf32> to vector<64x32xf32>
    %193 = arith.truncf %192 : vector<64x32xf32> to vector<64x32xbf16>
    %c2_78 = arith.constant 2 : index
    %c0_79 = arith.constant 0 : index
    %c0_80 = arith.constant 0 : index
    %194 = vector.load %arg6[%c2_78, %c0_79, %c0_80] : memref<9x32x32xbf16, #tpu.memory_space<vmem>>, vector<1x32x32xbf16>
    %195 = vector.shape_cast %194 : vector<1x32x32xbf16> to vector<32x32xbf16>
    %cst_81 = arith.constant dense<0.000000e+00> : vector<64x32xf32>
    %196 = tpu.matmul %193, %195, %cst_81 {dimension_numbers = #tpu.dot_dimension_numbers<[1], [0], [0], [1], [0, 0, 1, 1], [], []>} : vector<64x32xbf16>, vector<32x32xbf16>, vector<64x32xf32> -> vector<64x32xf32>
    %cst_82 = arith.constant 0.000000e+00 : f32
    %197 = vector.shape_cast %20 : vector<64x1xi1> to vector<64x1xi1>
    %198 = vector.broadcast %197 : vector<64x1xi1> to vector<64x32xi1>
    %199 = vector.broadcast %cst_82 : f32 to vector<64x32xf32>
    %200 = arith.select %198, %196, %199 : vector<64x32xi1>, vector<64x32xf32>
    %201 = arith.addf %191, %200 : vector<64x32xf32>
    %202 = vector.extract_strided_slice %173 {offsets = [8, 0], sizes = [64, 32], strides = [1, 1]} : vector<82x32xf32> to vector<64x32xf32>
    %203 = arith.truncf %202 : vector<64x32xf32> to vector<64x32xbf16>
    %c3_83 = arith.constant 3 : index
    %c0_84 = arith.constant 0 : index
    %c0_85 = arith.constant 0 : index
    %204 = vector.load %arg6[%c3_83, %c0_84, %c0_85] : memref<9x32x32xbf16, #tpu.memory_space<vmem>>, vector<1x32x32xbf16>
    %205 = vector.shape_cast %204 : vector<1x32x32xbf16> to vector<32x32xbf16>
    %cst_86 = arith.constant dense<0.000000e+00> : vector<64x32xf32>
    %206 = tpu.matmul %203, %205, %cst_86 {dimension_numbers = #tpu.dot_dimension_numbers<[1], [0], [0], [1], [0, 0, 1, 1], [], []>} : vector<64x32xbf16>, vector<32x32xbf16>, vector<64x32xf32> -> vector<64x32xf32>
    %cst_87 = arith.constant 0.000000e+00 : f32
    %207 = vector.shape_cast %18 : vector<64x1xi1> to vector<64x1xi1>
    %208 = vector.broadcast %207 : vector<64x1xi1> to vector<64x32xi1>
    %209 = vector.broadcast %cst_87 : f32 to vector<64x32xf32>
    %210 = arith.select %208, %206, %209 : vector<64x32xi1>, vector<64x32xf32>
    %211 = arith.addf %201, %210 : vector<64x32xf32>
    %212 = vector.extract_strided_slice %173 {offsets = [9, 0], sizes = [64, 32], strides = [1, 1]} : vector<82x32xf32> to vector<64x32xf32>
    %213 = arith.truncf %212 : vector<64x32xf32> to vector<64x32xbf16>
    %c4_88 = arith.constant 4 : index
    %c0_89 = arith.constant 0 : index
    %c0_90 = arith.constant 0 : index
    %214 = vector.load %arg6[%c4_88, %c0_89, %c0_90] : memref<9x32x32xbf16, #tpu.memory_space<vmem>>, vector<1x32x32xbf16>
    %215 = vector.shape_cast %214 : vector<1x32x32xbf16> to vector<32x32xbf16>
    %cst_91 = arith.constant dense<0.000000e+00> : vector<64x32xf32>
    %216 = tpu.matmul %213, %215, %cst_91 {dimension_numbers = #tpu.dot_dimension_numbers<[1], [0], [0], [1], [0, 0, 1, 1], [], []>} : vector<64x32xbf16>, vector<32x32xbf16>, vector<64x32xf32> -> vector<64x32xf32>
    %217 = arith.addf %211, %216 : vector<64x32xf32>
    %218 = vector.extract_strided_slice %173 {offsets = [10, 0], sizes = [64, 32], strides = [1, 1]} : vector<82x32xf32> to vector<64x32xf32>
    %219 = arith.truncf %218 : vector<64x32xf32> to vector<64x32xbf16>
    %c5_92 = arith.constant 5 : index
    %c0_93 = arith.constant 0 : index
    %c0_94 = arith.constant 0 : index
    %220 = vector.load %arg6[%c5_92, %c0_93, %c0_94] : memref<9x32x32xbf16, #tpu.memory_space<vmem>>, vector<1x32x32xbf16>
    %221 = vector.shape_cast %220 : vector<1x32x32xbf16> to vector<32x32xbf16>
    %cst_95 = arith.constant dense<0.000000e+00> : vector<64x32xf32>
    %222 = tpu.matmul %219, %221, %cst_95 {dimension_numbers = #tpu.dot_dimension_numbers<[1], [0], [0], [1], [0, 0, 1, 1], [], []>} : vector<64x32xbf16>, vector<32x32xbf16>, vector<64x32xf32> -> vector<64x32xf32>
    %cst_96 = arith.constant 0.000000e+00 : f32
    %223 = vector.shape_cast %20 : vector<64x1xi1> to vector<64x1xi1>
    %224 = vector.broadcast %223 : vector<64x1xi1> to vector<64x32xi1>
    %225 = vector.broadcast %cst_96 : f32 to vector<64x32xf32>
    %226 = arith.select %224, %222, %225 : vector<64x32xi1>, vector<64x32xf32>
    %227 = arith.addf %217, %226 : vector<64x32xf32>
    %228 = vector.extract_strided_slice %173 {offsets = [16, 0], sizes = [64, 32], strides = [1, 1]} : vector<82x32xf32> to vector<64x32xf32>
    %229 = arith.truncf %228 : vector<64x32xf32> to vector<64x32xbf16>
    %c6_97 = arith.constant 6 : index
    %c0_98 = arith.constant 0 : index
    %c0_99 = arith.constant 0 : index
    %230 = vector.load %arg6[%c6_97, %c0_98, %c0_99] : memref<9x32x32xbf16, #tpu.memory_space<vmem>>, vector<1x32x32xbf16>
    %231 = vector.shape_cast %230 : vector<1x32x32xbf16> to vector<32x32xbf16>
    %cst_100 = arith.constant dense<0.000000e+00> : vector<64x32xf32>
    %232 = tpu.matmul %229, %231, %cst_100 {dimension_numbers = #tpu.dot_dimension_numbers<[1], [0], [0], [1], [0, 0, 1, 1], [], []>} : vector<64x32xbf16>, vector<32x32xbf16>, vector<64x32xf32> -> vector<64x32xf32>
    %cst_101 = arith.constant 0.000000e+00 : f32
    %233 = vector.shape_cast %18 : vector<64x1xi1> to vector<64x1xi1>
    %234 = vector.broadcast %233 : vector<64x1xi1> to vector<64x32xi1>
    %235 = vector.broadcast %cst_101 : f32 to vector<64x32xf32>
    %236 = arith.select %234, %232, %235 : vector<64x32xi1>, vector<64x32xf32>
    %237 = arith.addf %227, %236 : vector<64x32xf32>
    %238 = vector.extract_strided_slice %173 {offsets = [17, 0], sizes = [64, 32], strides = [1, 1]} : vector<82x32xf32> to vector<64x32xf32>
    %239 = arith.truncf %238 : vector<64x32xf32> to vector<64x32xbf16>
    %c7_102 = arith.constant 7 : index
    %c0_103 = arith.constant 0 : index
    %c0_104 = arith.constant 0 : index
    %240 = vector.load %arg6[%c7_102, %c0_103, %c0_104] : memref<9x32x32xbf16, #tpu.memory_space<vmem>>, vector<1x32x32xbf16>
    %241 = vector.shape_cast %240 : vector<1x32x32xbf16> to vector<32x32xbf16>
    %cst_105 = arith.constant dense<0.000000e+00> : vector<64x32xf32>
    %242 = tpu.matmul %239, %241, %cst_105 {dimension_numbers = #tpu.dot_dimension_numbers<[1], [0], [0], [1], [0, 0, 1, 1], [], []>} : vector<64x32xbf16>, vector<32x32xbf16>, vector<64x32xf32> -> vector<64x32xf32>
    %243 = arith.addf %237, %242 : vector<64x32xf32>
    %244 = vector.extract_strided_slice %173 {offsets = [18, 0], sizes = [64, 32], strides = [1, 1]} : vector<82x32xf32> to vector<64x32xf32>
    %245 = arith.truncf %244 : vector<64x32xf32> to vector<64x32xbf16>
    %c8_106 = arith.constant 8 : index
    %c0_107 = arith.constant 0 : index
    %c0_108 = arith.constant 0 : index
    %246 = vector.load %arg6[%c8_106, %c0_107, %c0_108] : memref<9x32x32xbf16, #tpu.memory_space<vmem>>, vector<1x32x32xbf16>
    %247 = vector.shape_cast %246 : vector<1x32x32xbf16> to vector<32x32xbf16>
    %cst_109 = arith.constant dense<0.000000e+00> : vector<64x32xf32>
    %248 = tpu.matmul %245, %247, %cst_109 {dimension_numbers = #tpu.dot_dimension_numbers<[1], [0], [0], [1], [0, 0, 1, 1], [], []>} : vector<64x32xbf16>, vector<32x32xbf16>, vector<64x32xf32> -> vector<64x32xf32>
    %cst_110 = arith.constant 0.000000e+00 : f32
    %249 = vector.shape_cast %20 : vector<64x1xi1> to vector<64x1xi1>
    %250 = vector.broadcast %249 : vector<64x1xi1> to vector<64x32xi1>
    %251 = vector.broadcast %cst_110 : f32 to vector<64x32xf32>
    %252 = arith.select %250, %248, %251 : vector<64x32xi1>, vector<64x32xf32>
    %253 = arith.addf %243, %252 : vector<64x32xf32>
    %c0_111 = arith.constant 0 : index
    %c0_112 = arith.constant 0 : index
    %254 = vector.load %arg8[%c0_111, %c0_112] : memref<1x32xf32, #tpu.memory_space<vmem>>, vector<1x32xf32>
    %c0_113 = arith.constant 0 : index
    %c0_114 = arith.constant 0 : index
    %255 = vector.load %arg9[%c0_113, %c0_114] : memref<1x32xf32, #tpu.memory_space<vmem>>, vector<1x32xf32>
    %cst_115 = arith.constant dense<0.000000e+00> : vector<32xf32>
    %256 = vector.multi_reduction <add>, %253, %cst_115 [0] : vector<64x32xf32> to vector<32xf32>
    %257 = vector.shape_cast %256 : vector<32xf32> to vector<1x32xf32>
    %258 = arith.mulf %253, %253 : vector<64x32xf32>
    %cst_116 = arith.constant dense<0.000000e+00> : vector<32xf32>
    %259 = vector.multi_reduction <add>, %258, %cst_116 [0] : vector<64x32xf32> to vector<32xf32>
    %260 = vector.shape_cast %259 : vector<32xf32> to vector<1x32xf32>
    %cst_117 = arith.constant 6.400000e+01 : f32
    %261 = vector.broadcast %cst_117 : f32 to vector<1x32xf32>
    %262 = arith.divf %257, %261 : vector<1x32xf32>
    %cst_118 = arith.constant 6.400000e+01 : f32
    %263 = vector.broadcast %cst_118 : f32 to vector<1x32xf32>
    %264 = arith.divf %260, %263 : vector<1x32xf32>
    %265 = arith.mulf %262, %262 : vector<1x32xf32>
    %266 = arith.subf %264, %265 : vector<1x32xf32>
    %cst_119 = arith.constant 0.000000e+00 : f32
    %267 = vector.broadcast %cst_119 : f32 to vector<1x32xf32>
    %268 = arith.maximumf %266, %267 : vector<1x32xf32>
    %cst_120 = arith.constant 9.99999974E-6 : f32
    %269 = vector.broadcast %cst_120 : f32 to vector<1x32xf32>
    %270 = arith.addf %268, %269 : vector<1x32xf32>
    %271 = math.rsqrt %270 : vector<1x32xf32>
    %272 = vector.broadcast %262 : vector<1x32xf32> to vector<64x32xf32>
    %273 = arith.subf %253, %272 : vector<64x32xf32>
    %274 = vector.broadcast %271 : vector<1x32xf32> to vector<64x32xf32>
    %275 = arith.mulf %273, %274 : vector<64x32xf32>
    %276 = vector.broadcast %254 : vector<1x32xf32> to vector<64x32xf32>
    %277 = arith.mulf %275, %276 : vector<64x32xf32>
    %278 = vector.broadcast %255 : vector<1x32xf32> to vector<64x32xf32>
    %279 = arith.addf %277, %278 : vector<64x32xf32>
    %cst_121 = arith.constant 0.707106769 : f32
    %280 = vector.broadcast %cst_121 : f32 to vector<64x32xf32>
    %281 = arith.mulf %279, %280 : vector<64x32xf32>
    %282 = math.absf %281 : vector<64x32xf32>
    %cst_122 = arith.constant 0.327591091 : f32
    %283 = vector.broadcast %cst_122 : f32 to vector<64x32xf32>
    %284 = arith.mulf %283, %282 : vector<64x32xf32>
    %cst_123 = arith.constant 1.000000e+00 : f32
    %285 = vector.broadcast %cst_123 : f32 to vector<64x32xf32>
    %286 = arith.addf %285, %284 : vector<64x32xf32>
    %287 = tpu.reciprocal %286 {approx = true} : vector<64x32xf32> -> vector<64x32xf32>
    %cst_124 = arith.constant 1.06140542 : f32
    %288 = vector.broadcast %cst_124 : f32 to vector<64x32xf32>
    %289 = arith.mulf %288, %287 : vector<64x32xf32>
    %cst_125 = arith.constant -1.45315206 : f32
    %290 = vector.broadcast %cst_125 : f32 to vector<64x32xf32>
    %291 = arith.addf %289, %290 : vector<64x32xf32>
    %292 = arith.mulf %291, %287 : vector<64x32xf32>
    %cst_126 = arith.constant 1.42141378 : f32
    %293 = vector.broadcast %cst_126 : f32 to vector<64x32xf32>
    %294 = arith.addf %292, %293 : vector<64x32xf32>
    %295 = arith.mulf %294, %287 : vector<64x32xf32>
    %cst_127 = arith.constant -0.284496725 : f32
    %296 = vector.broadcast %cst_127 : f32 to vector<64x32xf32>
    %297 = arith.addf %295, %296 : vector<64x32xf32>
    %298 = arith.mulf %297, %287 : vector<64x32xf32>
    %cst_128 = arith.constant 0.254829586 : f32
    %299 = vector.broadcast %cst_128 : f32 to vector<64x32xf32>
    %300 = arith.addf %298, %299 : vector<64x32xf32>
    %301 = arith.mulf %300, %287 : vector<64x32xf32>
    %cst_129 = arith.constant 0.000000e+00 : f32
    %302 = vector.broadcast %cst_129 : f32 to vector<64x32xf32>
    %303 = arith.subf %302, %282 : vector<64x32xf32>
    %304 = arith.mulf %303, %282 : vector<64x32xf32>
    %305 = math.exp %304 : vector<64x32xf32>
    %306 = arith.mulf %301, %305 : vector<64x32xf32>
    %cst_130 = arith.constant 1.000000e+00 : f32
    %307 = vector.broadcast %cst_130 : f32 to vector<64x32xf32>
    %308 = arith.subf %307, %306 : vector<64x32xf32>
    %cst_131 = arith.constant 0.000000e+00 : f32
    %309 = vector.broadcast %cst_131 : f32 to vector<64x32xf32>
    %310 = arith.cmpf olt, %281, %309 : vector<64x32xf32>
    %cst_132 = arith.constant 0.000000e+00 : f32
    %311 = vector.broadcast %cst_132 : f32 to vector<64x32xf32>
    %312 = arith.subf %311, %308 : vector<64x32xf32>
    %313 = arith.select %310, %312, %308 : vector<64x32xi1>, vector<64x32xf32>
    %cst_133 = arith.constant 5.000000e-01 : f32
    %314 = vector.broadcast %cst_133 : f32 to vector<64x32xf32>
    %315 = arith.mulf %314, %279 : vector<64x32xf32>
    %cst_134 = arith.constant 1.000000e+00 : f32
    %316 = vector.broadcast %cst_134 : f32 to vector<64x32xf32>
    %317 = arith.addf %316, %313 : vector<64x32xf32>
    %318 = arith.mulf %315, %317 : vector<64x32xf32>
    %319 = arith.truncf %318 : vector<64x32xf32> to vector<64x32xbf16>
    %c0_135 = arith.constant 0 : index
    %c0_136 = arith.constant 0 : index
    %320 = vector.load %arg10[%c0_135, %c0_136] : memref<32x128xbf16, #tpu.memory_space<vmem>>, vector<32x128xbf16>
    %cst_137 = arith.constant dense<0.000000e+00> : vector<64x128xf32>
    %321 = tpu.matmul %319, %320, %cst_137 {dimension_numbers = #tpu.dot_dimension_numbers<[1], [0], [0], [1], [0, 0, 1, 1], [], []>} : vector<64x32xbf16>, vector<32x128xbf16>, vector<64x128xf32> -> vector<64x128xf32>
    %c0_138 = arith.constant 0 : index
    %c0_139 = arith.constant 0 : index
    %322 = vector.load %arg11[%c0_138, %c0_139] : memref<1x128xf32, #tpu.memory_space<vmem>>, vector<1x128xf32>
    %323 = vector.broadcast %322 : vector<1x128xf32> to vector<64x128xf32>
    %324 = arith.addf %321, %323 : vector<64x128xf32>
    %c0_140 = arith.constant 0 : index
    %c0_141 = arith.constant 0 : index
    %c0_142 = arith.constant 0 : index
    %325 = vector.load %arg12[%c0_140, %c0_141, %c0_142] : memref<1x64x128xf32, #tpu.memory_space<vmem>>, vector<1x64x128xf32>
    %326 = vector.shape_cast %325 : vector<1x64x128xf32> to vector<64x128xf32>
    %327 = vector.shape_cast %324 : vector<64x128xf32> to vector<1x64x128xf32>
    tpu.vector_store %arg12[%c0_140, %c0_141, %c0_142], %327 {strides = array<i32>} : memref<1x64x128xf32, #tpu.memory_space<vmem>>, vector<1x64x128xf32>,
    return
  }
  func.func @transform_0(%arg0: i32) -> (i32, i32, i32) {
    %c0_i32 = arith.constant 0 : i32
    %c0_i32_0 = arith.constant 0 : i32
    %c0_i32_1 = arith.constant 0 : i32
    return %arg0, %c0_i32, %c0_i32_0 : i32, i32, i32
  }
  func.func @transform_1(%arg0: i32) -> (i32, i32, i32) {
    %c0_i32 = arith.constant 0 : i32
    %c0_i32_0 = arith.constant 0 : i32
    %c0_i32_1 = arith.constant 0 : i32
    %c0_i32_2 = arith.constant 0 : i32
    return %c0_i32, %c0_i32_0, %c0_i32_1 : i32, i32, i32
  }
  func.func @transform_2(%arg0: i32) -> (i32, i32) {
    %c0_i32 = arith.constant 0 : i32
    %c0_i32_0 = arith.constant 0 : i32
    %c0_i32_1 = arith.constant 0 : i32
    return %c0_i32, %c0_i32_0 : i32, i32
  }
  func.func @transform_3(%arg0: i32) -> (i32, i32) {
    %c0_i32 = arith.constant 0 : i32
    %c0_i32_0 = arith.constant 0 : i32
    %c0_i32_1 = arith.constant 0 : i32
    return %c0_i32, %c0_i32_0 : i32, i32
  }
  func.func @transform_4(%arg0: i32) -> (i32, i32) {
    %c0_i32 = arith.constant 0 : i32
    %c0_i32_0 = arith.constant 0 : i32
    %c0_i32_1 = arith.constant 0 : i32
    return %c0_i32, %c0_i32_0 : i32, i32
  }
  func.func @transform_5(%arg0: i32) -> (i32, i32, i32) {
    %c0_i32 = arith.constant 0 : i32
    %c0_i32_0 = arith.constant 0 : i32
    %c0_i32_1 = arith.constant 0 : i32
    %c0_i32_2 = arith.constant 0 : i32
    return %c0_i32, %c0_i32_0, %c0_i32_1 : i32, i32, i32
  }
  func.func @transform_6(%arg0: i32) -> (i32, i32) {
    %c0_i32 = arith.constant 0 : i32
    %c0_i32_0 = arith.constant 0 : i32
    %c0_i32_1 = arith.constant 0 : i32
    return %c0_i32, %c0_i32_0 : i32, i32
  }
  func.func @transform_7(%arg0: i32) -> (i32, i32) {
    %c0_i32 = arith.constant 0 : i32
    %c0_i32_0 = arith.constant 0 : i32
    %c0_i32_1 = arith.constant 0 : i32
    return %c0_i32, %c0_i32_0 : i32, i32
  }
  func.func @transform_8(%arg0: i32) -> (i32, i32) {
    %c0_i32 = arith.constant 0 : i32
    %c0_i32_0 = arith.constant 0 : i32
    %c0_i32_1 = arith.constant 0 : i32
    return %c0_i32, %c0_i32_0 : i32, i32
  }
  func.func @transform_9(%arg0: i32) -> (i32, i32) {
    %c0_i32 = arith.constant 0 : i32
    %c0_i32_0 = arith.constant 0 : i32
    %c0_i32_1 = arith.constant 0 : i32
    return %c0_i32, %c0_i32_0 : i32, i32
  }
  func.func @transform_10(%arg0: i32) -> (i32, i32) {
    %c0_i32 = arith.constant 0 : i32
    %c0_i32_0 = arith.constant 0 : i32
    %c0_i32_1 = arith.constant 0 : i32
    return %c0_i32, %c0_i32_0 : i32, i32
  }
  func.func @transform_11(%arg0: i32) -> (i32, i32, i32) {
    %c0_i32 = arith.constant 0 : i32
    %c0_i32_0 = arith.constant 0 : i32
    %c0_i32_1 = arith.constant 0 : i32
    return %arg0, %c0_i32, %c0_i32_0 : i32, i32, i32
  }
}

</mosaic_0001>

<bundles_post_ra>
// kernel: tpu_custom_call.1
= control target key start
LH: loop header
LB: loop body
LE: loop exit
PB: predicated region body
PF: predicated region fallthrough
CT: control target
= control target key end

     0   :  { %16 = vsyncpa [#allocation3], 0  ;;  %s6296_s0 = inlined_call_operand.vmem [shape: f32[2,64,64], index: 0, kind: input, shape index: {}]   ;;  %s6297_s1 = inlined_call_operand.vmem [shape: bf16[9,64,32], index: 1, kind: input, shape index: {}]   ;;  %s6298_s2 = inlined_call_operand.vmem [shape: f32[1,32], index: 2, kind: input, shape index: {}]   ;;  %s6299_s3 = inlined_call_operand.vmem [shape: f32[1,32], index: 3, kind: input, shape index: {}]   ;;  %s6300_s4 = inlined_call_operand.vmem [shape: f32[1,32], index: 4, kind: input, shape index: {}]   ;;  %s6301_s5 = inlined_call_operand.vmem [shape: bf16[9,32,32], index: 5, kind: input, shape index: {}]   ;;  %s6302_s6 = inlined_call_operand.vmem [shape: f32[1,32], index: 6, kind: input, shape index: {}]   ;;  %s6303_s7 = inlined_call_operand.vmem [shape: f32[1,32], index: 7, kind: input, shape index: {}]   ;;  %s6304_s8 = inlined_call_operand.vmem [shape: f32[1,32], index: 8, kind: input, shape index: {}]   ;;  %s6305_s9 = inlined_call_operand.vmem [shape: bf16[32,128], index: 9, kind: input, shape index: {}]   ;;  %s6306_s10 = inlined_call_operand.vmem [shape: f32[1,128], index: 10, kind: input, shape index: {}]   ;;  %s6307_s11 = inlined_call_operand.hbm [shape: f32[2,64,128], index: 11, kind: output, shape index: {}]  }
   0x1   :  { %18 = vsyncpa [#allocation3 + $0x1], 0  ;;  %s4663_s17 = smov 0   ;;  %s4665_s18 = smov 0  }
   0x2   :  { %s4667_s19 = smov 0   ;;  %s4669_s20 = smov 0  }
   0x3 LB: > { %s4684_s21 = sadd.s32 4294967295, %s4595_s20   ;;  %s3714_s22 = sadd.s32 4294967294, %s4595_s20   ;;  %s4595_s20 = sphi %s4669_s20, %s6509_s20   ;;  %s4591_s19 = sphi %s4667_s19, %s6508_s19   ;;  %s4587_s18 = sphi %s4665_s18, %s6507_s18   ;;  %s4583_s17 = sphi %s4663_s17, %s6506_s17  }
   0x4   : > { %s4688_s23 = sadd.s32 1, %s4595_s20   ;;  %s267_s24 = sadd.s32 1, %s4591_s19 }
   0x5   : > { %s264_s25 = ssub.s32 %s4595_s20, %s4688_s23  ;;  %p277_p0 = scmp.ne.s32.totalorder %s4591_s19, %s4587_s18 }
   0x6   : > { %p265_p1 = scmp.eq.s32.totalorder %s264_s25, 0  ;;  %p278_p2 = scmp.eq.s32.totalorder %s4684_s21, 1 }
   0x7   : > { %p283_p3 = scmp.ne.s32.totalorder %s4587_s18, %s4583_s17  ;;  %p284_p4 = scmp.eq.s32.totalorder %s3714_s22, 1 }
   0x8   : > { %s4699_s26 = scalar_select %p265_p1, %s4591_s19, %s267_s24  }
   0x9   : > { %p4701_p5 = por %p278_p2, %p277_p0  ;;  %p4705_p6 = por %p284_p4, %p283_p3 }
   0xa   : > { %6335 = sst [smem:[#allocation5_spill]] %s4699_s26  ;;  %p3717_p7 = scmp.ge.s32.totalorder %s4595_s20, 1 }
   0xb   : > { %p340_p8 = scmp.lt.s32.totalorder %s4595_s20, 3 }
   0xd   : > { %p341_p9 = pnand %p3717_p7, %p340_p8 }
   0xf   : > { %344 = sbr.rel (%p341_p9) target bundleno = 1027 (0x403), region = 64 }
  0x14   : > { %v4411_v0 = vld [vmem:[%s6297_s1 + $0x18] sm:$0xff]   ;;  %p380_p10 = scmp.lt.s32.totalorder %s4684_s21, 1  ;;  %v4413_v2 = vld [vmem:[%s6297_s1 + $0x10] sm:$0xff]   ;;  %v4415_v4 = vld [vmem:[%s6297_s1 + $0x8] sm:$0xff]   ;;  %vm6313_vm0 = vcmask 1040384   ;;  %vm593_vm2 = vcmask 523264  }
  0x15   : > { %v4412_v1 = vld [vmem:[%s6297_s1 + $0x38] sm:$0xff]   ;;  %4095 = vmatprep.subr.bf16.mxu0 %v4411_v0  ;;  %v4414_v3 = vld [vmem:[%s6297_s1 + $0x30] sm:$0xff]   ;;  %v4416_v5 = vld [vmem:[%s6297_s1 + $0x28] sm:$0xff]   ;;  %vm6312_vm1 = vsmask.f32 7424  ;;  %v6308_v21 = vmov 0.0  }
  0x16   : > { %s381_s16 = scalar_select %p380_p10, %s4684_s21, 1  ;;  %4096 = vmatpush3.bf16.msra.mxu0 %v4411_v0  ;;  %4111 = vmatprep.subr.bf16.mxu1 %v4412_v1  ;;  %v4417_v6 = vld [vmem:[%s6297_s1] sm:$0xff]   ;;  %v4419_v25 = vld [vmem:[%s6297_s1 + $0x58] sm:$0xff]   ;;  %v4421_v38 = vld [vmem:[%s6297_s1 + $0x50] sm:$0xff]   ;;  %vm6311_vm3 = vcmask 1046528  }
  0x17   : > { %4112 = vmatpush3.bf16.msra.mxu1 %v4412_v1  ;;  %4097 = vmatprep.subr.bf16.mxu0 %v4413_v2  ;;  %v4418_v10 = vld [vmem:[%s6297_s1 + $0x20] sm:$0xff]   ;;  %v4420_v28 = vld [vmem:[%s6297_s1 + $0x78] sm:$0xff]   ;;  %v4422_v47 = vld [vmem:[%s6297_s1 + $0x70] sm:$0xff]   ;;  %s3962_s13 = sshll.u32 %s4684_s21, 10 }
  0x18   : > { %s3961_s30 = sshll.u32 %s381_s16, 6  ;;  %4113 = vmatprep.subr.bf16.mxu1 %v4414_v3  ;;  %v4423_v52 = vld [vmem:[%s6297_s1 + $0x48] sm:$0xff]   ;;  %v4425_v0 = vld [vmem:[%s6297_s1 + $0x40] sm:$0xff]   ;;  %s377_s16 = sand.u32 1, %s4587_s18  }
  0x19   : > { %s4734_s26 = scalar_lea.vmem %s6296_s0, %s3961_s30  ;;  %v4424_v63 = vld [vmem:[%s6297_s1 + $0x68] sm:$0xff]   ;;  %s3718_s25 = sshll.u32 %s377_s16, 6 }
  0x1a   : > { %4098 = vmatpush3.bf16.msra.mxu0 %v4413_v2  ;;  %v507_v7 = vld [vmem:[%s4734_s26] sm:$0xff]  ;;  %v508_v8 = vld [vmem:[%s4734_s26 + $0x8] sm:$0xff]  ;;  %v509_v9 = vld [vmem:[%s4734_s26 + $0x10] sm:$0xff]  ;;  %s379_s12 = scalar_lea.vmem [#allocation2], %s3718_s25  ;;  %s6250_s24 = scalar_lea.hbm %s6307_s11, %s3962_s13 }
  0x1b   : > { %4114 = vmatpush3.bf16.msra.mxu1 %v4414_v3  ;;  %4099 = vmatprep.subr.bf16.mxu0 %v4415_v4  ;;  %v525_v11 = vrot.slane %v507_v7, 7  ;;  %v510_v12 = vld [vmem:[%s4734_s26 + $0x18] sm:$0xff]  ;;  %v511_v13 = vld [vmem:[%s4734_s26 + $0x20] sm:$0xff]  ;;  %v526_v14 = vrot.slane %v508_v8, 7  ;;  %v528_v15 = vrot.slane %v509_v9, 7  ;;  %v512_v31 = vld [vmem:[%s4734_s26 + $0x28] sm:$0xff] }
  0x1c   : > { %4115 = vmatprep.subr.bf16.mxu1 %v4416_v5  ;;  %v530_v16 = vrot.slane %v510_v12, 7  ;;  %v532_v17 = vrot.slane %v511_v13, 7  ;;  %v513_v32 = vld [vmem:[%s4734_s26 + $0x30] sm:$0xff]  ;;  %v534_v36 = vrot.slane %v512_v31, 7  ;;  %v4794_v41 = vld [vmem:[%s4734_s26 + $0x38] sm:$0xff]  ;;  %v4426_v7 = vld [vmem:[%s6297_s1 + $0x60] sm:$0xff]  }
  0x1d   : > { %v4748_v18 = vsel %vm6313_vm0, 0.0, %v525_v11  ;;  %v4751_v19 = vsel %vm6313_vm0, %v525_v11, %v526_v14  ;;  %v4754_v20 = vsel %vm6313_vm0, %v526_v14, %v528_v15  ;;  %v536_v39 = vrot.slane %v513_v32, 7  ;;  %v4427_v9 = vld [vmem:[%s6297_s1 + $0x98] sm:$0xff]   ;;  %v4432_v32 = vld [vmem:[%s6297_s1 + $0xa8] sm:$0xff]   ;;  %s3652_s14 = sshll.u32 %s379_s12, 4  ;;  %s6256_s21 = scalar_lea.sflag [#allocation3], %s377_s16  ;;  %s6252_s14 = int_to_ptr.vmem [resolvable:$true] %s3652_s14 }
  0x1e   : > { %4100 = vmatpush3.bf16.msra.mxu0 %v4415_v4  ;;  %v4758_v22 = vpack.c.bf16 %v4748_v18, %v6308_v21  ;;  %v4761_v23 = vsel %vm6313_vm0, %v528_v15, %v530_v16  ;;  %v4764_v24 = vsel %vm6313_vm0, %v530_v16, %v532_v17  ;;  %v4771_v26 = vpack.c.bf16 %v4754_v20, %v4751_v19  ;;  %v4429_v15 = vld [vmem:[%s6297_s1 + $0x90] sm:$0xff]   ;;  %s4535_s26 = scalar_lea.vmem %s6252_s14, 1024  ;;  %s4600_s25 = smov [#allocation2]  }
  0x1f   : > { %4116 = vmatpush3.bf16.msra.mxu1 %v4416_v5  ;;  %4101 = vmatprep.subr.bf16.mxu0 %v4417_v6  ;;  %v4775_v27 = vpack.c.bf16 %v4764_v24, %v4761_v23  ;;  %v4797_v44 = vsel %vm6313_vm0, %v532_v17, %v534_v36  ;;  %v538_v45 = vrot.slane %v4794_v41, 7  ;;  %v4806_v48 = vsel %vm6313_vm0, %v534_v36, %v536_v39  ;;  %p4536_p11 = scmp.ne.s32.totalorder %s6252_s14, %s4535_s26  ;;  %s4539_s29 = sshll.u32 %s4600_s25, 4  ;;  %s4540_s29 = int_to_ptr.vmem [resolvable:$false] %s4539_s29 }
  0x20   : > { %4117 = vmatprep.subr.bf16.mxu1 %v4418_v10  ;;  %4103 = vmatprep.mubr.msk.bf16.mxu0 %vm593_vm2, %v4758_v22  ;;  %v714_v29 = vshrl.u32 %v4758_v22, 16  ;;  %v716_v30 = vshll.u32 %v4758_v22, 16  ;;  %v720_v33 = vshll.u32 %v4771_v26, 16  ;;  %v724_v34 = vshrl.u32 %v4771_v26, 16  ;;  %s4541_s30 = scalar_lea.vmem %s4540_s29, 2048  ;;  %p4542_p0 = scmp.lt.s32.totalorder %s6252_s14, %s4540_s29 }
  0x21   : > { %v727_v35 = vshll.u32 %v4775_v27, 16  ;;  %v731_v40 = vshrl.u32 %v4775_v27, 16  ;;  %v4812_v50 = vpack.c.bf16 %v4806_v48, %v4797_v44  ;;  %v4821_v54 = vsel %vm6313_vm0, %v536_v39, %v538_v45  ;;  %p4537_p12 = pnand %p4536_p11, %p4701_p5  ;;  %p4543_p1 = scmp.lt.s32.totalorder %s4541_s30, %s4535_s26 }
  0x22   : > { %4102 = vmatpush3.bf16.msra.mxu0 %v4417_v6  ;;  %v718_v37 = vrot.slane %v716_v30, 1  ;;  %v722_v42 = vrot.slane %v720_v33, 1  ;;  %v870_v55 = vrot.slane %v4758_v22, 1  ;;  %v871_v56 = vrot.slane %v4771_v26, 1 }
  0x23   : > { %4118 = vmatpush3.bf16.msra.mxu1 %v4418_v10  ;;  %4127 = vmatprep.subr.bf16.mxu0 %v4419_v25  ;;  %v729_v43 = vrot.slane %v727_v35, 1  ;;  %v734_v58 = vshll.u32 %v4812_v50, 16  ;;  %v4832_v59 = vpack.c.bf16 %v4821_v54, %v4821_v54  ;;  %v738_v60 = vshrl.u32 %v4812_v50, 16  ;;  %v4428_v10 = vld [vmem:[%s6297_s1 + $0xb8] sm:$0xff]   ;;  %v4433_v35 = vld [vmem:[%s6297_s1 + $0x80] sm:$0xff]   ;;  %p4538_p13 = pneg %p4537_p12  ;;  %p4544_p2 = por %p4543_p1, %p4542_p0 }
  0x24   : > { %4143 = vmatprep.subr.bf16.mxu1 %v4420_v28  ;;  %v719_v46 = vor.u32 %v718_v37, %v714_v29  ;;  %v726_v49 = vor.u32 %v724_v34, %v722_v42  ;;  %v872_v4 = vsel %vm6311_vm3, %v870_v55, %v871_v56  ;;  %v873_v6 = vrot.slane %v4775_v27, 1 }
  0x25   : > { %4104 = vmatmul.mubr.msk.bf16.vlgmr.msra.gmra.mxu0 %vm593_vm2, %v4771_v26  ;;  %v733_v51 = vor.u32 %v731_v40, %v729_v43  ;;  %v736_v61 = vrot.slane %v734_v58, 1  ;;  %v742_v62 = vshll.u32 %v4832_v59, 16  ;;  %v4862_v8 = vpack.c.bf16 %v4751_v19, %v4748_v18  ;;  %v4434_v40 = vld [vmem:[%s6297_s1 + $0xa0] sm:$0xff]   ;;  %p4545_p3 = pnand %p4544_p2, %p4538_p13 }
  0x26   : > { %4128 = vmatpush3.bf16.msra.mxu0 %v4419_v25  ;;  %4107 = vmatprep.mubr.msk.bf16.mxu0 %vm593_vm2, %v4775_v27  ;;  %v723_v53 = vsel %vm6312_vm1, %v719_v46, %v722_v42  ;;  %v4827_v57 = vsel %vm6312_vm1, %v726_v49, %v729_v43  ;;  %v4873_v11 = vrot.slane %v4812_v50, 1  ;;  %v4877_v13 = vsel %vm6311_vm3, %v871_v56, %v873_v6  ;;  %v4431_v25 = vld [vmem:[%s6297_s1 + $0x88] sm:$0xff]   ;;  %v4435_v46 = vld [vmem:[%s6297_s1 + $0xd8] sm:$0xff]  }
  0x27   : > { %4129 = vmatprep.subr.bf16.mxu0 %v4421_v38  ;;  %4119 = vmatprep.mubr.msk.bf16.mxu1 %vm593_vm2, %v723_v53  ;;  %v4845_v1 = vsel %vm6312_vm1, %v733_v51, %v736_v61  ;;  %v4847_v2 = vor.u32 %v738_v60, %v736_v61  ;;  %v744_v3 = vrot.slane %v742_v62, 1  ;;  %v1154_v12 = vshll.u32 %v4862_v8, 16  ;;  %v4436_v51 = vld [vmem:[%s6297_s1 + $0xf8] sm:$0xff]   ;;  %v4438_v61 = vld [vmem:[%s6297_s1 + $0xf0] sm:$0xff]  }
  0x28   : > { %4120 = vmatmul.mubr.msk.bf16.vlgmr.msra.gmra.mxu1 %vm593_vm2, %v4827_v57  ;;  %v4881_v14 = vpack.c.bf16 %v4761_v23, %v4754_v20  ;;  %v1152_v16 = vshrl.u32 %v4862_v8, 16  ;;  %v4893_v17 = vsel %vm6311_vm3, %v873_v6, %v4873_v11  ;;  %v4430_v20 = vld [vmem:[%s6297_s1 + $0xb0] sm:$0xff]   ;;  %v877_v22 = vrot.slane %v4832_v59, 1  ;;  %v4441_v6 = vld [vmem:[%s6297_s1 + $0xc0] sm:$0xff]  }
  0x29   : > { %4144 = vmatpush3.bf16.msra.mxu1 %v4420_v28  ;;  %4123 = vmatprep.mubr.msk.bf16.mxu1 %vm593_vm2, %v4845_v1  ;;  %v745_v5 = vsel %vm6312_vm1, %v4847_v2, %v744_v3  ;;  %v1156_v18 = vrot.slane %v1154_v12, 1  ;;  %v4902_v23 = vpack.c.bf16 %v4797_v44, %v4764_v24  ;;  %v4913_v29 = vsel %vm6313_vm0, %v538_v45, 0.0  ;;  %v4439_v3 = vld [vmem:[%s6297_s1 + $0xc8] sm:$0xff]   ;;  %v4443_v12 = vld [vmem:[%s6297_s1 + $0x118] sm:$0xff]  }
  0x2a   : > { %4130 = vmatpush3.bf16.msra.mxu0 %v4421_v38  ;;  %4145 = vmatprep.subr.bf16.mxu1 %v4422_v47  ;;  %v1158_v19 = vshll.u32 %v4881_v14, 16  ;;  %v878_v31 = vsel %vm6311_vm3, %v4873_v11, %v877_v22  ;;  %v1162_v33 = vshrl.u32 %v4881_v14, 16  ;;  %v4927_v34 = vpack.c.bf16 %v4821_v54, %v4806_v48 }
  0x2b   : > { %4131 = vmatprep.subr.bf16.mxu0 %v4423_v52  ;;  %v1165_v28 = vshll.u32 %v4902_v23, 16  ;;  %v1157_v24 = vor.u32 %v1156_v18, %v1152_v16  ;;  %v1307_v36 = vrot.slane %v4862_v8, 1  ;;  %v1142_v37 = vpack.c.bf16 %v4913_v29, %v4913_v29  ;;  %v4445_v16 = vld [vmem:[%s6297_s1 + $0x108] sm:$0xff]  }
  0x2c   : > { %v1160_v30 = vrot.slane %v1158_v19, 1  ;;  %v1308_v39 = vrot.slane %v4881_v14, 1  ;;  %v1310_v42 = vrot.slane %v4902_v23, 1  ;;  %v1169_v43 = vshrl.u32 %v4902_v23, 16 }
  0x2d   : > { %4108 = vmatmul.mubr.msk.bf16.gmra.mxu0 %vm593_vm2, %v4812_v50  ;;  %4146 = vmatpush3.bf16.msra.mxu1 %v4422_v47  ;;  %v1167_v38 = vrot.slane %v1165_v28, 1  ;;  %v1172_v44 = vshll.u32 %v4927_v34, 16  ;;  %v1176_v47 = vshrl.u32 %v4927_v34, 16  ;;  %v1180_v48 = vshll.u32 %v1142_v37, 16 }
  0x2e   : > { %4132 = vmatpush3.bf16.msra.mxu0 %v4423_v52  ;;  %4147 = vmatprep.subr.bf16.mxu1 %v4424_v63  ;;  %v1161_v41 = vsel %vm6312_vm1, %v1157_v24, %v1160_v30  ;;  %v1164_v45 = vor.u32 %v1162_v33, %v1160_v30  ;;  %v1309_v49 = vsel %vm6311_vm3, %v1307_v36, %v1308_v39  ;;  %v4437_v52 = vld [vmem:[%s6297_s1 + $0xd0] sm:$0xff]   ;;  %v1312_v56 = vrot.slane %v4927_v34, 1 }
  0x2f   : > { %4133 = vmatprep.subr.bf16.mxu0 %v4425_v0  ;;  %4135 = vmatprep.mubr.msk.bf16.mxu0 %vm593_vm2, %v872_v4  ;;  %v1171_v53 = vor.u32 %v1169_v43, %v1167_v38  ;;  %v1174_v55 = vrot.slane %v1172_v44, 1  ;;  %v1182_v59 = vrot.slane %v1180_v48, 1  ;;  %v1314_v60 = vrot.slane %v1142_v37, 1 }
  0x30   : > { %4124 = vmatmul.mubr.msk.bf16.gmra.mxu1 %vm593_vm2, %v745_v5  ;;  %v1168_v58 = vsel %vm6312_vm1, %v1164_v45, %v1167_v38  ;;  %v1313_v4 = vsel %vm6311_vm3, %v1310_v42, %v1312_v56  ;;  %v4440_v5 = vld [vmem:[%s6297_s1 + $0xe8] sm:$0xff]   ;;  %v4598_v18 = vmov 0   ;;  %v4599_v22 = vmov 0.0|0.0  }
  0x31   : > { %4148 = vmatpush3.bf16.msra.mxu1 %v4424_v63  ;;  %4151 = vmatprep.mubr.msk.bf16.mxu1 %vm593_vm2, %v4862_v8  ;;  %v1175_v62 = vsel %vm6312_vm1, %v1171_v53, %v1174_v55  ;;  %v1311_v63 = vsel %vm6311_vm3, %v1308_v39, %v1310_v42  ;;  %v1433_v8 = vpack.c.bf16 %v4913_v29, %v4821_v54  ;;  %v5010_v19 = vrot.slane %v4598_v18, 1 }
  0x32   : > { %4134 = vmatpush3.bf16.msra.mxu0 %v4425_v0  ;;  %4149 = vmatprep.subr.bf16.mxu1 %v4426_v7  ;;  %v1178_v0 = vor.u32 %v1176_v47, %v1174_v55  ;;  %v6357_v21 = vmov 0 }
  0x33   : > { %4159 = vmatprep.subr.bf16.mxu0 %v4427_v9  ;;  %v1561_v54 = vshll.u32 %v1433_v8, 16  ;;  %6338 = vst [vmem:[#allocation6_spill] sm:$0xff] %v5010_v19 }
  0x35   : > { %4136 = vmatmul.mubr.msk.bf16.vlgmr.msra.gmra.mxu0 %vm593_vm2, %v4877_v13  ;;  %4150 = vmatpush3.bf16.msra.mxu1 %v4426_v7  ;;  %v1183_v7 = vsel %vm6312_vm1, %v1178_v0, %v1182_v59 }
  0x36   : > { %4160 = vmatpush3.bf16.msra.mxu0 %v4427_v9  ;;  %4175 = vmatprep.subr.bf16.mxu1 %v4428_v10  ;;  %v1315_v9 = vsel %vm6311_vm3, %v1312_v56, %v1314_v60 }
  0x37   : > { %4161 = vmatprep.subr.bf16.mxu0 %v4429_v15  ;;  %4139 = vmatprep.mubr.msk.bf16.mxu0 %vm593_vm2, %v4893_v17 }
  0x38   : > { %4152 = vmatmul.mubr.msk.bf16.vlgmr.msra.gmra.mxu1 %vm593_vm2, %v4881_v14  ;;  %v4444_v14 = vld [vmem:[%s6297_s1 + $0x110] sm:$0xff]  }
  0x39   : > { %4176 = vmatpush3.bf16.msra.mxu1 %v4428_v10  ;;  %4155 = vmatprep.mubr.msk.bf16.mxu1 %vm593_vm2, %v4902_v23  ;;  %v4442_v10 = vld [vmem:[%s6297_s1 + $0xe0] sm:$0xff]   ;;  %v5024_v23 = vrot.slane %v4599_v22, 1 }
  0x3a   : > { %4162 = vmatpush3.bf16.msra.mxu0 %v4429_v15  ;;  %4177 = vmatprep.subr.bf16.mxu1 %v4430_v20  ;;  %v1563_v15 = vrot.slane %v1561_v54, 1 }
  0x3b   : > { %4163 = vmatprep.subr.bf16.mxu0 %v4431_v25  ;;  %6339 = vst [vmem:[#allocation7_spill] sm:$0xff] %v5024_v23 }
  0x3d   : > { %4140 = vmatmul.mubr.msk.bf16.gmra.mxu0 %vm593_vm2, %v878_v31  ;;  %4178 = vmatpush3.bf16.msra.mxu1 %v4430_v20 }
  0x3e   : > { %4164 = vmatpush3.bf16.msra.mxu0 %v4431_v25  ;;  %4179 = vmatprep.subr.bf16.mxu1 %v4432_v32 }
  0x3f   : > { %4165 = vmatprep.subr.bf16.mxu0 %v4433_v35  ;;  %4167 = vmatprep.mubr.msk.bf16.mxu0 %vm593_vm2, %v1161_v41 }
  0x40   : > { %4156 = vmatmul.mubr.msk.bf16.gmra.mxu1 %vm593_vm2, %v4927_v34 }
  0x41   : > { %4180 = vmatpush3.bf16.msra.mxu1 %v4432_v32  ;;  %4183 = vmatprep.mubr.msk.bf16.mxu1 %vm593_vm2, %v1309_v49 }
  0x42   : > { %4166 = vmatpush3.bf16.msra.mxu0 %v4433_v35  ;;  %4181 = vmatprep.subr.bf16.mxu1 %v4434_v40 }
  0x43   : > { %4191 = vmatprep.subr.bf16.mxu0 %v4435_v46 }
  0x45   : > { %4168 = vmatmul.mubr.msk.bf16.vlgmr.msra.gmra.mxu0 %vm593_vm2, %v1168_v58  ;;  %4182 = vmatpush3.bf16.msra.mxu1 %v4434_v40 }
  0x46   : > { %4192 = vmatpush3.bf16.msra.mxu0 %v4435_v46  ;;  %4207 = vmatprep.subr.bf16.mxu1 %v4436_v51  ;;  %v386_v46 = vlaneseq }
  0x47   : > { %4193 = vmatprep.subr.bf16.mxu0 %v4437_v52  ;;  %4171 = vmatprep.mubr.msk.bf16.mxu0 %vm593_vm2, %v1175_v62 }
  0x48   : > { %4184 = vmatmul.mubr.msk.bf16.vlgmr.msra.gmra.mxu1 %vm593_vm2, %v1311_v63 }
  0x49   : > { %4208 = vmatpush3.bf16.msra.mxu1 %v4436_v51  ;;  %4187 = vmatprep.mubr.msk.bf16.mxu1 %vm593_vm2, %v1313_v4 }
  0x4a   : > { %4194 = vmatpush3.bf16.msra.mxu0 %v4437_v52  ;;  %4209 = vmatprep.subr.bf16.mxu1 %v4438_v61  ;;  %v387_v52 = vshrl.u32 %v386_v46, 7  ;;  %v3721_v46 = vld [vmem:[%s6298_s2] ss:$0 sm:$0xff] }
  0x4b   : > { %4195 = vmatprep.subr.bf16.mxu0 %v4439_v3 }
  0x4c   : > { %v389_v59 = vadd.s32 16, %v387_v52  ;;  %v390_v60 = vadd.s32 24, %v387_v52  ;;  %v399_v63 = vand.u32 7, %v387_v52  ;;  %v388_v0 = vadd.s32 8, %v387_v52 }
  0x4d   : > { %4172 = vmatmul.mubr.msk.bf16.gmra.mxu0 %vm593_vm2, %v1183_v7  ;;  %4210 = vmatpush3.bf16.msra.mxu1 %v4438_v61 }
  0x4e   : > { %4196 = vmatpush3.bf16.msra.mxu0 %v4439_v3  ;;  %4211 = vmatprep.subr.bf16.mxu1 %v4440_v5  ;;  %v393_v3 = vadd.s32 48, %v387_v52  ;;  %v413_v7 = vand.u32 7, %v389_v59  ;;  %vm5106_vm4 = vcmp.gt.s32.totalorder %v399_v63, 0  ;;  %vm5159_vm11 = vcmp.lt.s32.totalorder %v399_v63, 7 }
  0x4f   : > { %4197 = vmatprep.subr.bf16.mxu0 %v4441_v6  ;;  %4199 = vmatprep.mubr.msk.bf16.mxu0 %vm593_vm2, %v4771_v26  ;;  %v1565_v26 = vshrl.u32 %v1433_v8, 16  ;;  %v6358_v21 = vsel %vm5159_vm11, 4294967295, %v6357_v21  ;;  %v6364_v63 = vmov 0 }
  0x50   : > { %4188 = vmatmul.mubr.msk.bf16.gmra.mxu1 %vm593_vm2, %v1315_v9  ;;  %v5100_v9 = vadd.s32 56, %v387_v52  ;;  %vm5114_vm5 = vcmp.gt.s32.totalorder %v413_v7, 0  ;;  %vm5177_vm13 = vcmp.lt.s32.totalorder %v413_v7, 7 }
  0x51   : > { %4212 = vmatpush3.bf16.msra.mxu1 %v4440_v5  ;;  %4215 = vmatprep.mubr.msk.bf16.mxu1 %vm593_vm2, %v4827_v57  ;;  %v1564_v57 = vsel %vm6312_vm1, %v4847_v2, %v1563_v15  ;;  %v1687_v2 = vrot.slane %v1433_v8, 1  ;;  %v6365_v63 = vsel %vm5177_vm13, 4294967295, %v6364_v63 }
  0x52   : > { %4198 = vmatpush3.bf16.msra.mxu0 %v4441_v6  ;;  %4213 = vmatprep.subr.bf16.mxu1 %v4442_v10  ;;  %v391_v6 = vadd.s32 32, %v387_v52 }
  0x53   : > { %4223 = vmatprep.subr.bf16.mxu0 %v4443_v12  ;;  %v1688_v20 = vsel %vm6311_vm3, %v4873_v11, %v1687_v2 }
  0x55   : > { %4200 = vmatmul.mubr.msk.bf16.vlgmr.msra.gmra.mxu0 %vm593_vm2, %v4775_v27  ;;  %4214 = vmatpush3.bf16.msra.mxu1 %v4442_v10  ;;  %v1567_v27 = vor.u32 %v1565_v26, %v1563_v15  ;;  %v406_v15 = vand.u32 7, %v388_v0  ;;  %v441_v26 = vand.u32 7, %v393_v3 }
  0x56   : > { %4224 = vmatpush3.bf16.msra.mxu0 %v4443_v12  ;;  %4359 = vmatprep.subr.bf16.mxu1 %v4443_v12 }
  0x57   : > { %4225 = vmatprep.subr.bf16.mxu0 %v4444_v14  ;;  %4203 = vmatprep.mubr.msk.bf16.mxu0 %vm593_vm2, %v4812_v50  ;;  %v4446_v50 = vld [vmem:[%s6297_s1 + $0x100] sm:$0xff]   ;;  %vm5133_vm7 = vcmp.gt.s32.totalorder %v406_v15, 0  ;;  %vm5137_vm8 = vcmp.gt.s32.totalorder %v441_v26, 0  ;;  %vm5196_vm15 = vcmp.lt.s32.totalorder %v406_v15, 7 }
  0x58   : > { %4216 = vmatmul.mubr.msk.bf16.vlgmr.msra.gmra.mxu1 %vm593_vm2, %v4845_v1  ;;  %v1572_v1 = vsel %vm6312_vm1, %v1567_v27, %v5010_v19  ;;  %v427_v27 = vand.u32 7, %v391_v6  ;;  %v6361_v19 = vmov 0 }
  0x59   : > { %4363 = vmatpush3.bf16.msra.mxu1 %v4443_v12  ;;  %4219 = vmatprep.mubr.msk.bf16.mxu1 %vm593_vm2, %v1564_v57 }
  0x5a   : > { %4226 = vmatpush3.bf16.msra.mxu0 %v4444_v14  ;;  %4360 = vmatprep.subr.bf16.mxu1 %v4444_v14  ;;  %vm5151_vm9 = vcmp.gt.s32.totalorder %v427_v27, 0 }
  0x5b   : > { %4227 = vmatprep.subr.bf16.mxu0 %v4445_v16 }
  0x5d   : > { %4204 = vmatmul.mubr.msk.bf16.gmra.mxu0 %vm593_vm2, %v1433_v8  ;;  %4364 = vmatpush3.bf16.msra.mxu1 %v4444_v14  ;;  %v420_v8 = vand.u32 7, %v390_v60  ;;  %v392_v14 = vadd.s32 40, %v387_v52 }
  0x5e   : > { %4228 = vmatpush3.bf16.msra.mxu0 %v4445_v16  ;;  %4361 = vmatprep.subr.bf16.mxu1 %v4445_v16 }
  0x5f   : > { %4229 = vmatprep.subr.bf16.mxu0 %v4446_v50  ;;  %4231 = vmatprep.mubr.msk.bf16.mxu0 %vm593_vm2, %v4877_v13  ;;  %v1690_v13 = vsel %vm6311_vm3, %v1687_v2, %v5024_v23  ;;  %vm5121_vm6 = vcmp.gt.s32.totalorder %v420_v8, 0  ;;  %vm5184_vm14 = vcmp.lt.s32.totalorder %v420_v8, 7  ;;  %vm5217_vm3 = vcmp.lt.s32.totalorder %v427_v27, 7 }
  0x60   : > { %4220 = vmatmul.mubr.msk.bf16.gmra.mxu1 %vm593_vm2, %v1572_v1  ;;  %v448_v1 = vand.u32 7, %v5100_v9 }
  0x61   : > { %4365 = vmatpush3.bf16.msra.mxu1 %v4445_v16  ;;  %4235 = vmatprep.mubr.msk.bf16.mxu1 %vm593_vm2, %v1688_v20 }
  0x62   : > { %4230 = vmatpush3.bf16.msra.mxu0 %v4446_v50  ;;  %4362 = vmatprep.subr.bf16.mxu1 %v4446_v50  ;;  %vm5155_vm10 = vcmp.gt.s32.totalorder %v448_v1, 0  ;;  %vm5242_vm0 = vcmp.lt.s32.totalorder %v448_v1, 7 }
  0x65   : > { %4232 = vmatmul.mubr.msk.bf16.vlgmr.msra.gmra.mxu0 %vm593_vm2, %v4893_v17  ;;  %4366 = vmatpush3.bf16.msra.mxu1 %v4446_v50 }
  0x68   : > { %4236 = vmatmul.mubr.msk.bf16.vlgmr.msra.gmra.mxu1 %vm593_vm2, %v1690_v13  ;;  %v434_v13 = vand.u32 7, %v392_v14  ;;  %vm5200_vm2 = vcmp.lt.s32.totalorder %v441_v26, 7 }
  0x6a   : > { %vm5173_vm12 = vcmp.gt.s32.totalorder %v434_v13, 0  ;;  %vm5221_vm1 = vcmp.lt.s32.totalorder %v434_v13, 7 }
  0x6b   : > { %v6362_v19 = vsel %vm5173_vm12, 4294967295, %v6361_v19 }
  0x6c   : > { %6363 = vst [vmem:[#allocation13_spill] sm:$0xff] %v6362_v19 }
  0xe5   : > { %v5032_v11 = vpop.f32.mrf.mxu0 }
  0xe6   : > { %v689_v0 = vsel %vm5114_vm5, %v5032_v11, 0.0 }
  0xe7   : > { %v5034_v25 = vpop.f32.mrf.mxu0 }
  0xe8   : > { %v5036_v28 = vpop.f32.mrf.mxu1  ;;  %v687_v50 = vsel %vm5106_vm4, %v5034_v25, 0.0 }
  0xe9   : > { %v5038_v29 = vpop.f32.mrf.mxu0  ;;  %v695_v3 = vadd.f32 %v3721_v46, %v687_v50 }
  0xea   : > { %v5040_v24 = vpop.f32.mrf.mxu1  ;;  %v690_v6 = vsel %vm5121_vm6, %v5038_v29, 0.0 }
  0xeb   : > { %v5042_v30 = vpop.f32.mrf.mxu0 }
  0xec   : > { %v5044_v31 = vpop.f32.mrf.mxu1  ;;  %v688_v29 = vsel %vm5133_vm7, %v5042_v30, 0.0  ;;  %v6366_v30 = vmov 0 }
  0xed   : > { %v5046_v17 = vpop.f32.mrf.mxu0  ;;  %v6367_v30 = vsel %vm5184_vm14, 4294967295, %v6366_v30  ;;  %v696_v8 = vadd.f32 %v3721_v46, %v688_v29  ;;  %v6377_v29 = vmov 0 }
  0xee   : > { %v5048_v32 = vpop.f32.mrf.mxu1  ;;  %v693_v50 = vsel %vm5137_vm8, %v5046_v17, 0.0  ;;  %6368 = vst [vmem:[#allocation14_spill] sm:$0xff] %v6367_v30  ;;  %v6378_v29 = vsel %vm5217_vm3, 4294967295, %v6377_v29 }
  0xef   : > { %v5050_v33 = vpop.f32.mrf.mxu0 }
  0xf0   : > { %v5052_v34 = vpop.f32.mrf.mxu1 }
  0xf1   : > { %v5054_v35 = vpop.f32.mrf.mxu0 }
  0xf2   : > { %v5056_v36 = vpop.f32.mrf.mxu1 }
  0xf3   : > { %v5058_v37 = vpop.f32.mrf.mxu0 }
  0xf4   : > { %v5060_v38 = vpop.f32.mrf.mxu1 }
  0xf5   : > { %v5062_v39 = vpop.f32.mrf.mxu0 }
  0xf6   : > { %v5064_v40 = vpop.f32.mrf.mxu1  ;;  %v998_v26 = vsel %vm5177_vm13, %v5062_v39, 0.0 }
  0xf7   : > { %v5066_v41 = vpop.f32.mrf.mxu0 }
  0xf8   : > { %v5068_v42 = vpop.f32.mrf.mxu1  ;;  %v996_v7 = vsel %vm5159_vm11, %v5066_v41, 0.0 }
  0xf9   : > { %v5070_v43 = vpop.f32.mrf.mxu0 }
  0xfa   : > { %v5072_v44 = vpop.f32.mrf.mxu1 }
  0xfb   : > { %v5074_v45 = vpop.f32.mrf.mxu0  ;;  %v1126_v13 = vsel %vm5106_vm4, %v5072_v44, 0.0  ;;  %v1128_v44 = vsel %vm5114_vm5, %v5068_v42, 0.0 }
  0xfc   : > { %v5076_v47 = vpop.f32.mrf.mxu1 }
  0xfd   : > { %v5078_v48 = vpop.f32.mrf.mxu0 }
  0xfe   : > { %v5080_v49 = vpop.f32.mrf.mxu1 }
  0xff   : > { %v5082_v51 = vpop.f32.mrf.mxu0 }
 0x100   : > { %v5084_v53 = vpop.f32.mrf.mxu1 }
 0x101   : > { %v5086_v55 = vpop.f32.mrf.mxu0 }
 0x102   : > { %v5088_v56 = vpop.f32.mrf.mxu1 }
 0x103   : > { %v5090_v58 = vpop.f32.mrf.mxu0 }
 0x104   : > { %v5092_v61 = vpop.f32.mrf.mxu1 }
 0x105   : > { %v5094_v62 = vpop.f32.mrf.mxu0 }
 0x106   : > { %v5096_v4 = vpop.f32.mrf.mxu1 }
 0x107   : > { %v5098_v5 = vpop.f32.mrf.mxu0 }
 0x108   : > { %v5102_v10 = vpop.f32.mrf.mxu1 }
 0x109   : > { %v5104_v12 = vpop.f32.mrf.mxu0 }
 0x10a   : > { %v5110_v57 = vpop.f32.mrf.mxu1 }
 0x10b   : > { %v5112_v16 = vpop.f32.mrf.mxu0 }
 0x10c   : > { %v5126_v20 = vpop.f32.mrf.mxu1 }
 0x10d   : > { %v5128_v22 = vpop.f32.mrf.mxu0 }
 0x10e   : > { %6346 = vst [vmem:[#allocation8_spill] sm:$0xff] %v5128_v22  ;;  %v5141_v59 = vpop.f32.mrf.mxu1  ;;  %v697_v22 = vadd.f32 %v3721_v46, %v689_v0  ;;  %v6371_v0 = vmov 0 }
 0x10f   : > { %6351 = vst [vmem:[#allocation9_spill] sm:$0xff] %v5141_v59  ;;  %v5143_v60 = vpop.f32.mrf.mxu0  ;;  %v847_v59 = vadd.f32 %v5040_v24, %v695_v3  ;;  %v6372_v0 = vsel %vm5196_vm15, 4294967295, %v6371_v0  ;;  %v692_v24 = vsel %vm5173_vm12, %v5058_v37, 0.0 }
 0x110   : > { %6352 = vst [vmem:[#allocation10_spill] sm:$0xff] %v5143_v60  ;;  %v5163_v23 = vpop.f32.mrf.mxu1 }
 0x111   : > { %6359 = vst [vmem:[#allocation11_spill] sm:$0xff] %v5163_v23  ;;  %v5165_v11 = vpop.f32.mrf.mxu0  ;;  %v698_v23 = vadd.f32 %v3721_v46, %v690_v6  ;;  %v701_v6 = vadd.f32 %v3721_v46, %v693_v50  ;;  %v6379_v50 = vmov 0 }
 0x112   : > { %6360 = vst [vmem:[#allocation12_spill] sm:$0xff] %v5165_v11  ;;  %v691_v11 = vsel %vm5151_vm9, %v5050_v33, 0.0  ;;  %v5188_v60 = vpop.f32.mrf.mxu1  ;;  %v6373_v33 = vmov 0  ;;  %v6380_v50 = vsel %vm5221_vm1, 4294967295, %v6379_v50 }
 0x113   : > { %6369 = vst [vmem:[#allocation15_spill] sm:$0xff] %v5188_v60  ;;  %v5190_v17 = vpop.f32.mrf.mxu0  ;;  %v6374_v33 = vsel %vm5200_vm2, 4294967295, %v6373_v33  ;;  %v699_v15 = vadd.f32 %v3721_v46, %v691_v11  ;;  %v850_v37 = vadd.f32 %v5044_v31, %v698_v23  ;;  %v999_v11 = vsel %vm5184_vm14, %v5070_v43, 0.0 }
 0x114   : > { %6370 = vst [vmem:[#allocation16_spill] sm:$0xff] %v5190_v17  ;;  %v694_v17 = vsel %vm5155_vm10, %v5054_v35, 0.0  ;;  %v5210_v3 = vpop.f32.mrf.mxu1  ;;  %v849_v35 = vadd.f32 %v5036_v28, %v697_v22  ;;  %v997_v28 = vsel %vm5196_vm15, %v5074_v45, 0.0  ;;  %v848_v23 = vadd.f32 %v5048_v32, %v696_v8 }
 0x115   : > { %6375 = vst [vmem:[#allocation17_spill] sm:$0xff] %v5210_v3  ;;  %v5212_v41 = vpop.f32.mrf.mxu0  ;;  %v1004_v3 = vadd.f32 %v996_v7, %v847_v59  ;;  %v702_v27 = vadd.f32 %v3721_v46, %v694_v17  ;;  %v853_v31 = vadd.f32 %v5052_v34, %v701_v6  ;;  %v6381_v43 = vmov 0  ;;  %v4447_v34 = vld [vmem:[%s6301_s5 + $0x8] sm:$0xff]  }
 0x116   : > { %6376 = vst [vmem:[#allocation18_spill] sm:$0xff] %v5212_v41  ;;  %v5230_v60 = vpop.f32.mrf.mxu1  ;;  %v700_v41 = vadd.f32 %v3721_v46, %v692_v24  ;;  %v1006_v22 = vadd.f32 %v998_v26, %v849_v35  ;;  %v6382_v43 = vsel %vm5242_vm0, 4294967295, %v6381_v43  ;;  %v851_v17 = vadd.f32 %v5056_v36, %v699_v15  ;;  %4239 = vmatprep.subr.bf16.mxu1 %v4447_v34 }
 0x117   : > { %v5232_v39 = vpop.f32.mrf.mxu0  ;;  %v1007_v45 = vadd.f32 %v999_v11, %v850_v37  ;;  %v1000_v32 = vsel %vm5217_vm3, %v5082_v51, 0.0  ;;  %v1134_v1 = vadd.f32 %v1126_v13, %v1004_v3  ;;  %v1129_v7 = vsel %vm5121_vm6, %v5076_v47, 0.0  ;;  %4240 = vmatpush3.bf16.msra.mxu1 %v4447_v34 }
 0x118   : > { %v5246_v59 = vpop.f32.mrf.mxu1  ;;  %v1005_v8 = vadd.f32 %v997_v28, %v848_v23  ;;  %v1001_v36 = vsel %vm5221_vm1, %v5090_v58, 0.0  ;;  %v854_v51 = vadd.f32 %v5060_v38, %v702_v27  ;;  %v852_v24 = vadd.f32 %v5064_v40, %v700_v41  ;;  %v4448_v58 = vld [vmem:[%s6301_s5] sm:$0xff]  }
 0x119   : > { %v5248_v46 = vpop.f32.mrf.mxu0  ;;  %v1127_v3 = vsel %vm5133_vm7, %v5080_v49, 0.0  ;;  %v1002_v47 = vsel %vm5200_vm2, %v5078_v48, 0.0  ;;  %v1136_v15 = vadd.f32 %v1128_v44, %v1006_v22  ;;  %v1008_v26 = vadd.f32 %v1000_v32, %v851_v17  ;;  %4241 = vmatprep.subr.bf16.mxu1 %v4448_v58 }
 0x11a   : > { %v5266_v42 = vpop.f32.mrf.mxu1  ;;  %v1003_v38 = vsel %vm5242_vm0, %v5086_v55, 0.0  ;;  %v1285_v40 = vadd.f32 %v5098_v5, %v1134_v1  ;;  %v1137_v35 = vadd.f32 %v1129_v7, %v1007_v45  ;;  %v1130_v48 = vsel %vm5151_vm9, %v5088_v56, 0.0  ;;  %v6384_v7 = vld [vmem:[#allocation9_spill] sm:$0xff] }
 0x11b   : > { %v5268_v6 = vpop.f32.mrf.mxu0  ;;  %v1009_v37 = vadd.f32 %v1001_v36, %v852_v24  ;;  %v1417_v11 = vsel %vm5159_vm11, %v5110_v57, 0.0  ;;  %v1135_v27 = vadd.f32 %v1127_v3, %v1005_v8  ;;  %v1010_v55 = vadd.f32 %v1002_v47, %v853_v31  ;;  %4242 = vmatpush3.bf16.msra.mxu1 %v4448_v58  ;;  %v6385_v36 = vld [vmem:[#allocation10_spill] sm:$0xff] }
 0x11c   : > { %v5285_v41 = vpop.f32.mrf.mxu1  ;;  %v1131_v5 = vsel %vm5173_vm12, %v5096_v4, 0.0  ;;  %v1287_v13 = vadd.f32 %v5094_v62, %v1136_v15  ;;  %v1132_v56 = vsel %vm5137_vm8, %v5084_v53, 0.0  ;;  %v1011_v22 = vadd.f32 %v1003_v38, %v854_v51 }
 0x11d   : > { %v5287_v49 = vpop.f32.mrf.mxu0  ;;  %v1419_v57 = vsel %vm5177_vm13, %v5102_v10, 0.0  ;;  %v1535_v31 = vsel %vm5106_vm4, %v5232_v39, 0.0  ;;  %v1138_v17 = vadd.f32 %v1130_v48, %v1008_v26  ;;  %v1133_v62 = vsel %vm5155_vm10, %v5092_v61, 0.0  ;;  %v4449_v10 = vld [vmem:[%s6301_s5 + $0x18] sm:$0xff]   ;;  %v6383_v61 = vld [vmem:[#allocation18_spill] sm:$0xff] }
 0x11e   : > { %v5299_v28 = vpop.f32.mrf.mxu1  ;;  %v1425_v4 = vadd.f32 %v1417_v11, %v1285_v40  ;;  %v1288_v44 = vadd.f32 %v5104_v12, %v1137_v35  ;;  %v1139_v32 = vadd.f32 %v1131_v5, %v1009_v37  ;;  %v1420_v39 = vsel %vm5184_vm14, %v5126_v20, 0.0  ;;  %4251 = vmatprep.subr.bf16.mxu0 %v4449_v10  ;;  %v6386_v20 = vld [vmem:[#allocation15_spill] sm:$0xff]  ;;  %v6387_v40 = vld [vmem:[#allocation16_spill] sm:$0xff] }
 0x11f   : > { %v1520_v23 = vpop.f32.mrf.mxu0  ;;  %v1286_v34 = vadd.f32 %v5112_v16, %v1135_v27  ;;  %v1537_v12 = vsel %vm5114_vm5, %v6383_v61, 0.0  ;;  %v1427_v1 = vadd.f32 %v1419_v57, %v1287_v13  ;;  %v1418_v8 = vsel %vm5196_vm15, %v6384_v7, 0.0  ;;  %4252 = vmatpush3.bf16.msra.mxu0 %v4449_v10  ;;  %v6388_v5 = vld [vmem:[#allocation8_spill] sm:$0xff]  ;;  %v5354_v57 = vld [vmem:[%s6301_s5 + $0x28] sm:$0xff]   ;;  %v6391_v7 = vld [vmem:[#allocation17_spill] sm:$0xff] }
 0x120   : > { %v5314_v45 = vpop.f32.mrf.mxu1  ;;  %v1289_v51 = vadd.f32 %v6385_v36, %v1138_v17  ;;  %v1543_v24 = vadd.f32 %v1535_v31, %v1425_v4  ;;  %v1140_v58 = vadd.f32 %v1132_v56, %v1010_v55  ;;  %v1141_v15 = vadd.f32 %v1133_v62, %v1011_v22  ;;  %v6389_v56 = vld [vmem:[#allocation11_spill] sm:$0xff]  ;;  %4263 = vmatprep.subr.bf16.mxu1 %v5354_v57 }
 0x121   : > { %v5316_v53 = vpop.f32.mrf.mxu0  ;;  %v1421_v16 = vsel %vm5217_vm3, %v6386_v20, 0.0  ;;  %v1538_v26 = vsel %vm5121_vm6, %v5248_v46, 0.0  ;;  %v1428_v38 = vadd.f32 %v1420_v39, %v1288_v44  ;;  %v1290_v35 = vadd.f32 %v6387_v40, %v1139_v32 }
 0x122   : > { %v1653_v3 = vpop.f32.mrf.mxu1  ;;  %v1545_v48 = vadd.f32 %v1537_v12, %v1427_v1  ;;  %v1536_v37 = vsel %vm5133_vm7, %v5268_v6, 0.0  ;;  %v1426_v55 = vadd.f32 %v1418_v8, %v1286_v34  ;;  %v1291_v13 = vadd.f32 %v6388_v5, %v1140_v58  ;;  %v6390_v34 = vld [vmem:[#allocation12_spill] sm:$0xff] }
 0x123   : > { %v1523_v47 = vpop.f32.mrf.mxu0  ;;  %v1423_v22 = vsel %vm5200_vm2, %v6389_v56, 0.0  ;;  %v1422_v46 = vsel %vm5221_vm1, %v5230_v60, 0.0  ;;  %v1429_v6 = vadd.f32 %v1421_v16, %v1289_v51  ;;  %v1668_v31 = vadd.f32 %v5266_v42, %v1543_v24 }
 0x124   : > { %v5342_v11 = vpop.f32.mrf.mxu1  ;;  %v1546_v17 = vadd.f32 %v1538_v26, %v1428_v38  ;;  %v1539_v62 = vsel %vm5151_vm9, %v1520_v23, 0.0  ;;  %v1544_v10 = vadd.f32 %v1536_v37, %v1426_v55  ;;  %v1540_v32 = vsel %vm5173_vm12, %v1523_v47, 0.0  ;;  %v4451_v47 = vld [vmem:[%s6301_s5 + $0x10] sm:$0xff]  }
 0x125   : > { %v4233_v27 = vpop.f32.mrf.mxu0  ;;  %v1292_v42 = vadd.f32 %v6390_v34, %v1141_v15  ;;  %v1430_v61 = vadd.f32 %v1422_v46, %v1290_v35  ;;  %v1670_v12 = vadd.f32 %v5246_v59, %v1545_v48  ;;  %v1424_v8 = vsel %vm5242_vm0, %v6391_v7, 0.0  ;;  %4253 = vmatprep.subr.bf16.mxu0 %v4451_v47 }
 0x126   : > { %v1656_v4 = vpop.f32.mrf.mxu1  ;;  %v1788_v60 = vsel %vm5177_vm13, %v4233_v27, 0.0  ;;  %v1541_v36 = vsel %vm5137_vm8, %v5287_v49, 0.0  ;;  %v1547_v51 = vadd.f32 %v1539_v62, %v1429_v6  ;;  %v1431_v58 = vadd.f32 %v1423_v22, %v1291_v13  ;;  %4254 = vmatpush3.bf16.msra.mxu0 %v4451_v47 }
 0x127   : > { %v1755_v44 = vpop.f32.mrf.mxu0  ;;  %v1548_v15 = vadd.f32 %v1540_v32, %v1430_v61  ;;  %v5379_v59 = vadd.f32 %v1788_v60, %v1670_v12  ;;  %v1671_v38 = vadd.f32 %v5285_v41, %v1546_v17  ;;  %v1669_v49 = vadd.f32 %v5299_v28, %v1544_v10 }
 0x128   : > { %v1786_v39 = vsel %vm5159_vm11, %v1755_v44, 0.0  ;;  %v4237_v23 = vpop.f32.mrf.mxu1  ;;  %v1542_v40 = vsel %vm5155_vm10, %v5316_v53, 0.0  ;;  %v1432_v48 = vadd.f32 %v1424_v8, %v1292_v42  ;;  %v1549_v37 = vadd.f32 %v1541_v36, %v1431_v58 }
 0x129   : > { %v4234_v1 = vpop.f32.mrf.mxu0  ;;  %v5374_v24 = vadd.f32 %v1786_v39, %v1668_v31  ;;  %vm6316_vm11 = vcmask 261120   ;;  %v1672_v5 = vadd.f32 %v1653_v3, %v1547_v51  ;;  %v1673_v56 = vadd.f32 %v1656_v4, %v1548_v15 }
 0x12a   : > { %v1771_v20 = vpop.f32.mrf.mxu1  ;;  %v1789_v16 = vsel %vm5184_vm14, %v4234_v1, 0.0  ;;  %v1550_v53 = vadd.f32 %v1542_v40, %v1432_v48  ;;  %v1828_v22 = vmul.f32 %v5379_v59, %v5379_v59  ;;  %v1674_v4 = vadd.f32 %v5314_v45, %v1549_v37 }
 0x12b   : > { %v1758_v26 = vpop.f32.mrf.mxu0  ;;  %v1790_v27 = vsel %vm5217_vm3, %v1771_v20, 0.0  ;;  %v1826_v41 = vmul.f32 %v5374_v24, %v5374_v24  ;;  %v5394_v28 = vadd.f32 %v1789_v16, %v1671_v38  ;;  %v1805_v46 = vsel %vm6316_vm11, %v5374_v24, 0.0 }
 0x12c   : > { %v1787_v35 = vsel %vm5196_vm15, %v1758_v26, 0.0  ;;  %v4238_v55 = vpop.f32.mrf.mxu1  ;;  %v5402_v31 = vadd.f32 %v1790_v27, %v1672_v5  ;;  %v1808_v44 = vsel %vm6316_vm11, %v5379_v59, 0.0  ;;  %v1792_v10 = vsel %vm5200_vm2, %v4237_v23, 0.0 }
 0x12d   : > { %v5396_v13 = vadd.f32 %v1787_v35, %v1669_v49  ;;  %v1834_v60 = vsel %vm6316_vm11, %v1826_v41, 0.0  ;;  %v1829_v39 = vmul.f32 %v5394_v28, %v5394_v28  ;;  %v1675_v61 = vadd.f32 %v5342_v11, %v1550_v53 }
 0x12e   : > { %v1774_v6 = vpop.f32.mrf.mxu1  ;;  %v1793_v45 = vsel %vm5242_vm0, %v4238_v55, 0.0  ;;  %v1837_v7 = vsel %vm6316_vm11, %v1828_v22, 0.0  ;;  %v5423_v8 = vadd.f32 %v1792_v10, %v1674_v4  ;;  %v1830_v23 = vmul.f32 %v5402_v31, %v5402_v31 }
 0x12f   : > { %v1806_v3 = vsel %vm6316_vm11, %v5396_v13, 0.0  ;;  %v1827_v17 = vmul.f32 %v5396_v13, %v5396_v13  ;;  %v1791_v62 = vsel %vm5221_vm1, %v1774_v6, 0.0  ;;  %v1810_v36 = vsel %vm6316_vm11, %v5394_v28, 0.0 }
 0x130   : > { %v1807_v32 = vadd.f32 %v1806_v3, %v1805_v46  ;;  %v1799_v42 = vadd.f32 %v1791_v62, %v1673_v56  ;;  %v1812_v11 = vsel %vm6316_vm11, %v5402_v31, 0.0  ;;  %v1839_v58 = vsel %vm6316_vm11, %v1829_v39, 0.0  ;;  %v5450_v62 = vld [vmem:[%s6301_s5 + $0x38] sm:$0xff]  }
 0x131   : > { %v1835_v34 = vsel %vm6316_vm11, %v1827_v17, 0.0  ;;  %v5432_v15 = vadd.f32 %v1793_v45, %v1675_v61  ;;  %v1832_v38 = vmul.f32 %v5423_v8, %v5423_v8  ;;  %v1841_v49 = vsel %vm6316_vm11, %v1830_v23, 0.0  ;;  %4275 = vmatprep.subr.bf16.mxu0 %v5450_v62 }
 0x132   : > { %v1809_v12 = vadd.f32 %v1808_v44, %v1807_v32  ;;  %v1836_v1 = vadd.f32 %v1835_v34, %v1834_v60  ;;  %v1831_v20 = vmul.f32 %v1799_v42, %v1799_v42  ;;  %v1814_v40 = vsel %vm6316_vm11, %v1799_v42, 0.0 }
 0x133   : > { %v1816_v37 = vsel %vm6316_vm11, %v5423_v8, 0.0  ;;  %v1833_v27 = vmul.f32 %v5432_v15, %v5432_v15  ;;  %v1845_v53 = vsel %vm6316_vm11, %v1832_v38, 0.0  ;;  %v1818_v56 = vsel %vm6316_vm11, %v5432_v15, 0.0 }
 0x134   : > { %v1838_v51 = vadd.f32 %v1837_v7, %v1836_v1  ;;  %v1811_v47 = vadd.f32 %v1810_v36, %v1809_v12  ;;  %v1843_v55 = vsel %vm6316_vm11, %v1831_v20, 0.0 }
 0x135   : > { %v1847_v6 = vsel %vm6316_vm11, %v1833_v27, 0.0 }
 0x136   : > { %v1813_v16 = vadd.f32 %v1812_v11, %v1811_v47  ;;  %v1840_v26 = vadd.f32 %v1839_v58, %v1838_v51 }
 0x138   : > { %v1815_v35 = vadd.f32 %v1814_v40, %v1813_v16  ;;  %v1842_v48 = vadd.f32 %v1841_v49, %v1840_v26  ;;  %v3858_v49 = vld [vmem:[%s6299_s3] ss:$0 sm:$0xff] }
 0x13a   : > { %v1817_v5 = vadd.f32 %v1816_v37, %v1815_v35  ;;  %v1844_v41 = vadd.f32 %v1843_v55, %v1842_v48 }
 0x13c   : > { %v1819_v22 = vadd.f32 %v1818_v56, %v1817_v5  ;;  %v1846_v46 = vadd.f32 %v1845_v53, %v1844_v41 }
 0x13e   : > { %v1820_v3 = vrot.slane %v1819_v22, 4  ;;  %v1848_v17 = vadd.f32 %v1847_v6, %v1846_v46 }
 0x140   : > { %v1821_v4 = vadd.f32 %v1820_v3, %v1819_v22  ;;  %v1849_v44 = vrot.slane %v1848_v17, 4 }
 0x142   : > { %v1822_v10 = vrot.slane %v1821_v4, 2  ;;  %v1850_v32 = vadd.f32 %v1849_v44, %v1848_v17 }
 0x144   : > { %v1823_v60 = vadd.f32 %v1822_v10, %v1821_v4  ;;  %v1851_v39 = vrot.slane %v1850_v32, 2 }
 0x146   : > { %v1824_v34 = vrot.slane %v1823_v60, 1  ;;  %v1852_v61 = vadd.f32 %v1851_v39, %v1850_v32 }
 0x148   : > { %v1825_v45 = vadd.f32 %v1824_v34, %v1823_v60  ;;  %v1853_v12 = vrot.slane %v1852_v61, 1 }
 0x14a   : > { %v1854_v1 = vadd.f32 %v1853_v12, %v1852_v61  ;;  %v1856_v7 = vmul.f32 0.015625, %v1825_v45 }
 0x14c   : > { %v1857_v23 = vmul.f32 0.015625, %v1854_v1  ;;  %v1858_v36 = vmul.f32 %v1856_v7, %v1856_v7  ;;  %v1868_v58 = vsub.f32 %v1799_v42, %v1856_v7  ;;  %v1863_v20 = vsub.f32 %v5374_v24, %v1856_v7  ;;  %v3859_v42 = vld [vmem:[%s6300_s4] ss:$0 sm:$0xff] }
 0x14d   : > { %v1864_v16 = vsub.f32 %v5396_v13, %v1856_v7  ;;  %v1865_v26 = vsub.f32 %v5379_v59, %v1856_v7  ;;  %v1866_v40 = vsub.f32 %v5394_v28, %v1856_v7  ;;  %v1867_v24 = vsub.f32 %v5402_v31, %v1856_v7 }
 0x14e   : > { %v1859_v51 = vsub.f32 %v1857_v23, %v1858_v36  ;;  %v1869_v56 = vsub.f32 %v5423_v8, %v1856_v7  ;;  %v1870_v61 = vsub.f32 %v5432_v15, %v1856_v7 }
 0x150   : > { %v1860_v47 = vmax.f32 %v1859_v51, 0.0 }
 0x152   : > { %v1861_v11 = vadd.f32 1e-05, %v1860_v47 }
 0x154   : > { %4467 = vrsqrt.f32 %v1861_v11 }
 0x161   : > { %v4468_v38 = vpop.eup %4467 }
 0x162   : > { %v1876_v35 = vmul.f32 %v4468_v38, %v1868_v58  ;;  %v1871_v48 = vmul.f32 %v4468_v38, %v1863_v20  ;;  %v1872_v37 = vmul.f32 %v4468_v38, %v1864_v16  ;;  %v1873_v27 = vmul.f32 %v4468_v38, %v1865_v26 }
 0x163   : > { %v1874_v13 = vmul.f32 %v4468_v38, %v1866_v40  ;;  %v1875_v53 = vmul.f32 %v4468_v38, %v1867_v24  ;;  %v1877_v4 = vmul.f32 %v4468_v38, %v1869_v56  ;;  %v1878_v11 = vmul.f32 %v4468_v38, %v1870_v61 }
 0x164   : > { %v1890_v55 = vmul.f32 %v3858_v49, %v1876_v35  ;;  %v1885_v59 = vmul.f32 %v3858_v49, %v1871_v48  ;;  %v1886_v5 = vmul.f32 %v3858_v49, %v1872_v37  ;;  %v1887_v41 = vmul.f32 %v3858_v49, %v1873_v27 }
 0x165   : > { %v1888_v31 = vmul.f32 %v3858_v49, %v1874_v13  ;;  %v1889_v8 = vmul.f32 %v3858_v49, %v1875_v53  ;;  %v1891_v23 = vmul.f32 %v3858_v49, %v1877_v4  ;;  %v1892_v35 = vmul.f32 %v3858_v49, %v1878_v11 }
 0x166   : > { %v1904_v22 = vadd.f32 %v3859_v42, %v1890_v55  ;;  %v5465_v28 = vadd.f32 %v3859_v42, %v1885_v59  ;;  %v5467_v46 = vadd.f32 %v3859_v42, %v1886_v5  ;;  %v5469_v6 = vadd.f32 %v3859_v42, %v1887_v41 }
 0x167   : > { %v5487_v1 = vadd.f32 %v3859_v42, %v1888_v31  ;;  %v5489_v47 = vadd.f32 %v3859_v42, %v1889_v8  ;;  %v5494_v40 = vadd.f32 %v3859_v42, %v1891_v23  ;;  %v5504_v13 = vadd.f32 %v3859_v42, %v1892_v35 }
 0x168   : > { %v5471_v3 = vmul.f32 0.70710677, %v1904_v22  ;;  %v5474_v17 = vmul.f32 0.70710677, %v5465_v28  ;;  %v5477_v44 = vmul.f32 0.70710677, %v5467_v46 }
 0x169   : > { %v5480_v10 = vmul.f32 0.70710677, %v5469_v6  ;;  %v5492_v26 = vmul.f32 0.70710677, %v5487_v1  ;;  %v5497_v7 = vmul.f32 0.70710677, %v5489_v47 }
 0x16a   : > { %v1920_v32 = vand.u32 2147483647, %v5471_v3  ;;  %v1915_v60 = vand.u32 2147483647, %v5474_v17  ;;  %v1916_v39 = vand.u32 2147483647, %v5477_v44 }
 0x16b   : > { %v1917_v34 = vand.u32 2147483647, %v5480_v10  ;;  %v1918_v48 = vand.u32 2147483647, %v5492_v26  ;;  %v1919_v37 = vand.u32 2147483647, %v5497_v7 }
 0x16c   : > { %v1928_v45 = vmul.f32 0.3275911, %v1920_v32  ;;  %v1923_v12 = vmul.f32 0.3275911, %v1915_v60  ;;  %v1924_v36 = vmul.f32 0.3275911, %v1916_v39 }
 0x16d   : > { %v1925_v51 = vmul.f32 0.3275911, %v1917_v34  ;;  %v1926_v38 = vmul.f32 0.3275911, %v1918_v48  ;;  %v5502_v27 = vmul.f32 0.70710677, %v5494_v40 }
 0x16e   : > { %v1936_v58 = vadd.f32 1.0, %v1928_v45  ;;  %v1931_v20 = vadd.f32 1.0, %v1923_v12  ;;  %v1932_v16 = vadd.f32 1.0, %v1924_v36  ;;  %v1927_v24 = vmul.f32 0.3275911, %v1919_v37 }
 0x16f   : > { %v1933_v15 = vadd.f32 1.0, %v1925_v51  ;;  %v2024_v55 = vsub.f32 0.0, %v1920_v32  ;;  %v1934_v59 = vadd.f32 1.0, %v1926_v38  ;;  %v1921_v5 = vand.u32 2147483647, %v5502_v27 }
 0x170   : > { %4469 = vrcp.f32 %v1936_v58  ;;  %v2019_v41 = vsub.f32 0.0, %v1915_v60  ;;  %v1935_v53 = vadd.f32 1.0, %v1927_v24  ;;  %v2020_v49 = vsub.f32 0.0, %v1916_v39 }
 0x171   : > { %4471 = vrcp.f32 %v1931_v20  ;;  %v1929_v56 = vmul.f32 0.3275911, %v1921_v5  ;;  %v2021_v31 = vsub.f32 0.0, %v1917_v34  ;;  %v5508_v4 = vmul.f32 0.70710677, %v5504_v13 }
 0x172   : > { %4473 = vrcp.f32 %v1932_v16  ;;  %v2032_v8 = vmul.f32 %v2024_v55, %v1920_v32  ;;  %v2027_v45 = vmul.f32 %v2019_v41, %v1915_v60  ;;  %v2028_v12 = vmul.f32 %v2020_v49, %v1916_v39 }
 0x173   : > { %4475 = vrcp.f32 %v1933_v15  ;;  %v1937_v61 = vadd.f32 1.0, %v1929_v56  ;;  %v5511_v42 = vand.u32 2147483647, %v5508_v4  ;;  %v2022_v23 = vsub.f32 0.0, %v1918_v48 }
 0x174   : > { %4477 = vrcp.f32 %v1934_v59  ;;  %v5515_v51 = vmul.f32 0.5, %v1904_v22  ;;  %v2029_v11 = vmul.f32 %v2021_v31, %v1917_v34  ;;  %v2023_v58 = vsub.f32 0.0, %v1919_v37 }
 0x175   : > { %4479 = vrcp.f32 %v1935_v53  ;;  %v1930_v20 = vmul.f32 0.3275911, %v5511_v42  ;;  %v2045_v15 = vmul.f32 1.442695, %v2032_v8  ;;  %v5522_v60 = vmul.f32 0.5, %v5465_v28 }
 0x176   : > { %4481 = vrcp.f32 %v1937_v61  ;;  %v2025_v35 = vsub.f32 0.0, %v1921_v5  ;;  %v2035_v38 = vmul.f32 1.442695, %v2027_v45  ;;  %v5526_v24 = vmul.f32 0.5, %v5467_v46 }
 0x177   : > { %v1938_v22 = vadd.f32 1.0, %v1930_v20  ;;  %v2037_v55 = vmul.f32 1.442695, %v2028_v12  ;;  %v5529_v59 = vmul.f32 0.5, %v5469_v6  ;;  %v2030_v41 = vmul.f32 %v2022_v23, %v1918_v48 }
 0x178   : > { %v2039_v56 = vmul.f32 1.442695, %v2029_v11  ;;  %v2031_v28 = vmul.f32 %v2023_v58, %v1919_v37  ;;  %v2033_v61 = vmul.f32 %v2025_v35, %v1921_v5  ;;  %v5540_v48 = vmul.f32 0.5, %v5487_v1 }
 0x179   : > { %4483 = vrcp.f32 %v1938_v22  ;;  %v2041_v37 = vmul.f32 1.442695, %v2030_v41  ;;  %vm6392_vm1 = vcmp.lt.f32.partialorder %v5474_v17, 0.0  ;;  %vm6393_vm0 = vcmp.lt.f32.partialorder %v5471_v3, 0.0 }
 0x17a   : > { %4485 = vpow2.f32 %v2045_v15  ;;  %v2047_v1 = vmul.f32 1.442695, %v2033_v61  ;;  %vm6395_vm11 = vcmp.lt.f32.partialorder %v5480_v10, 0.0 }
 0x17b   : > { %4487 = vpow2.f32 %v2035_v38 }
 0x17c   : > { %4489 = vpow2.f32 %v2037_v55  ;;  %v2026_v55 = vsub.f32 0.0, %v5511_v42 }
 0x17d   : > { %v5513_v36 = vpop.eup %4469  ;;  %4491 = vpow2.f32 %v2039_v56 }
 0x17e   : > { %v5518_v16 = vpop.eup %4471  ;;  %v1952_v32 = vmul.f32 1.0614054, %v5513_v36  ;;  %4493 = vpow2.f32 %v2041_v37 }
 0x17f   : > { %v1947_v39 = vmul.f32 1.0614054, %v5518_v16  ;;  %v5531_v53 = vpop.eup %4473 }
 0x180   : > { %v1960_v34 = vadd.f32 -1.4531521, %v1952_v32  ;;  %v5533_v31 = vpop.eup %4475  ;;  %v1948_v46 = vmul.f32 1.0614054, %v5531_v53  ;;  %v2043_v32 = vmul.f32 1.442695, %v2031_v28 }
 0x181   : > { %v1955_v49 = vadd.f32 -1.4531521, %v1947_v39  ;;  %v1949_v6 = vmul.f32 1.0614054, %v5533_v31  ;;  %v5542_v11 = vpop.eup %4477 }
 0x182   : > { %v1968_v8 = vmul.f32 %v5513_v36, %v1960_v34  ;;  %v1956_v23 = vadd.f32 -1.4531521, %v1948_v46  ;;  %v5544_v15 = vpop.eup %4479  ;;  %v1950_v39 = vmul.f32 1.0614054, %v5542_v11  ;;  %4495 = vpow2.f32 %v2043_v32 }
 0x183   : > { %v1963_v45 = vmul.f32 %v5518_v16, %v1955_v49  ;;  %v1957_v20 = vadd.f32 -1.4531521, %v1949_v6  ;;  %v1951_v34 = vmul.f32 1.0614054, %v5544_v15  ;;  %v5553_v28 = vpop.eup %4481  ;;  %4497 = vpow2.f32 %v2047_v1 }
 0x184   : > { %v1976_v12 = vadd.f32 1.4214138, %v1968_v8  ;;  %v1964_v35 = vmul.f32 %v5531_v53, %v1956_v23  ;;  %v1958_v56 = vadd.f32 -1.4531521, %v1950_v39  ;;  %v1953_v23 = vmul.f32 1.0614054, %v5553_v28 }
 0x185   : > { %v1971_v58 = vadd.f32 1.4214138, %v1963_v45  ;;  %v1965_v22 = vmul.f32 %v5533_v31, %v1957_v20  ;;  %v1959_v45 = vadd.f32 -1.4531521, %v1951_v34 }
 0x186   : > { %v1984_v5 = vmul.f32 %v5513_v36, %v1976_v12  ;;  %v1972_v49 = vadd.f32 1.4214138, %v1964_v35  ;;  %v1966_v12 = vmul.f32 %v5542_v11, %v1958_v56  ;;  %v1961_v32 = vadd.f32 -1.4531521, %v1953_v23 }
 0x187   : > { %v1979_v38 = vmul.f32 %v5518_v16, %v1971_v58  ;;  %v1973_v46 = vadd.f32 1.4214138, %v1965_v22 }
 0x188   : > { %v1992_v41 = vadd.f32 -0.28449672, %v1984_v5  ;;  %v1980_v61 = vmul.f32 %v5531_v53, %v1972_v49  ;;  %v1967_v5 = vmul.f32 %v5544_v15, %v1959_v45  ;;  %v5563_v49 = vpop.eup %4483 }
 0x189   : > { %v1987_v8 = vadd.f32 -0.28449672, %v1979_v38  ;;  %v1981_v20 = vmul.f32 %v5533_v31, %v1973_v46  ;;  %v1974_v38 = vadd.f32 1.4214138, %v1966_v12  ;;  %v4486_v45 = vpop.eup %4485 }
 0x18a   : > { %v2000_v6 = vmul.f32 %v5513_v36, %v1992_v41  ;;  %v1988_v39 = vadd.f32 -0.28449672, %v1980_v61  ;;  %v1975_v34 = vadd.f32 1.4214138, %v1967_v5  ;;  %v2034_v41 = vmul.f32 %v2026_v55, %v5511_v42  ;;  %v4488_v55 = vpop.eup %4487 }
 0x18b   : > { %v1995_v58 = vmul.f32 %v5518_v16, %v1987_v8  ;;  %v1989_v22 = vadd.f32 -0.28449672, %v1981_v20  ;;  %v1982_v46 = vmul.f32 %v5542_v11, %v1974_v38  ;;  %v1954_v42 = vmul.f32 1.0614054, %v5563_v49  ;;  %v4490_v5 = vpop.eup %4489 }
 0x18c   : > { %v2008_v35 = vadd.f32 0.2548296, %v2000_v6  ;;  %v1996_v8 = vmul.f32 %v5531_v53, %v1988_v39  ;;  %v1983_v61 = vmul.f32 %v5544_v15, %v1975_v34  ;;  %v1969_v20 = vmul.f32 %v5553_v28, %v1961_v32  ;;  %v4492_v38 = vpop.eup %4491 }
 0x18d   : > { %v2003_v37 = vadd.f32 0.2548296, %v1995_v58  ;;  %v1997_v1 = vmul.f32 %v5533_v31, %v1989_v22  ;;  %v1990_v58 = vadd.f32 -0.28449672, %v1982_v46  ;;  %v1962_v39 = vadd.f32 -1.4531521, %v1954_v42 }
 0x18e   : > { %v2016_v56 = vmul.f32 %v5513_v36, %v2008_v35  ;;  %v2004_v36 = vadd.f32 0.2548296, %v1996_v8 }
 0x18f   : > { %v2011_v6 = vmul.f32 %v5518_v16, %v2003_v37  ;;  %v2005_v23 = vadd.f32 0.2548296, %v1997_v1  ;;  %v1991_v16 = vadd.f32 -0.28449672, %v1983_v61  ;;  %v1998_v34 = vmul.f32 %v5542_v11, %v1990_v58  ;;  %v4494_v58 = vpop.eup %4493 }
 0x190   : > { %v2056_v12 = vmul.f32 %v4486_v45, %v2016_v56  ;;  %v2012_v22 = vmul.f32 %v5531_v53, %v2004_v36  ;;  %v1977_v56 = vadd.f32 1.4214138, %v1969_v20  ;;  %v1970_v45 = vmul.f32 %v5563_v49, %v1962_v39 }
 0x191   : > { %v2051_v35 = vmul.f32 %v4488_v55, %v2011_v6  ;;  %v2013_v46 = vmul.f32 %v5533_v31, %v2005_v23  ;;  %v1999_v32 = vmul.f32 %v5544_v15, %v1991_v16  ;;  %v2006_v61 = vadd.f32 0.2548296, %v1998_v34 }
 0x192   : > { %v2064_v37 = vsub.f32 1.0, %v2056_v12  ;;  %v2052_v1 = vmul.f32 %v4490_v5, %v2012_v22  ;;  %v1985_v42 = vmul.f32 %v5553_v28, %v1977_v56  ;;  %v1978_v36 = vadd.f32 1.4214138, %v1970_v45  ;;  %v4496_v22 = vpop.eup %4495 }
 0x193   : > { %v2059_v8 = vsub.f32 1.0, %v2051_v35  ;;  %v2053_v12 = vmul.f32 %v4492_v38, %v2013_v46  ;;  %v2007_v53 = vadd.f32 0.2548296, %v1999_v32  ;;  %v2014_v35 = vmul.f32 %v5542_v11, %v2006_v61  ;;  %v4498_v45 = vpop.eup %4497 }
 0x194   : > { %v2080_v6 = vsub.f32 0.0, %v2064_v37  ;;  %v2060_v20 = vsub.f32 1.0, %v2052_v1  ;;  %v2095_v31 = vmul.f32 0.5, %v5489_v47  ;;  %v1993_v23 = vadd.f32 -0.28449672, %v1985_v42 }
 0x195   : > { %v2075_v55 = vsub.f32 0.0, %v2059_v8  ;;  %v2061_v16 = vsub.f32 1.0, %v2053_v12  ;;  %v2015_v39 = vmul.f32 %v5544_v15, %v2007_v53  ;;  %v2049_v38 = vmul.f32 1.442695, %v2034_v41 }
 0x196   : > { %v2076_v56 = vsub.f32 0.0, %v2060_v20  ;;  %v2054_v46 = vmul.f32 %v4494_v58, %v2014_v35  ;;  %v2001_v32 = vmul.f32 %v5553_v28, %v1993_v23  ;;  %v2088_v11 = vsel %vm6393_vm0, %v2080_v6, %v2064_v37 }
 0x197   : > { %v2083_v5 = vsel %vm6392_vm1, %v2075_v55, %v2059_v8  ;;  %v2077_v1 = vsub.f32 0.0, %v2061_v16  ;;  %v2055_v47 = vmul.f32 %v4496_v22, %v2015_v39  ;;  %v1986_v61 = vmul.f32 %v5563_v49, %v1978_v36 }
 0x198   : > { %v2099_v34 = vadd.f32 1.0, %v2083_v5  ;;  %vm6394_vm1 = vcmp.lt.f32.partialorder %v5477_v44, 0.0  ;;  %v2062_v41 = vsub.f32 1.0, %v2054_v46  ;;  %v2009_v8 = vadd.f32 0.2548296, %v2001_v32 }
 0x199   : > { %v2084_v15 = vsel %vm6394_vm1, %v2076_v56, %v2060_v20  ;;  %v2085_v42 = vsel %vm6395_vm11, %v2077_v1, %v2061_v16  ;;  %v2063_v12 = vsub.f32 1.0, %v2055_v47  ;;  %4499 = vpow2.f32 %v2049_v38 }
 0x19a   : > { %v2107_v17 = vmul.f32 %v2099_v34, %v5522_v60  ;;  %v2100_v55 = vadd.f32 1.0, %v2084_v15  ;;  %v2101_v37 = vadd.f32 1.0, %v2085_v42  ;;  %v2078_v6 = vsub.f32 0.0, %v2062_v41 }
 0x19b   : > { %v2017_v53 = vmul.f32 %v5553_v28, %v2009_v8  ;;  %v2104_v36 = vadd.f32 1.0, %v2088_v11  ;;  %v2079_v44 = vsub.f32 0.0, %v2063_v12  ;;  %v1994_v58 = vadd.f32 -0.28449672, %v1986_v61 }
 0x19c   : > { %v2124_v3 = vrot.slane %v2107_v17, 7  ;;  %v2108_v60 = vmul.f32 %v2100_v55, %v5526_v24  ;;  %vm6396_vm0 = vcmask 1040384   ;;  %v2109_v10 = vmul.f32 %v2101_v37, %v5529_v59  ;;  %v4452_v17 = vld [vmem:[%s6301_s5 + $0x20] sm:$0xff]  }
 0x19d   : > { %vm6397_vm11 = vcmp.lt.f32.partialorder %v5492_v26, 0.0  ;;  %v2057_v23 = vmul.f32 %v4498_v45, %v2017_v53  ;;  %v6398_v5 = vmov 0.0   ;;  %vm6399_vm1 = vcmp.lt.f32.partialorder %v5497_v7, 0.0 }
 0x19e   : > { %v5603_v20 = vsel %vm6396_vm0, 0.0, %v2124_v3  ;;  %v2086_v35 = vsel %vm6397_vm11, %v2078_v6, %v2062_v41  ;;  %v2125_v39 = vrot.slane %v2108_v60, 7  ;;  %v2087_v28 = vsel %vm6399_vm1, %v2079_v44, %v2063_v12  ;;  %v4454_v60 = vld [vmem:[%s6301_s5 + $0x48] sm:$0xff]  }
 0x19f   : > { %v5610_v16 = vpack.c.bf16 %v5603_v20, %v6398_v5  ;;  %v2102_v24 = vadd.f32 1.0, %v2086_v35  ;;  %v2127_v38 = vrot.slane %v2109_v10, 7  ;;  %v2103_v22 = vadd.f32 1.0, %v2087_v28 }
 0x1a0   : > { %v2065_v34 = vsub.f32 1.0, %v2057_v23  ;;  %v2002_v56 = vmul.f32 %v5563_v49, %v1994_v58  ;;  %v2112_v59 = vmul.f32 %v2104_v36, %v5515_v51  ;;  %vm6400_vm0 = vcmask 261120  }
 0x1a1   : > { %4243 = vmatprep.mubr.msk.bf16.mxu1 %vm6400_vm0, %v5610_v16  ;;  %vm6401_vm11 = vcmask 1040384   ;;  %v2110_v46 = vmul.f32 %v2102_v24, %v5540_v48  ;;  %v2277_v32 = vshll.u32 %v5610_v16, 16  ;;  %v2111_v45 = vmul.f32 %v2103_v22, %v2095_v31  ;;  %v4455_v22 = vld [vmem:[%s6301_s5 + $0x30] sm:$0xff]  }
 0x1a2   : > { %v2126_v26 = vsel %vm6401_vm11, %v2124_v3, %v2125_v39  ;;  %vm6402_vm3 = vmmov %vm6401_vm11  ;;  %v2275_v11 = vshrl.u32 %v5610_v16, 16  ;;  %v2081_v1 = vsub.f32 0.0, %v2065_v34  ;;  %v2010_v15 = vadd.f32 0.2548296, %v2002_v56 }
 0x1a3   : > { %v5622_v7 = vsel %vm6402_vm3, %v2125_v39, %v2127_v38  ;;  %v2129_v51 = vrot.slane %v2110_v46, 7  ;;  %v2279_v61 = vrot.slane %v2277_v32, 1  ;;  %v2131_v48 = vrot.slane %v2111_v45, 7  ;;  %vm6404_vm3 = vmmov %vm6400_vm0 }
 0x1a4   : > { %v5626_v47 = vpack.c.bf16 %v5622_v7, %v2126_v26  ;;  %vm6403_vm1 = vcmp.lt.f32.partialorder %v5502_v27, 0.0  ;;  %vm6405_vm0 = vmmov %vm6401_vm11  ;;  %v2133_v55 = vrot.slane %v2112_v59, 7  ;;  %v2097_v3 = vmul.f32 0.5, %v5494_v40 }
 0x1a5   : > { %v2089_v41 = vsel %vm6403_vm1, %v2081_v1, %v2065_v34  ;;  %v2130_v31 = vsel %vm6405_vm0, %v2127_v38, %v2129_v51  ;;  %v2280_v8 = vor.u32 %v2279_v61, %v2275_v11  ;;  %vm6406_vm11 = vmmov %vm6405_vm0  ;;  %v2018_v36 = vmul.f32 %v5563_v49, %v2010_v15 }
 0x1a6   : > { %4244 = vmatmul.mubr.msk.bf16.vlgmr.msra.gmra.mxu1 %vm6404_vm3, %v5626_v47  ;;  %v2281_v42 = vshll.u32 %v5626_v47, 16  ;;  %v5638_v12 = vsel %vm6406_vm11, %v2129_v51, %v2131_v48  ;;  %v2105_v37 = vadd.f32 1.0, %v2089_v41  ;;  %v2285_v53 = vshrl.u32 %v5626_v47, 16  ;;  %v4500_v44 = vpop.eup %4499  ;;  %vm6407_vm1 = vmmov %vm6404_vm3 }
 0x1a7   : > { %4264 = vmatpush3.bf16.msra.mxu1 %v5354_v57  ;;  %v5643_v27 = vpack.c.bf16 %v5638_v12, %v2130_v31  ;;  %vm6408_vm3 = vsmask.f32 7424  ;;  %vm6409_vm0 = vmmov %vm6407_vm1  ;;  %v2134_v35 = vsel %vm6406_vm11, %v2131_v48, %v2133_v55  ;;  %v2058_v49 = vmul.f32 %v4500_v44, %v2018_v36  ;;  %v4458_v44 = vld [vmem:[%s6301_s5 + $0x68] sm:$0xff]  }
 0x1a8   : > { %v2283_v6 = vrot.slane %v2281_v42, 1  ;;  %4265 = vmatprep.subr.bf16.mxu1 %v4452_v17  ;;  %v2113_v58 = vmul.f32 %v2105_v37, %v2097_v3  ;;  %v2414_v39 = vrot.slane %v5610_v16, 1  ;;  %v2415_v28 = vrot.slane %v5626_v47, 1  ;;  %vm6410_vm2 = vmmov %vm6406_vm11 }
 0x1a9   : > { %4247 = vmatprep.mubr.msk.bf16.mxu1 %vm6407_vm1, %v5643_v27  ;;  %v2288_v10 = vshll.u32 %v5643_v27, 16  ;;  %v2066_v38 = vsub.f32 1.0, %v2058_v49  ;;  %vm6411_vm1 = vmmov %vm6408_vm3  ;;  %v2292_v59 = vshrl.u32 %v5643_v27, 16  ;;  %vm6414_vm11 = vcmask 1046528  }
 0x1aa   : > { %v2284_v57 = vsel %vm6408_vm3, %v2280_v8, %v2283_v6  ;;  %v2287_v40 = vor.u32 %v2285_v53, %v2283_v6  ;;  %v2135_v23 = vrot.slane %v2113_v58, 7  ;;  %vm6412_vm3 = vmmov %vm6409_vm0  ;;  %v2416_v45 = vsel %vm6414_vm11, %v2414_v39, %v2415_v28  ;;  %v4456_v8 = vld [vmem:[%s6301_s5 + $0x40] sm:$0xff]  }
 0x1ab   : > { %4255 = vmatprep.mubr.msk.bf16.mxu0 %vm6409_vm0, %v2284_v57  ;;  %4266 = vmatpush3.bf16.msra.mxu1 %v4452_v17  ;;  %v2290_v5 = vrot.slane %v2288_v10, 1  ;;  %vm2074_vm0 = vcmp.lt.f32.partialorder %v5508_v4, 0.0  ;;  %v2082_v16 = vsub.f32 0.0, %v2066_v38  ;;  %v5677_v11 = vpack.c.bf16 %v2126_v26, %v5603_v20  ;;  %v4457_v4 = vld [vmem:[%s6301_s5 + $0x58] sm:$0xff]  }
 0x1ac   : > { %4287 = vmatprep.subr.bf16.mxu1 %v4454_v60  ;;  %v2136_v24 = vsel %vm6410_vm2, %v2133_v55, %v2135_v23  ;;  %vm6413_vm2 = vmmov %vm6412_vm3  ;;  %v2098_v61 = vmul.f32 0.5, %v5504_v13  ;;  %v2417_v15 = vrot.slane %v5643_v27, 1  ;;  %v5695_v41 = vpack.c.bf16 %v2130_v31, %v5622_v7 }
 0x1ad   : > { %v5663_v34 = vsel %vm6411_vm1, %v2287_v40, %v2290_v5  ;;  %v5665_v56 = vpack.c.bf16 %v2136_v24, %v2134_v35  ;;  %v2294_v46 = vor.u32 %v2292_v59, %v2290_v5  ;;  %vm6415_vm1 = vmmov %vm6413_vm2  ;;  %v2090_v1 = vsel %vm2074_vm0, %v2082_v16, %v2066_v38 }
 0x1ae   : > { %4256 = vmatmul.mubr.msk.bf16.vlgmr.msra.gmra.mxu0 %vm6412_vm3, %v5663_v34  ;;  %v2106_v17 = vadd.f32 1.0, %v2090_v1  ;;  %vm6416_vm3 = vsmask.f32 7424  ;;  %v2650_v26 = vshll.u32 %v5677_v11, 16  ;;  %vm6417_vm0 = vmmov %vm6415_vm1  ;;  %v5718_v6 = vpack.c.bf16 %v2134_v35, %v5638_v12 }
 0x1af   : > { %4248 = vmatmul.mubr.msk.bf16.gmra.mxu1 %vm6413_vm2, %v5665_v56  ;;  %v2295_v32 = vshll.u32 %v5665_v56, 16  ;;  %4276 = vmatpush3.bf16.msra.mxu0 %v5450_v62  ;;  %v5689_v20 = vrot.slane %v5665_v56, 1  ;;  %vm6418_vm2 = vmmov %vm6414_vm11  ;;  %vm6419_vm11 = vcmask 1040384   ;;  %v2299_v37 = vshrl.u32 %v5665_v56, 16 }
 0x1b0   : > { %4267 = vmatprep.mubr.msk.bf16.mxu1 %vm6415_vm1, %v2416_v45  ;;  %4277 = vmatprep.subr.bf16.mxu0 %v4455_v22  ;;  %v2114_v62 = vmul.f32 %v2106_v17, %v2098_v61  ;;  %v5701_v42 = vsel %vm6418_vm2, %v2415_v28, %v2417_v15  ;;  %vm6420_vm1 = vmmov %vm6417_vm0  ;;  %v2652_v7 = vrot.slane %v2650_v26, 1  ;;  %v2648_v53 = vshrl.u32 %v5677_v11, 16  ;;  %v4460_v61 = vld [vmem:[%s6301_s5 + $0x60] sm:$0xff]   ;;  %v4461_v26 = vld [vmem:[%s6301_s5 + $0x78] sm:$0xff]  }
 0x1b1   : > { %v2297_v51 = vrot.slane %v2295_v32, 1  ;;  %v2654_v36 = vshll.u32 %v5695_v41, 16  ;;  %v2658_v28 = vshrl.u32 %v5695_v41, 16 }
 0x1b2   : > { %v2137_v13 = vrot.slane %v2114_v62, 7  ;;  %v2653_v10 = vor.u32 %v2652_v7, %v2648_v53  ;;  %v2788_v7 = vrot.slane %v5695_v41, 1 }
 0x1b3   : > { %v5686_v48 = vsel %vm6416_vm3, %v2294_v46, %v2297_v51  ;;  %4278 = vmatpush3.bf16.msra.mxu0 %v4455_v22  ;;  %vm6421_vm3 = vmmov %vm6418_vm2  ;;  %v5725_v58 = vor.u32 %v2299_v37, %v2297_v51  ;;  %v2656_v12 = vrot.slane %v2654_v36, 1  ;;  %vm6422_vm2 = vsmask.f32 7424  ;;  %v4459_v51 = vld [vmem:[%s6301_s5 + $0x50] sm:$0xff]  }
 0x1b4   : > { %4259 = vmatprep.mubr.msk.bf16.mxu0 %vm6417_vm0, %v5686_v48  ;;  %4299 = vmatprep.subr.bf16.mxu0 %v4457_v4  ;;  %v5704_v55 = vsel %vm6419_vm11, %v2135_v23, %v2137_v13  ;;  %v5710_v3 = vsel %vm6421_vm3, %v2417_v15, %v5689_v20  ;;  %vm6423_vm11 = vmmov %vm6421_vm3 }
 0x1b5   : > { %v2269_v31 = vpack.c.bf16 %v5704_v55, %v5704_v55  ;;  %v5733_v5 = vpack.c.bf16 %v5704_v55, %v2136_v24  ;;  %vm6425_vm3 = vmmov %vm6417_vm0  ;;  %v2660_v59 = vor.u32 %v2658_v28, %v2656_v12  ;;  %v2665_v24 = vshrl.u32 %v5718_v6, 16 }
 0x1b7   : > { %4268 = vmatmul.mubr.msk.bf16.vlgmr.msra.gmra.mxu1 %vm6420_vm1, %v5701_v42  ;;  %v2303_v57 = vshll.u32 %v2269_v31, 16  ;;  %v2421_v40 = vrot.slane %v2269_v31, 1  ;;  %vm6424_vm1 = vmmov %vm6417_vm0  ;;  %v2668_v16 = vshll.u32 %v5733_v5, 16  ;;  %v2672_v15 = vshrl.u32 %v5733_v5, 16 }
 0x1b8   : > { %4271 = vmatprep.mubr.msk.bf16.mxu1 %vm6417_vm0, %v5710_v3  ;;  %4288 = vmatpush3.bf16.msra.mxu1 %v4454_v60  ;;  %v2661_v60 = vshll.u32 %v5718_v6, 16  ;;  %vm6426_vm0 = vmmov %vm6422_vm2 }
 0x1b9   : > { %4289 = vmatprep.subr.bf16.mxu1 %v4456_v8  ;;  %v2305_v23 = vrot.slane %v2303_v57, 1  ;;  %v2422_v49 = vsel %vm6423_vm11, %v5689_v20, %v2421_v40  ;;  %v2657_v39 = vsel %vm6426_vm0, %v2653_v10, %v2656_v12  ;;  %vm6427_vm15 = vmmov %vm6424_vm1  ;;  %v2670_v1 = vrot.slane %v2668_v16, 1  ;;  %v4464_v57 = vld [vmem:[%s6301_s5 + $0x80] sm:$0xff]   ;;  %v4465_v16 = vld [vmem:[%s6305_s9 + $0x8] sm:$0xff]  }
 0x1ba   : > { %vm6428_vm14 = vmmov %vm6424_vm1  ;;  %v2663_v38 = vrot.slane %v2661_v60, 1  ;;  %v6456_v12 = vld [vmem:[#allocation6_spill] sm:$0xff] }
 0x1bb   : > { %v2306_v35 = vsel %vm6422_vm2, %v5725_v58, %v2305_v23  ;;  %vm6429_vm2 = vcmask 1040384   ;;  %vm6430_vm11 = vmmov %vm6426_vm0 }
 0x1bc   : > { %4290 = vmatpush3.bf16.msra.mxu1 %v4456_v8  ;;  %4260 = vmatmul.mubr.msk.bf16.gmra.mxu0 %vm6424_vm1, %v2306_v35  ;;  %v2149_v22 = vsel %vm6429_vm2, %v2137_v13, 0.0  ;;  %v2667_v46 = vor.u32 %v2665_v24, %v2663_v38  ;;  %v2664_v45 = vsel %vm6430_vm11, %v2660_v59, %v2663_v38  ;;  %v2674_v13 = vor.u32 %v2672_v15, %v2670_v1  ;;  %v4462_v8 = vld [vmem:[%s6301_s5 + $0x88] sm:$0xff]  }
 0x1bd   : > { %4311 = vmatprep.subr.bf16.mxu1 %v4458_v44  ;;  %4279 = vmatprep.mubr.msk.bf16.mxu0 %vm6427_vm15, %v5677_v11  ;;  %v2642_v32 = vpack.c.bf16 %v2149_v22, %v2149_v22  ;;  %vm6432_vm15 = vmmov %vm6424_vm1 }
 0x1bf   : > { %4272 = vmatmul.mubr.msk.bf16.gmra.mxu1 %vm6425_vm3, %v2422_v49  ;;  %vm6433_vm3 = vmmov %vm6426_vm0  ;;  %v2676_v62 = vshll.u32 %v2642_v32, 16  ;;  %v6458_v49 = vld [vmem:[#allocation7_spill] sm:$0xff] }
 0x1c0   : > { %4291 = vmatprep.mubr.msk.bf16.mxu1 %vm6428_vm14, %v2657_v39  ;;  %vm6431_vm14 = vmmov %vm6424_vm1  ;;  %v2671_v17 = vsel %vm6433_vm3, %v2667_v46, %v2670_v1  ;;  %v4466_v46 = vld [vmem:[%s6305_s9] sm:$0xff]  }
 0x1c1   : > { %vm6434_vm0 = vmmov %vm6424_vm1  ;;  %v2678_v31 = vrot.slane %v2676_v62, 1 }
 0x1c2   : > { %vm6435_vm2 = vmmov %vm6433_vm3 }
 0x1c3   : > { %v2679_v37 = vsel %vm6435_vm2, %v2674_v13, %v2678_v31  ;;  %vm6436_vm11 = vmmov %vm6434_vm0 }
 0x1c4   : > { %4280 = vmatmul.mubr.msk.bf16.vlgmr.msra.gmra.mxu0 %vm6431_vm14, %v5695_v41  ;;  %vm6437_vm14 = vcmask 1046528   ;;  %vm6440_vm3 = vmmov %vm6434_vm0  ;;  %v2792_v41 = vrot.slane %v5733_v5, 1 }
 0x1c5   : > { %4283 = vmatprep.mubr.msk.bf16.mxu0 %vm6424_vm1, %v5718_v6  ;;  %4300 = vmatpush3.bf16.msra.mxu0 %v4457_v4  ;;  %v2787_v4 = vrot.slane %v5677_v11, 1  ;;  %vm6439_vm1 = vmmov %vm6434_vm0  ;;  %v2790_v11 = vrot.slane %v5718_v6, 1  ;;  %v2901_v6 = vpack.c.bf16 %v2149_v22, %v5704_v55 }
 0x1c6   : > { %4301 = vmatprep.subr.bf16.mxu0 %v4459_v51  ;;  %vm6442_vm2 = vmmov %vm6439_vm1 }
 0x1c7   : > { %4292 = vmatmul.mubr.msk.bf16.vlgmr.msra.gmra.mxu1 %vm6432_vm15, %v2664_v45  ;;  %v2789_v53 = vsel %vm6437_vm14, %v2787_v4, %v2788_v7  ;;  %vm6438_vm15 = vmmov %vm6434_vm0 }
 0x1c8   : > { %4295 = vmatprep.mubr.msk.bf16.mxu1 %vm6434_vm0, %v2671_v17  ;;  %4312 = vmatpush3.bf16.msra.mxu1 %v4458_v44  ;;  %vm6441_vm0 = vmmov %vm6437_vm14  ;;  %v4463_v44 = vld [vmem:[%s6301_s5 + $0x70] sm:$0xff]  }
 0x1c9   : > { %4313 = vmatprep.subr.bf16.mxu1 %v4460_v61  ;;  %4302 = vmatpush3.bf16.msra.mxu0 %v4459_v51  ;;  %v2791_v36 = vsel %vm6441_vm0, %v2788_v7, %v2790_v11  ;;  %vm6444_vm14 = vmmov %vm6439_vm1 }
 0x1ca   : > { %4323 = vmatprep.subr.bf16.mxu0 %v4461_v26 }
 0x1cc   : > { %4314 = vmatpush3.bf16.msra.mxu1 %v4460_v61  ;;  %4284 = vmatmul.mubr.msk.bf16.gmra.mxu0 %vm6436_vm11, %v5733_v5  ;;  %vm6443_vm11 = vmmov %vm6441_vm0 }
 0x1cd   : > { %4335 = vmatprep.subr.bf16.mxu1 %v4462_v8  ;;  %4303 = vmatprep.mubr.msk.bf16.mxu0 %vm6439_vm1, %v2789_v53  ;;  %v2793_v40 = vsel %vm6443_vm11, %v2790_v11, %v2792_v41 }
 0x1cf   : > { %4296 = vmatmul.mubr.msk.bf16.gmra.mxu1 %vm6438_vm15, %v2679_v37  ;;  %vm6445_vm15 = vmmov %vm6439_vm1 }
 0x1d0   : > { %4315 = vmatprep.mubr.msk.bf16.mxu1 %vm6440_vm3, %v5626_v47  ;;  %v2794_v47 = vrot.slane %v2642_v32, 1  ;;  %vm6446_vm3 = vmmov %vm6441_vm0 }
 0x1d1   : > { %vm6447_vm0 = vmmov %vm6439_vm1 }
 0x1d2   : > { %v2795_v10 = vsel %vm6446_vm3, %v2792_v41, %v2794_v47  ;;  %vm6449_vm11 = vmmov %vm6447_vm0 }
 0x1d3   : > { %vm6453_vm3 = vmmov %vm6447_vm0 }
 0x1d4   : > { %4304 = vmatmul.mubr.msk.bf16.vlgmr.msra.gmra.mxu0 %vm6442_vm2, %v2791_v36  ;;  %vm6448_vm2 = vmmov %vm6447_vm0 }
 0x1d5   : > { %4307 = vmatprep.mubr.msk.bf16.mxu0 %vm6445_vm15, %v2793_v40  ;;  %4324 = vmatpush3.bf16.msra.mxu0 %v4461_v26  ;;  %vm6451_vm15 = vmmov %vm6447_vm0 }
 0x1d6   : > { %4325 = vmatprep.subr.bf16.mxu0 %v4463_v44  ;;  %vm6460_vm13 = vmmov %vm6448_vm2 }
 0x1d7   : > { %4316 = vmatmul.mubr.msk.bf16.vlgmr.msra.gmra.mxu1 %vm6444_vm14, %v5643_v27  ;;  %vm6450_vm14 = vmmov %vm6447_vm0  ;;  %v3008_v27 = vshll.u32 %v2901_v6, 16 }
 0x1d8   : > { %4319 = vmatprep.mubr.msk.bf16.mxu1 %vm6439_vm1, %v5665_v56  ;;  %4336 = vmatpush3.bf16.msra.mxu1 %v4462_v8  ;;  %v3113_v56 = vrot.slane %v2901_v6, 1  ;;  %vm6452_vm1 = vsmask.f32 7424 }
 0x1d9   : > { %4337 = vmatprep.subr.bf16.mxu1 %v4464_v57  ;;  %4326 = vmatpush3.bf16.msra.mxu0 %v4463_v44  ;;  %v3010_v23 = vrot.slane %v3008_v27, 1 }
 0x1da   : > { %4347 = vmatprep.subr.bf16.mxu0 %v4465_v16 }
 0x1db   : > { %v3011_v55 = vsel %vm6452_vm1, %v5725_v58, %v3010_v23 }
 0x1dc   : > { %4338 = vmatpush3.bf16.msra.mxu1 %v4464_v57  ;;  %4308 = vmatmul.mubr.msk.bf16.gmra.mxu0 %vm6447_vm0, %v2795_v10  ;;  %vm6454_vm0 = vcmask 1046528  }
 0x1dd   : > { %4327 = vmatprep.mubr.msk.bf16.mxu0 %vm6449_vm11, %v5663_v34  ;;  %v3114_v60 = vsel %vm6454_vm0, %v5689_v20, %v3113_v56  ;;  %v3012_v34 = vshrl.u32 %v2901_v6, 16  ;;  %vm6455_vm11 = vmmov %vm6448_vm2 }
 0x1df   : > { %4320 = vmatmul.mubr.msk.bf16.gmra.mxu1 %vm6448_vm2, %v2901_v6 }
 0x1e0   : > { %4339 = vmatprep.mubr.msk.bf16.mxu1 %vm6450_vm14, %v5701_v42  ;;  %v3014_v42 = vor.u32 %v3012_v34, %v3010_v23  ;;  %vm6457_vm14 = vmmov %vm6452_vm1 }
 0x1e1   : > { %vm6461_vm1 = vmmov %vm6448_vm2 }
 0x1e2   : > { %v3015_v35 = vsel %vm6457_vm14, %v3014_v42, %v6456_v12  ;;  %vm6474_vm14 = vnez %v6378_v29 }
 0x1e4   : > { %4328 = vmatmul.mubr.msk.bf16.vlgmr.msra.gmra.mxu0 %vm6451_vm15, %v5686_v48  ;;  %vm6459_vm15 = vmmov %vm6454_vm0  ;;  %vm6471_vm0 = vnez %v6367_v30 }
 0x1e5   : > { %4331 = vmatprep.mubr.msk.bf16.mxu0 %vm6448_vm2, %v3011_v55  ;;  %v3115_v48 = vsel %vm6459_vm15, %v3113_v56, %v6458_v49  ;;  %4348 = vmatpush3.bf16.msra.mxu0 %v4465_v16  ;;  %v3860_v55 = vld [vmem:[%s6302_s6] ss:$0 sm:$0xff]  ;;  %vm6472_vm2 = vnez %v6372_v0  ;;  %vm6475_vm15 = vnez %v6382_v43 }
 0x1e6   : > { %4349 = vmatprep.subr.bf16.mxu0 %v4466_v46 }
 0x1e7   : > { %4340 = vmatmul.mubr.msk.bf16.vlgmr.msra.gmra.mxu1 %vm6453_vm3, %v5710_v3  ;;  %vm6470_vm3 = vnez %v6358_v21 }
 0x1e8   : > { %4343 = vmatprep.mubr.msk.bf16.mxu1 %vm6455_vm11, %v3114_v60  ;;  %vm6473_vm11 = vnez %v6374_v33 }
 0x1e9   : > { %4350 = vmatpush3.bf16.msra.mxu0 %v4466_v46 }
 0x1ec   : > { %4332 = vmatmul.mubr.msk.bf16.gmra.mxu0 %vm6460_vm13, %v3015_v35  ;;  %vm6469_vm13 = vnez %v6365_v63 }
 0x1ef   : > { %4344 = vmatmul.mubr.msk.bf16.gmra.mxu1 %vm6461_vm1, %v3115_v48  ;;  %vm6476_vm1 = vnez %v6380_v50 }
 0x266   : > { %v4245_v3 = vpop.f32.mrf.mxu1 }
 0x267   : > { %v2255_v60 = vsel %vm5114_vm5, %v4245_v3, 0.0 }
 0x268   : > { %v2222_v58 = vpop.f32.mrf.mxu1  ;;  %v2263_v48 = vadd.f32 %v3860_v55, %v2255_v60 }
 0x269   : > { %v2253_v34 = vsel %vm5106_vm4, %v2222_v58, 0.0 }
 0x26a   : > { %v4246_v5 = vpop.f32.mrf.mxu1  ;;  %v2261_v16 = vadd.f32 %v3860_v55, %v2253_v34 }
 0x26b   : > { %v2256_v42 = vsel %vm5121_vm6, %v4246_v5, 0.0 }
 0x26c   : > { %v2225_v20 = vpop.f32.mrf.mxu1  ;;  %v2264_v46 = vadd.f32 %v3860_v55, %v2256_v42 }
 0x26d   : > { %v2254_v12 = vsel %vm5133_vm7, %v2225_v20, 0.0 }
 0x26e   : > { %v4257_v39 = vpop.f32.mrf.mxu0 }
 0x26f   : > { %v5816_v28 = vpop.f32.mrf.mxu1  ;;  %v2398_v34 = vadd.f32 %v4257_v39, %v2263_v48 }
 0x270   : > { %v2365_v22 = vpop.f32.mrf.mxu0  ;;  %v2259_v3 = vsel %vm5137_vm8, %v5816_v28, 0.0 }
 0x271   : > { %v5818_v38 = vpop.f32.mrf.mxu1 }
 0x272   : > { %v4258_v32 = vpop.f32.mrf.mxu0  ;;  %v2257_v5 = vsel %vm5151_vm9, %v5818_v38, 0.0 }
 0x273   : > { %v5820_v59 = vpop.f32.mrf.mxu1 }
 0x274   : > { %v2368_v51 = vpop.f32.mrf.mxu0  ;;  %v2260_v20 = vsel %vm5155_vm10, %v5820_v59, 0.0  ;;  %v2267_v59 = vadd.f32 %v3860_v55, %v2259_v3 }
 0x275   : > { %v5822_v24 = vpop.f32.mrf.mxu1  ;;  %v2268_v48 = vadd.f32 %v3860_v55, %v2260_v20 }
 0x276   : > { %v2258_v60 = vsel %vm5173_vm12, %v5822_v24, 0.0  ;;  %v2265_v24 = vadd.f32 %v3860_v55, %v2257_v5 }
 0x277   : > { %v5830_v45 = vpop.f32.mrf.mxu1  ;;  %v2266_v19 = vadd.f32 %v3860_v55, %v2258_v60 }
 0x278   : > { %v2514_v28 = vsel %vm6469_vm13, %v5830_v45, 0.0 }
 0x279   : > { %v5832_v1 = vpop.f32.mrf.mxu1  ;;  %v2522_v30 = vadd.f32 %v2514_v28, %v2398_v34 }
 0x27a   : > { %v2512_v42 = vsel %vm6470_vm3, %v5832_v1, 0.0 }
 0x27b   : > { %v4270_v61 = vpop.f32.mrf.mxu1 }
 0x27c   : > { %v4261_v15 = vpop.f32.mrf.mxu0  ;;  %v2515_v38 = vsel %vm6471_vm0, %v4270_v61, 0.0 }
 0x27d   : > { %v2484_v17 = vpop.f32.mrf.mxu1 }
 0x27e   : > { %v5836_v26 = vpop.f32.mrf.mxu0  ;;  %v2513_v39 = vsel %vm6472_vm2, %v2484_v17, 0.0 }
 0x27f   : > { %v5834_v62 = vpop.f32.mrf.mxu1 }
 0x280   : > { %v5840_v8 = vpop.f32.mrf.mxu0  ;;  %v2518_v3 = vsel %vm6473_vm11, %v5834_v62, 0.0 }
 0x281   : > { %v5838_v13 = vpop.f32.mrf.mxu1 }
 0x282   : > { %v5844_v7 = vpop.f32.mrf.mxu0 }
 0x283   : > { %v5842_v4 = vpop.f32.mrf.mxu1 }
 0x284   : > { %v5848_v37 = vpop.f32.mrf.mxu0 }
 0x285   : > { %v5846_v31 = vpop.f32.mrf.mxu1  ;;  %v2628_v17 = vsel %vm5114_vm5, %v5848_v37, 0.0  ;;  %v2403_v37 = vadd.f32 %v5840_v8, %v2268_v48 }
 0x286   : > { %v5852_v11 = vpop.f32.mrf.mxu0  ;;  %v2517_v62 = vsel %vm6476_vm1, %v5846_v31, 0.0 }
 0x287   : > { %v5850_v53 = vpop.f32.mrf.mxu1 }
 0x288   : > { %v5856_v36 = vpop.f32.mrf.mxu0 }
 0x289   : > { %v5854_v41 = vpop.f32.mrf.mxu1 }
 0x28a   : > { %v5860_v57 = vpop.f32.mrf.mxu0 }
 0x28b   : > { %v5858_v44 = vpop.f32.mrf.mxu1 }
 0x28c   : > { %6462 = vst [vmem:[#allocation18_spill] sm:$0xff] %v5858_v44  ;;  %v5864_v47 = vpop.f32.mrf.mxu0 }
 0x28d   : > { %v5862_v40 = vpop.f32.mrf.mxu1  ;;  %v2632_v8 = vsel %vm5137_vm8, %v5864_v47, 0.0 }
 0x28e   : > { %6463 = vst [vmem:[#allocation9_spill] sm:$0xff] %v5862_v40  ;;  %v5868_v10 = vpop.f32.mrf.mxu0  ;;  %v2399_v40 = vadd.f32 %v4258_v32, %v2264_v46 }
 0x28f   : > { %v5866_v6 = vpop.f32.mrf.mxu1 }
 0x290   : > { %6464 = vst [vmem:[#allocation10_spill] sm:$0xff] %v5866_v6  ;;  %v5872_v56 = vpop.f32.mrf.mxu0  ;;  %v2396_v6 = vadd.f32 %v2365_v22, %v2261_v16  ;;  %v2523_v44 = vadd.f32 %v2515_v38, %v2399_v40  ;;  %v2402_v22 = vadd.f32 %v4261_v15, %v2267_v59  ;;  %v2516_v40 = vsel %vm6474_vm14, %v5838_v13, 0.0 }
 0x291   : > { %v5870_v27 = vpop.f32.mrf.mxu1  ;;  %v2519_v15 = vsel %vm6475_vm15, %v5842_v4, 0.0  ;;  %v2636_v13 = vadd.f32 %v2628_v17, %v2522_v30  ;;  %v2627_v4 = vsel %vm5133_vm7, %v5860_v57, 0.0  ;;  %v2630_v57 = vsel %vm5151_vm9, %v5868_v10, 0.0 }
 0x292   : > { %6465 = vst [vmem:[#allocation15_spill] sm:$0xff] %v5870_v27  ;;  %v5887_v35 = vpop.f32.mrf.mxu0  ;;  %v2262_v27 = vadd.f32 %v3860_v55, %v2254_v12  ;;  %v2520_v61 = vadd.f32 %v2512_v42, %v2396_v6  ;;  %v2400_v6 = vadd.f32 %v5836_v26, %v2265_v24  ;;  %v2526_v16 = vadd.f32 %v2518_v3, %v2402_v22 }
 0x293   : > { %v5874_v23 = vpop.f32.mrf.mxu1  ;;  %6467 = vst [vmem:[#allocation8_spill] sm:$0xff] %v5887_v35  ;;  %v2629_v26 = vsel %vm5121_vm6, %v5856_v36, 0.0  ;;  %v2771_v28 = vadd.f32 %v5850_v53, %v2636_v13  ;;  %v2633_v53 = vsel %vm5155_vm10, %v5872_v56, 0.0  ;;  %v6477_v10 = vld [vmem:[#allocation18_spill] sm:$0xff] }
 0x294   : > { %6466 = vst [vmem:[#allocation16_spill] sm:$0xff] %v5874_v23  ;;  %v5894_v23 = vpop.f32.mrf.mxu0  ;;  %v2397_v45 = vadd.f32 %v2368_v51, %v2262_v27  ;;  %v2626_v51 = vsel %vm5106_vm4, %v5852_v11, 0.0  ;;  %v2401_v11 = vadd.f32 %v5844_v7, %v2266_v19  ;;  %v2524_v31 = vadd.f32 %v2516_v40, %v2400_v6 }
 0x295   : > { %v5889_v49 = vpop.f32.mrf.mxu1  ;;  %v2634_v20 = vadd.f32 %v2626_v51, %v2520_v61  ;;  %v2527_v19 = vadd.f32 %v2519_v15, %v2403_v37  ;;  %v2887_v36 = vsel %vm6469_vm13, %v5894_v23, 0.0  ;;  %v2637_v30 = vadd.f32 %v2629_v26, %v2523_v44 }
 0x296   : > { %6468 = vst [vmem:[#allocation11_spill] sm:$0xff] %v5889_v49  ;;  %v5915_v12 = vpop.f32.mrf.mxu0  ;;  %v2521_v32 = vadd.f32 %v2513_v39, %v2397_v45  ;;  %v2525_v7 = vadd.f32 %v2517_v62, %v2401_v11  ;;  %v2640_v38 = vadd.f32 %v2632_v8, %v2526_v16  ;;  %v2895_v61 = vadd.f32 %v2887_v36, %v2771_v28 }
 0x297   : > { %v5896_v58 = vpop.f32.mrf.mxu1  ;;  %v2769_v42 = vadd.f32 %v5854_v41, %v2634_v20  ;;  %v2885_v59 = vsel %vm6470_vm3, %v5915_v12, 0.0  ;;  %v2772_v24 = vadd.f32 %v6477_v10, %v2637_v30  ;;  %v2638_v3 = vadd.f32 %v2630_v57, %v2524_v31  ;;  %v6480_v12 = vld [vmem:[#allocation9_spill] sm:$0xff] }
 0x298   : > { %v5921_v35 = vpop.f32.mrf.mxu0  ;;  %v2635_v47 = vadd.f32 %v2627_v4, %v2521_v32  ;;  %v2989_v23 = vsel %vm5114_vm5, %v5896_v58, 0.0  ;;  %v6481_v32 = vld [vmem:[#allocation10_spill] sm:$0xff]  ;;  %v2641_v37 = vadd.f32 %v2633_v53, %v2527_v19 }
 0x299   : > { %v5917_v49 = vpop.f32.mrf.mxu1  ;;  %v2775_v18 = vadd.f32 %v6481_v32, %v2640_v38  ;;  %v2893_v6 = vadd.f32 %v2885_v59, %v2769_v42  ;;  %v2888_v40 = vsel %vm6471_vm0, %v5921_v35, 0.0  ;;  %v2997_v62 = vadd.f32 %v2989_v23, %v2895_v61  ;;  %v6483_v16 = vld [vmem:[#allocation15_spill] sm:$0xff] }
 0x29a   : > { %v2857_v27 = vpop.f32.mrf.mxu0  ;;  %v6478_v41 = vld [vmem:[#allocation8_spill] sm:$0xff]  ;;  %v2770_v22 = vadd.f32 %v6480_v12, %v2635_v47  ;;  %v2987_v58 = vsel %vm5106_vm4, %v5917_v49, 0.0  ;;  %v2773_v26 = vadd.f32 %v6483_v16, %v2638_v3  ;;  %vm6486_vm4 = vcmask 261120  }
 0x29b   : > { %v5923_v1 = vpop.f32.mrf.mxu1  ;;  %v2631_v45 = vsel %vm5173_vm12, %v6478_v41, 0.0  ;;  %v2886_v15 = vsel %vm6472_vm2, %v2857_v27, 0.0  ;;  %v2995_v4 = vadd.f32 %v2987_v58, %v2893_v6  ;;  %v2896_v27 = vadd.f32 %v2888_v40, %v2772_v24  ;;  %v6484_v31 = vld [vmem:[#allocation16_spill] sm:$0xff]  ;;  %vm6487_vm5 = vmmov %vm6486_vm4 }
 0x29c   : > { %v4309_v46 = vpop.f32.mrf.mxu0  ;;  %v2639_v11 = vadd.f32 %v2631_v45, %v2525_v7  ;;  %v2990_v54 = vsel %vm5121_vm6, %v5923_v1, 0.0  ;;  %v2776_v19 = vadd.f32 %v6484_v31, %v2641_v37  ;;  %v2894_v7 = vadd.f32 %v2886_v15, %v2770_v22  ;;  %vm6488_vm6 = vmmov %vm6486_vm4 }
 0x29d   : > { %v5934_v55 = vpop.f32.mrf.mxu1  ;;  %v2891_v20 = vsel %vm6473_vm11, %v4309_v46, 0.0  ;;  %v6485_v57 = vld [vmem:[#allocation11_spill] sm:$0xff]  ;;  %v2998_v38 = vadd.f32 %v2990_v54, %v2896_v27 }
 0x29e   : > { %v2870_v60 = vpop.f32.mrf.mxu0  ;;  %v2988_v36 = vsel %vm5133_vm7, %v5934_v55, 0.0  ;;  %v2774_v42 = vadd.f32 %v6485_v57, %v2639_v11  ;;  %v2899_v47 = vadd.f32 %v2891_v20, %v2775_v18  ;;  %vm6489_vm7 = vmmov %vm6486_vm4 }
 0x29f   : > { %v5951_v5 = vpop.f32.mrf.mxu1  ;;  %v2889_v30 = vsel %vm6474_vm14, %v2870_v60, 0.0  ;;  %v2996_v53 = vadd.f32 %v2988_v36, %v2894_v7 }
 0x2a0   : > { %v4310_v39 = vpop.f32.mrf.mxu0  ;;  %v2993_v52 = vsel %vm5137_vm8, %v5951_v5, 0.0  ;;  %v2897_v21 = vadd.f32 %v2889_v30, %v2773_v26  ;;  %vm6490_vm8 = vmmov %vm6486_vm4 }
 0x2a1   : > { %v5962_v34 = vpop.f32.mrf.mxu1  ;;  %v2892_v23 = vsel %vm6475_vm15, %v4310_v39, 0.0 }
 0x2a2   : > { %v2873_v17 = vpop.f32.mrf.mxu0  ;;  %v2991_v24 = vsel %vm5151_vm9, %v5962_v34, 0.0  ;;  %v2900_v22 = vadd.f32 %v2892_v23, %v2776_v19  ;;  %v3001_v34 = vadd.f32 %v2993_v52, %v2899_v47  ;;  %vm6491_vm9 = vmmov %vm6486_vm4 }
 0x2a3   : > { %v5975_v44 = vpop.f32.mrf.mxu1  ;;  %v2890_v60 = vsel %vm6476_vm1, %v2873_v17, 0.0  ;;  %v2999_v17 = vadd.f32 %v2991_v24, %v2897_v21 }
 0x2a4   : > { %v4329_v49 = vpop.f32.mrf.mxu0  ;;  %v2994_v61 = vsel %vm5155_vm10, %v5975_v44, 0.0  ;;  %v2898_v9 = vadd.f32 %v2890_v60, %v2774_v42  ;;  %vm6492_vm10 = vmmov %vm6486_vm4 }
 0x2a5   : > { %v2975_v51 = vpop.f32.mrf.mxu1  ;;  %v3101_v8 = vadd.f32 %v4329_v49, %v2997_v62  ;;  %v3002_v44 = vadd.f32 %v2994_v61, %v2900_v22 }
 0x2a6   : > { %v3068_v2 = vpop.f32.mrf.mxu0  ;;  %v2992_v12 = vsel %vm5173_vm12, %v2975_v51, 0.0  ;;  %vm6493_vm12 = vmmov %vm6486_vm4 }
 0x2a7   : > { %v4341_v13 = vpop.f32.mrf.mxu1  ;;  %v3099_v28 = vadd.f32 %v3068_v2, %v2995_v4  ;;  %v3000_v40 = vadd.f32 %v2992_v12, %v2898_v9 }
 0x2a8   : > { %v3201_v35 = vsel %vm6469_vm13, %v4341_v13, 0.0  ;;  %v4330_v55 = vpop.f32.mrf.mxu0  ;;  %vm6494_vm13 = vmmov %vm6486_vm4 }
 0x2a9   : > { %v3168_v1 = vpop.f32.mrf.mxu1  ;;  %v6008_v46 = vadd.f32 %v3201_v35, %v3101_v8  ;;  %v3102_v39 = vadd.f32 %v4330_v55, %v2998_v38 }
 0x2aa   : > { %v3199_v63 = vsel %vm6470_vm3, %v3168_v1, 0.0  ;;  %v3071_v41 = vpop.f32.mrf.mxu0  ;;  %vm6495_vm3 = vmmov %vm6486_vm4 }
 0x2ab   : > { %v4342_v59 = vpop.f32.mrf.mxu1  ;;  %v6020_v10 = vadd.f32 %v3199_v63, %v3099_v28  ;;  %v3240_v25 = vmul.f32 %v6008_v46, %v6008_v46  ;;  %v3100_v3 = vadd.f32 %v3071_v41, %v2996_v53  ;;  %v3220_v48 = vsel %vm6486_vm4, %v6008_v46, 0.0 }
 0x2ac   : > { %v3202_v5 = vsel %vm6471_vm0, %v4342_v59, 0.0  ;;  %v4333_v32 = vpop.f32.mrf.mxu0  ;;  %vm6496_vm0 = vmmov %vm6495_vm3 }
 0x2ad   : > { %v3171_v45 = vpop.f32.mrf.mxu1  ;;  %v3238_v6 = vmul.f32 %v6020_v10, %v6020_v10  ;;  %v6038_v56 = vadd.f32 %v3202_v5, %v3102_v39  ;;  %v3249_v51 = vsel %vm6487_vm5, %v3240_v25, 0.0  ;;  %v3105_v0 = vadd.f32 %v4333_v32, %v3001_v34 }
 0x2ae   : > { %v3200_v18 = vsel %vm6472_vm2, %v3171_v45, 0.0  ;;  %v3084_v15 = vpop.f32.mrf.mxu0  ;;  %v3217_v37 = vsel %vm6488_vm6, %v6020_v10, 0.0  ;;  %vm6497_vm2 = vmmov %vm6496_vm0 }
 0x2af   : > { %v4345_v58 = vpop.f32.mrf.mxu1  ;;  %v6040_v14 = vadd.f32 %v3200_v18, %v3100_v3  ;;  %v3103_v26 = vadd.f32 %v3084_v15, %v2999_v17  ;;  %v3246_v8 = vsel %vm6490_vm8, %v3238_v6, 0.0  ;;  %v3222_v35 = vsel %vm6491_vm9, %v6038_v56, 0.0  ;;  %vm6502_vm9 = vmmov %vm6496_vm0 }
 0x2b0   : > { %v4334_v54 = vpop.f32.mrf.mxu0  ;;  %v3205_v13 = vsel %vm6473_vm11, %v4345_v58, 0.0  ;;  %v3241_v27 = vmul.f32 %v6038_v56, %v6038_v56  ;;  %vm6498_vm11 = vmmov %vm6496_vm0 }
 0x2b1   : > { %v3184_v62 = vpop.f32.mrf.mxu1  ;;  %v3218_v11 = vsel %vm6489_vm7, %v6040_v14, 0.0  ;;  %v3239_v16 = vmul.f32 %v6040_v14, %v6040_v14  ;;  %v3106_v1 = vadd.f32 %v4334_v54, %v3002_v44  ;;  %v6065_v28 = vadd.f32 %v3205_v13, %v3105_v0 }
 0x2b2   : > { %v3219_v49 = vadd.f32 %v3218_v11, %v3217_v37  ;;  %v3203_v20 = vsel %vm6474_vm14, %v3184_v62, 0.0  ;;  %v3087_v19 = vpop.f32.mrf.mxu0  ;;  %v3251_v38 = vsel %vm6493_vm12, %v3241_v27, 0.0  ;;  %vm6499_vm14 = vmmov %vm6496_vm0 }
 0x2b3   : > { %v4346_v4 = vpop.f32.mrf.mxu1  ;;  %v3247_v31 = vsel %vm6492_vm10, %v3239_v16, 0.0  ;;  %v6061_v2 = vadd.f32 %v3203_v20, %v3103_v26  ;;  %v3104_v30 = vadd.f32 %v3087_v19, %v3000_v40  ;;  %v3244_v60 = vmul.f32 %v6065_v28, %v6065_v28  ;;  %vm6503_vm12 = vmmov %vm6496_vm0 }
 0x2b4   : > { %v3221_v7 = vadd.f32 %v3220_v48, %v3219_v49  ;;  %v3248_v36 = vadd.f32 %v3247_v31, %v3246_v8  ;;  %v3206_v33 = vsel %vm6475_vm15, %v4346_v4, 0.0  ;;  %v3228_v25 = vsel %vm6497_vm2, %v6065_v28, 0.0  ;;  %vm6500_vm15 = vmmov %vm6496_vm0  ;;  %v3947_v31 = vld [vmem:[%s6303_s7] ss:$0 sm:$0xff] }
 0x2b5   : > { %v3187_v29 = vpop.f32.mrf.mxu1  ;;  %v3242_v47 = vmul.f32 %v6061_v2, %v6061_v2  ;;  %v3224_v52 = vsel %vm6494_vm13, %v6061_v2, 0.0  ;;  %v6074_v43 = vadd.f32 %v3206_v33, %v3106_v1  ;;  %v3257_v3 = vsel %vm6499_vm14, %v3244_v60, 0.0  ;;  %v3948_v1 = vld [vmem:[%s6304_s8] ss:$0 sm:$0xff]  ;;  %vm6504_vm2 = vmmov %vm6496_vm0 }
 0x2b6   : > { %v3204_v63 = vsel %vm6476_vm1, %v3187_v29, 0.0  ;;  %v3250_v57 = vadd.f32 %v3249_v51, %v3248_v36  ;;  %v3223_v42 = vadd.f32 %v3222_v35, %v3221_v7  ;;  %vm6501_vm1 = vmmov %vm6496_vm0 }
 0x2b7   : > { %v3212_v55 = vadd.f32 %v3204_v63, %v3104_v30  ;;  %v3253_v50 = vsel %vm6495_vm3, %v3242_v47, 0.0  ;;  %v3245_v5 = vmul.f32 %v6074_v43, %v6074_v43  ;;  %v3230_v12 = vsel %vm6500_vm15, %v6074_v43, 0.0 }
 0x2b8   : > { %v3225_v59 = vadd.f32 %v3224_v52, %v3223_v42  ;;  %v3252_v23 = vadd.f32 %v3251_v38, %v3250_v57 }
 0x2b9   : > { %v3226_v53 = vsel %vm6496_vm0, %v3212_v55, 0.0  ;;  %v3243_v21 = vmul.f32 %v3212_v55, %v3212_v55  ;;  %v3259_v34 = vsel %vm6501_vm1, %v3245_v5, 0.0 }
 0x2ba   : > { %v3254_v24 = vadd.f32 %v3253_v50, %v3252_v23  ;;  %v3227_v41 = vadd.f32 %v3226_v53, %v3225_v59 }
 0x2bb   : > { %v3255_v45 = vsel %vm6498_vm11, %v3243_v21, 0.0 }
 0x2bc   : > { %v3229_v39 = vadd.f32 %v3228_v25, %v3227_v41  ;;  %v3256_v61 = vadd.f32 %v3255_v45, %v3254_v24 }
 0x2be   : > { %v3231_v22 = vadd.f32 %v3230_v12, %v3229_v39  ;;  %v3258_v9 = vadd.f32 %v3257_v3, %v3256_v61 }
 0x2c0   : > { %v3232_v32 = vrot.slane %v3231_v22, 4  ;;  %v3260_v18 = vadd.f32 %v3259_v34, %v3258_v9 }
 0x2c2   : > { %v3233_v58 = vadd.f32 %v3232_v32, %v3231_v22  ;;  %v3261_v17 = vrot.slane %v3260_v18, 4 }
 0x2c4   : > { %v3234_v6 = vrot.slane %v3233_v58, 2  ;;  %v3262_v44 = vadd.f32 %v3261_v17, %v3260_v18 }
 0x2c6   : > { %v3235_v40 = vadd.f32 %v3234_v6, %v3233_v58  ;;  %v3263_v48 = vrot.slane %v3262_v44, 2 }
 0x2c8   : > { %v3236_v51 = vrot.slane %v3235_v40, 1  ;;  %v3264_v15 = vadd.f32 %v3263_v48, %v3262_v44 }
 0x2ca   : > { %v3237_v62 = vadd.f32 %v3236_v51, %v3235_v40  ;;  %v3265_v0 = vrot.slane %v3264_v15, 1 }
 0x2cc   : > { %v3266_v37 = vadd.f32 %v3265_v0, %v3264_v15  ;;  %v3267_v11 = vmul.f32 0.015625, %v3237_v62 }
 0x2ce   : > { %v3268_v16 = vmul.f32 0.015625, %v3266_v37  ;;  %v3269_v26 = vmul.f32 %v3267_v11, %v3267_v11  ;;  %v3279_v20 = vsub.f32 %v3212_v55, %v3267_v11  ;;  %v3274_v4 = vsub.f32 %v6020_v10, %v3267_v11 }
 0x2cf   : > { %v3275_v8 = vsub.f32 %v6040_v14, %v3267_v11  ;;  %v3276_v35 = vsub.f32 %v6008_v46, %v3267_v11  ;;  %v3277_v19 = vsub.f32 %v6038_v56, %v3267_v11  ;;  %v3278_v42 = vsub.f32 %v6061_v2, %v3267_v11 }
 0x2d0   : > { %v3270_v54 = vsub.f32 %v3268_v16, %v3269_v26  ;;  %v3280_v59 = vsub.f32 %v6065_v28, %v3267_v11  ;;  %v3281_v23 = vsub.f32 %v6074_v43, %v3267_v11 }
 0x2d2   : > { %v3271_v49 = vmax.f32 %v3270_v54, 0.0 }
 0x2d4   : > { %v3272_v13 = vadd.f32 1e-05, %v3271_v49 }
 0x2d6   : > { %4501 = vrsqrt.f32 %v3272_v13 }
 0x2e3   : > { %v4502_v27 = vpop.eup %4501 }
 0x2e4   : > { %v3287_v7 = vmul.f32 %v4502_v27, %v3279_v20  ;;  %v3282_v36 = vmul.f32 %v4502_v27, %v3274_v4  ;;  %v3283_v33 = vmul.f32 %v4502_v27, %v3275_v8  ;;  %v3284_v29 = vmul.f32 %v4502_v27, %v3276_v35 }
 0x2e5   : > { %v3285_v10 = vmul.f32 %v4502_v27, %v3277_v19  ;;  %v3286_v53 = vmul.f32 %v4502_v27, %v3278_v42  ;;  %v3288_v41 = vmul.f32 %v4502_v27, %v3280_v59  ;;  %v3289_v5 = vmul.f32 %v4502_v27, %v3281_v23 }
 0x2e6   : > { %v3301_v30 = vmul.f32 %v3947_v31, %v3287_v7  ;;  %v3296_v14 = vmul.f32 %v3947_v31, %v3282_v36  ;;  %v3297_v63 = vmul.f32 %v3947_v31, %v3283_v33  ;;  %v3298_v46 = vmul.f32 %v3947_v31, %v3284_v29 }
 0x2e7   : > { %v3299_v57 = vmul.f32 %v3947_v31, %v3285_v10  ;;  %v3300_v12 = vmul.f32 %v3947_v31, %v3286_v53  ;;  %v3302_v9 = vmul.f32 %v3947_v31, %v3288_v41  ;;  %v3303_v58 = vmul.f32 %v3947_v31, %v3289_v5 }
 0x2e8   : > { %v6100_v47 = vadd.f32 %v3948_v1, %v3301_v30  ;;  %v6102_v38 = vadd.f32 %v3948_v1, %v3296_v14  ;;  %v6104_v56 = vadd.f32 %v3948_v1, %v3297_v63  ;;  %v6106_v52 = vadd.f32 %v3948_v1, %v3298_v46 }
 0x2e9   : > { %v6108_v55 = vadd.f32 %v3948_v1, %v3299_v57  ;;  %v6132_v44 = vadd.f32 %v3948_v1, %v3300_v12  ;;  %v6134_v40 = vadd.f32 %v3948_v1, %v3302_v9  ;;  %v6136_v51 = vadd.f32 %v3948_v1, %v3303_v58 }
 0x2ea   : > { %v6113_v60 = vmul.f32 0.70710677, %v6100_v47  ;;  %v6116_v50 = vmul.f32 0.70710677, %v6102_v38  ;;  %v6119_v2 = vmul.f32 0.70710677, %v6104_v56 }
 0x2eb   : > { %v6122_v21 = vmul.f32 0.70710677, %v6106_v52  ;;  %v6125_v24 = vmul.f32 0.70710677, %v6108_v55  ;;  %v6139_v62 = vmul.f32 0.70710677, %v6132_v44 }
 0x2ec   : > { %v3331_v28 = vand.u32 2147483647, %v6113_v60  ;;  %v3326_v43 = vand.u32 2147483647, %v6116_v50  ;;  %v3327_v25 = vand.u32 2147483647, %v6119_v2 }
 0x2ed   : > { %v3328_v45 = vand.u32 2147483647, %v6122_v21  ;;  %v3329_v39 = vand.u32 2147483647, %v6125_v24  ;;  %v6142_v0 = vmul.f32 0.70710677, %v6134_v40 }
 0x2ee   : > { %v3339_v61 = vmul.f32 0.3275911, %v3331_v28  ;;  %v3334_v3 = vmul.f32 0.3275911, %v3326_v43  ;;  %v3335_v22 = vmul.f32 0.3275911, %v3327_v25 }
 0x2ef   : > { %v3336_v18 = vmul.f32 0.3275911, %v3328_v45  ;;  %v3337_v6 = vmul.f32 0.3275911, %v3329_v39  ;;  %v3435_v37 = vsub.f32 0.0, %v3331_v28  ;;  %v3430_v26 = vsub.f32 0.0, %v3326_v43 }
 0x2f0   : > { %v3347_v34 = vadd.f32 1.0, %v3339_v61  ;;  %v3342_v32 = vadd.f32 1.0, %v3334_v3  ;;  %v3343_v17 = vadd.f32 1.0, %v3335_v22  ;;  %v3330_v11 = vand.u32 2147483647, %v6139_v62 }
 0x2f1   : > { %v3344_v48 = vadd.f32 1.0, %v3336_v18  ;;  %v3345_v15 = vadd.f32 1.0, %v3337_v6  ;;  %v6146_v16 = vmul.f32 0.70710677, %v6136_v51  ;;  %v3332_v54 = vand.u32 2147483647, %v6142_v0 }
 0x2f2   : > { %4503 = vrcp.f32 %v3347_v34  ;;  %v3431_v49 = vsub.f32 0.0, %v3327_v25  ;;  %v3338_v13 = vmul.f32 0.3275911, %v3330_v11  ;;  %v3443_v8 = vmul.f32 %v3435_v37, %v3331_v28 }
 0x2f3   : > { %4505 = vrcp.f32 %v3342_v32  ;;  %v3333_v20 = vand.u32 2147483647, %v6146_v16  ;;  %v3340_v4 = vmul.f32 0.3275911, %v3332_v54  ;;  %v3432_v35 = vsub.f32 0.0, %v3328_v45 }
 0x2f4   : > { %4507 = vrcp.f32 %v3343_v17  ;;  %v3346_v27 = vadd.f32 1.0, %v3338_v13  ;;  %v3438_v19 = vmul.f32 %v3430_v26, %v3326_v43  ;;  %v3433_v7 = vsub.f32 0.0, %v3329_v39 }
 0x2f5   : > { %4509 = vrcp.f32 %v3344_v48  ;;  %v3341_v31 = vmul.f32 0.3275911, %v3333_v20  ;;  %v3348_v36 = vadd.f32 1.0, %v3340_v4  ;;  %v3439_v33 = vmul.f32 %v3431_v49, %v3327_v25 }
 0x2f6   : > { %4511 = vrcp.f32 %v3345_v15  ;;  %v3434_v10 = vsub.f32 0.0, %v3330_v11  ;;  %v3456_v14 = vmul.f32 1.442695, %v3443_v8  ;;  %v3440_v63 = vmul.f32 %v3432_v35, %v3328_v45 }
 0x2f7   : > { %4513 = vrcp.f32 %v3346_v27  ;;  %v3349_v29 = vadd.f32 1.0, %v3341_v31  ;;  %v3436_v57 = vsub.f32 0.0, %v3332_v54  ;;  %v3446_v59 = vmul.f32 1.442695, %v3438_v19 }
 0x2f8   : > { %4515 = vrcp.f32 %v3348_v36  ;;  %v3441_v23 = vmul.f32 %v3433_v7, %v3329_v39  ;;  %v3448_v41 = vmul.f32 1.442695, %v3439_v33  ;;  %v3437_v43 = vsub.f32 0.0, %v3333_v20 }
 0x2f9   : > { %4517 = vrcp.f32 %v3349_v29  ;;  %v6160_v61 = vmul.f32 0.5, %v6102_v38  ;;  %v3442_v45 = vmul.f32 %v3434_v10, %v3330_v11  ;;  %v3450_v3 = vmul.f32 1.442695, %v3440_v63 }
 0x2fa   : > { %4519 = vpow2.f32 %v3456_v14  ;;  %v3444_v22 = vmul.f32 %v3436_v57, %v3332_v54  ;;  %v3452_v32 = vmul.f32 1.442695, %v3441_v23  ;;  %v3445_v17 = vmul.f32 %v3437_v43, %v3333_v20 }
 0x2fb   : > { %4521 = vpow2.f32 %v3446_v59  ;;  %v3454_v37 = vmul.f32 1.442695, %v3442_v45  ;;  %v6172_v11 = vmul.f32 0.5, %v6104_v56  ;;  %vm3478_vm4 = vcmp.lt.f32.partialorder %v6116_v50, 0.0 }
 0x2fc   : > { %4523 = vpow2.f32 %v3448_v41  ;;  %v3458_v49 = vmul.f32 1.442695, %v3444_v22  ;;  %v3460_v27 = vmul.f32 1.442695, %v3445_v17  ;;  %vm3479_vm5 = vcmp.lt.f32.partialorder %v6119_v2, 0.0 }
 0x2fd   : > { %4525 = vpow2.f32 %v3450_v3  ;;  %vm3480_vm6 = vcmp.lt.f32.partialorder %v6122_v21, 0.0  ;;  %vm3481_vm7 = vcmp.lt.f32.partialorder %v6125_v24, 0.0  ;;  %vm3483_vm8 = vcmp.lt.f32.partialorder %v6113_v60, 0.0 }
 0x2fe   : > { %4527 = vpow2.f32 %v3452_v32  ;;  %v3505_v60 = vmul.f32 0.5, %v6108_v55  ;;  %vm3482_vm10 = vcmp.lt.f32.partialorder %v6139_v62, 0.0  ;;  %v3507_v24 = vmul.f32 0.5, %v6100_v47 }
 0x2ff   : > { %v6150_v1 = vpop.eup %4503  ;;  %4529 = vpow2.f32 %v3454_v37  ;;  %v3506_v55 = vmul.f32 0.5, %v6132_v44  ;;  %vm3484_vm13 = vcmp.lt.f32.partialorder %v6142_v0, 0.0  ;;  %vm3485_vm3 = vcmp.lt.f32.partialorder %v6146_v16, 0.0 }
 0x300   : > { %v6152_v30 = vpop.eup %4505  ;;  %v3363_v46 = vmul.f32 1.0614054, %v6150_v1  ;;  %4531 = vpow2.f32 %v3458_v49  ;;  %v3508_v47 = vmul.f32 0.5, %v6134_v40  ;;  %v3949_v40 = vld [vmem:[%s6306_s10] ss:$0 sm:$0xff] }
 0x301   : > { %v3358_v42 = vmul.f32 1.0614054, %v6152_v30  ;;  %v6156_v53 = vpop.eup %4507  ;;  %4533 = vpow2.f32 %v3460_v27 }
 0x302   : > { %v3371_v28 = vadd.f32 -1.4531521, %v3363_v46  ;;  %v3359_v25 = vmul.f32 1.0614054, %v6156_v53  ;;  %v6163_v9 = vpop.eup %4509 }
 0x303   : > { %v3366_v5 = vadd.f32 -1.4531521, %v3358_v42  ;;  %v6166_v18 = vpop.eup %4511  ;;  %v3360_v58 = vmul.f32 1.0614054, %v6163_v9 }
 0x304   : > { %v3379_v12 = vmul.f32 %v6150_v1, %v3371_v28  ;;  %v3367_v39 = vadd.f32 -1.4531521, %v3359_v25  ;;  %v3361_v15 = vmul.f32 1.0614054, %v6166_v18  ;;  %v6177_v31 = vpop.eup %4513 }
 0x305   : > { %v3374_v34 = vmul.f32 %v6152_v30, %v3366_v5  ;;  %v3368_v26 = vadd.f32 -1.4531521, %v3360_v58  ;;  %v6181_v36 = vpop.eup %4515  ;;  %v3362_v29 = vmul.f32 1.0614054, %v6177_v31 }
 0x306   : > { %v3387_v38 = vadd.f32 1.4214138, %v3379_v12  ;;  %v3375_v6 = vmul.f32 %v6156_v53, %v3367_v39  ;;  %v3369_v8 = vadd.f32 -1.4531521, %v3361_v15  ;;  %v3364_v57 = vmul.f32 1.0614054, %v6181_v36  ;;  %v6187_v42 = vpop.eup %4517 }
 0x307   : > { %v3382_v48 = vadd.f32 1.4214138, %v3374_v34  ;;  %v3376_v20 = vmul.f32 %v6163_v9, %v3368_v26  ;;  %v3370_v23 = vadd.f32 -1.4531521, %v3362_v29  ;;  %v3365_v5 = vmul.f32 1.0614054, %v6187_v42  ;;  %v4520_v39 = vpop.eup %4519 }
 0x308   : > { %v3395_v54 = vmul.f32 %v6150_v1, %v3387_v38  ;;  %v3383_v13 = vadd.f32 1.4214138, %v3375_v6  ;;  %v3377_v7 = vmul.f32 %v6166_v18, %v3369_v8  ;;  %v3372_v22 = vadd.f32 -1.4531521, %v3364_v57  ;;  %v4522_v17 = vpop.eup %4521 }
 0x309   : > { %v3390_v4 = vmul.f32 %v6152_v30, %v3382_v48  ;;  %v3384_v33 = vadd.f32 1.4214138, %v3376_v20  ;;  %v3378_v3 = vmul.f32 %v6177_v31, %v3370_v23  ;;  %v3373_v38 = vadd.f32 -1.4531521, %v3365_v5  ;;  %v4524_v26 = vpop.eup %4523 }
 0x30a   : > { %v3403_v35 = vadd.f32 -0.28449672, %v3395_v54  ;;  %v3391_v19 = vmul.f32 %v6156_v53, %v3383_v13  ;;  %v3385_v46 = vadd.f32 1.4214138, %v3377_v7  ;;  %v3380_v37 = vmul.f32 %v6181_v36, %v3372_v22  ;;  %v4526_v7 = vpop.eup %4525 }
 0x30b   : > { %v3398_v56 = vadd.f32 -0.28449672, %v3390_v4  ;;  %v3392_v59 = vmul.f32 %v6163_v9, %v3384_v33  ;;  %v3386_v48 = vadd.f32 1.4214138, %v3378_v3  ;;  %v3381_v13 = vmul.f32 %v6187_v42, %v3373_v38 }
 0x30c   : > { %v3411_v10 = vmul.f32 %v6150_v1, %v3403_v35  ;;  %v3399_v14 = vadd.f32 -0.28449672, %v3391_v19  ;;  %v3393_v25 = vmul.f32 %v6166_v18, %v3385_v46  ;;  %v3388_v20 = vadd.f32 1.4214138, %v3380_v37 }
 0x30d   : > { %v3406_v63 = vmul.f32 %v6152_v30, %v3398_v56  ;;  %v3400_v45 = vadd.f32 -0.28449672, %v3392_v59  ;;  %v3394_v4 = vmul.f32 %v6177_v31, %v3386_v48  ;;  %v3389_v56 = vadd.f32 1.4214138, %v3381_v13 }
 0x30e   : > { %v3419_v41 = vadd.f32 0.2548296, %v3411_v10  ;;  %v3407_v28 = vmul.f32 %v6156_v53, %v3399_v14  ;;  %v3401_v58 = vadd.f32 -0.28449672, %v3393_v25  ;;  %v3396_v29 = vmul.f32 %v6181_v36, %v3388_v20  ;;  %v4528_v10 = vpop.eup %4527 }
 0x30f   : > { %v3414_v43 = vadd.f32 0.2548296, %v3406_v63  ;;  %v3408_v6 = vmul.f32 %v6163_v9, %v3400_v45  ;;  %v3397_v57 = vmul.f32 %v6187_v42, %v3389_v56  ;;  %v4530_v59 = vpop.eup %4529 }
 0x310   : > { %v3427_v12 = vmul.f32 %v6150_v1, %v3419_v41  ;;  %v3415_v34 = vadd.f32 0.2548296, %v3407_v28  ;;  %v3409_v49 = vmul.f32 %v6166_v18, %v3401_v58  ;;  %v3404_v28 = vadd.f32 -0.28449672, %v3396_v29 }
 0x311   : > { %v3422_v32 = vmul.f32 %v6152_v30, %v3414_v43  ;;  %v3416_v30 = vadd.f32 0.2548296, %v3408_v6  ;;  %v3504_v58 = vmul.f32 0.5, %v6106_v52 }
 0x312   : > { %v3467_v15 = vmul.f32 %v4520_v39, %v3427_v12  ;;  %v3423_v54 = vmul.f32 %v6156_v53, %v3415_v34  ;;  %v3417_v19 = vadd.f32 0.2548296, %v3409_v49  ;;  %v3402_v53 = vadd.f32 -0.28449672, %v3394_v4 }
 0x313   : > { %v3462_v1 = vmul.f32 %v4522_v17, %v3422_v32  ;;  %v3424_v33 = vmul.f32 %v6163_v9, %v3416_v30  ;;  %v4532_v9 = vpop.eup %4531  ;;  %v3412_v38 = vmul.f32 %v6181_v36, %v3404_v28 }
 0x314   : > { %v3475_v8 = vsub.f32 1.0, %v3467_v15  ;;  %v3463_v35 = vmul.f32 %v4524_v26, %v3423_v54  ;;  %v3425_v46 = vmul.f32 %v6166_v18, %v3417_v19  ;;  %v3410_v41 = vmul.f32 %v6177_v31, %v3402_v53  ;;  %v4534_v39 = vpop.eup %4533 }
 0x315   : > { %v3470_v27 = vsub.f32 1.0, %v3462_v1  ;;  %v3464_v23 = vmul.f32 %v4526_v7, %v3424_v33  ;;  %v3405_v18 = vadd.f32 -0.28449672, %v3397_v57  ;;  %v3420_v26 = vadd.f32 0.2548296, %v3412_v38 }
 0x316   : > { %v3471_v14 = vsub.f32 1.0, %v3463_v35  ;;  %v3465_v5 = vmul.f32 %v4528_v10, %v3425_v46  ;;  %v3491_v45 = vsub.f32 0.0, %v3475_v8  ;;  %v3418_v22 = vadd.f32 0.2548296, %v3410_v41 }
 0x317   : > { %v3486_v63 = vsub.f32 0.0, %v3470_v27  ;;  %v3472_v12 = vsub.f32 1.0, %v3464_v23  ;;  %v3413_v37 = vmul.f32 %v6187_v42, %v3405_v18 }
 0x318   : > { %v3487_v43 = vsub.f32 0.0, %v3471_v14  ;;  %v3473_v32 = vsub.f32 1.0, %v3465_v5  ;;  %v3426_v48 = vmul.f32 %v6177_v31, %v3418_v22  ;;  %v3499_v1 = vsel %vm3483_vm8, %v3491_v45, %v3475_v8 }
 0x319   : > { %v3494_v25 = vsel %vm3478_vm4, %v3486_v63, %v3470_v27  ;;  %v3488_v50 = vsub.f32 0.0, %v3472_v12  ;;  %v3421_v13 = vadd.f32 0.2548296, %v3413_v37  ;;  %v3428_v31 = vmul.f32 %v6181_v36, %v3420_v26 }
 0x31a   : > { %v3510_v3 = vadd.f32 1.0, %v3494_v25  ;;  %v3495_v34 = vsel %vm3479_vm5, %v3487_v43, %v3471_v14  ;;  %v3489_v15 = vsub.f32 0.0, %v3473_v32  ;;  %v3466_v52 = vmul.f32 %v4530_v59, %v3426_v48 }
 0x31b   : > { %v3511_v17 = vadd.f32 1.0, %v3495_v34  ;;  %v3496_v54 = vsel %vm3480_vm6, %v3488_v50, %v3472_v12  ;;  %v3515_v27 = vadd.f32 1.0, %v3499_v1  ;;  %v3468_v21 = vmul.f32 %v4532_v9, %v3428_v31 }
 0x31c   : > { %v3518_v6 = vmul.f32 %v3510_v3, %v6160_v61  ;;  %v3497_v49 = vsel %vm3481_vm7, %v3489_v15, %v3473_v32  ;;  %v3512_v61 = vadd.f32 1.0, %v3496_v54  ;;  %v3474_v20 = vsub.f32 1.0, %v3466_v52 }
 0x31d   : > { %v3519_v2 = vmul.f32 %v3511_v17, %v6172_v11  ;;  %v3513_v4 = vadd.f32 1.0, %v3497_v49  ;;  %v3429_v11 = vmul.f32 %v6187_v42, %v3421_v13  ;;  %v3476_v36 = vsub.f32 1.0, %v3468_v21 }
 0x31e   : > { %v3520_v35 = vmul.f32 %v3512_v61, %v3504_v58  ;;  %v3490_v19 = vsub.f32 0.0, %v3474_v20  ;;  %v3523_v29 = vmul.f32 %v3515_v27, %v3507_v24  ;;  %v3509_v59 = vmul.f32 0.5, %v6136_v51 }
 0x31f   : > { %v3526_v30 = vpack.c.bf16 %v3519_v2, %v3518_v6  ;;  %v3521_v8 = vmul.f32 %v3513_v4, %v3505_v60  ;;  %v3469_v56 = vmul.f32 %v4534_v39, %v3429_v11  ;;  %v3492_v14 = vsub.f32 0.0, %v3476_v36 }
 0x320   : > { %v3498_v33 = vsel %vm3482_vm10, %v3490_v19, %v3474_v20 }
 0x321   : > { %4351 = vmatprep.mubr.msk.bf16.mxu0 %vm6502_vm9, %v3526_v30  ;;  %v3527_v7 = vpack.c.bf16 %v3521_v8, %v3520_v35  ;;  %v3514_v53 = vadd.f32 1.0, %v3498_v33  ;;  %v3477_v10 = vsub.f32 1.0, %v3469_v56  ;;  %v3500_v63 = vsel %vm3484_vm13, %v3492_v14, %v3476_v36 }
 0x322   : > { %v3516_v46 = vadd.f32 1.0, %v3500_v63 }
 0x323   : > { %4352 = vmatmul.mubr.msk.bf16.vlgmr.msra.gmra.mxu0 %vm6503_vm12, %v3527_v7  ;;  %v3522_v42 = vmul.f32 %v3514_v53, %v3506_v55  ;;  %v3493_v62 = vsub.f32 0.0, %v3477_v10 }
 0x324   : > { %v3524_v41 = vmul.f32 %v3516_v46, %v3508_v47 }
 0x325   : > { %v3528_v57 = vpack.c.bf16 %v3523_v29, %v3522_v42  ;;  %v3501_v44 = vsel %vm3485_vm3, %v3493_v62, %v3477_v10 }
 0x326   : > { %v3517_v23 = vadd.f32 1.0, %v3501_v44 }
 0x327   : > { %4355 = vmatprep.mubr.msk.bf16.mxu0 %vm6496_vm0, %v3528_v57 }
 0x328   : > { %v3525_v28 = vmul.f32 %v3517_v23, %v3509_v59 }
 0x32a   : > { %v3529_v0 = vpack.c.bf16 %v3525_v28, %v3524_v41 }
 0x32c   : > { %4356 = vmatmul.mubr.msk.bf16.gmra.mxu0 %vm6504_vm2, %v3529_v0 }
 0x3e3   : > { %v4353_v16 = vpop.f32.mrf.mxu0 }
 0x3e4   : > { %v3608_v9 = vadd.f32 %v4353_v16, %v3949_v40 }
 0x3e5   : > { %v3599_v43 = vpop.f32.mrf.mxu0 }
 0x3e6   : > { %3632 = vst [vmem:[%s379_s12 + $0x10] sm:$0xff] %v3608_v9  ;;  %v3600_v51 = vadd.f32 %v3949_v40, %v3599_v43 }
 0x3e7   : > { %v4354_v25 = vpop.f32.mrf.mxu0 }
 0x3e8   : > { %3630 = vst [vmem:[%s379_s12] sm:$0xff] %v3600_v51  ;;  %v3611_v5 = vadd.f32 %v4354_v25, %v3949_v40 }
 0x3e9   : > { %v3602_v45 = vpop.f32.mrf.mxu0 }
 0x3ea   : > { %3633 = vst [vmem:[%s379_s12 + $0x18] sm:$0xff] %v3611_v5  ;;  %v3603_v3 = vadd.f32 %v3949_v40, %v3602_v45 }
 0x3ec   : > { %3631 = vst [vmem:[%s379_s12 + $0x8] sm:$0xff] %v3603_v3  ;;  %v4357_v12 = vpop.f32.mrf.mxu0 }
 0x3ed   : > { %v3624_v22 = vadd.f32 %v4357_v12, %v3949_v40 }
 0x3ee   : > { %v3615_v18 = vpop.f32.mrf.mxu0 }
 0x3ef   : > { %3636 = vst [vmem:[%s379_s12 + $0x30] sm:$0xff] %v3624_v22  ;;  %v3616_v39 = vadd.f32 %v3949_v40, %v3615_v18 }
 0x3f0   : > { %v4358_v34 = vpop.f32.mrf.mxu0 }
 0x3f1   : > { %3634 = vst [vmem:[%s379_s12 + $0x20] sm:$0xff] %v3616_v39  ;;  %v3627_v32 = vadd.f32 %v4358_v34, %v3949_v40 }
 0x3f2   : > { %v3618_v58 = vpop.f32.mrf.mxu0 }
 0x3f3   : > { %3637 = vst [vmem:[%s379_s12 + $0x38] sm:$0xff] %v3627_v32  ;;  %v3619_v38 = vadd.f32 %v3949_v40, %v3618_v58 }
 0x3f5   : > { %3635 = vst [vmem:[%s379_s12 + $0x28] sm:$0xff] %v3619_v38 }
 0x3f6   : > { %4548 = shalt.err (!%p4545_p3)
}
 0x3f7   : > { %s4549_s16 = scalar_lea.hbm %s6250_s24, 1024  ;;  %s4553_s15 = scalar_lea.hbm %s6307_s11, 2048 }
 0x3f8   : > { %p4550_p4 = scmp.ne.s32.totalorder %s6250_s24, %s4549_s16  ;;  %p4554_p9 = scmp.lt.s32.totalorder %s6250_s24, %s6307_s11 }
 0x3f9   : > { %p4555_p10 = scmp.lt.s32.totalorder %s4553_s15, %s4549_s16 }
 0x3fa   : > { %p4551_p7 = pnand %p4550_p4, %p4701_p5 }
 0x3fb   : > { %p4556_p11 = por %p4555_p10, %p4554_p9 }
 0x3fc   : > { %p4552_p8 = pneg %p4551_p7 }
 0x3fe   : > { %p4557_p12 = pnand %p4556_p11, %p4552_p8 }
 0x400   : > { %4560 = shalt.err (!%p4557_p12)
}
 0x401   : > { %s4601_s26 = smov 128   ;;  %s4602_s29 = smov 8  }
 0x402   : > { %4367 = dma.vmem_to_hbm [thread:$0]  (%p4701_p5), %s6252_s14, 1024, %s6250_s24, %s6256_s21, %s4601_s26, %s4601_s26, %s4602_s29  }
 0x403 PF: > { %p4373_p13 = scmp.ge.s32.totalorder %s4595_s20, 2  ;;  %s3667_s30 = sand.u32 1, %s4583_s17  }
 0x404   : > { %s3668_s16 = scalar_lea.sflag [#allocation3], %s3667_s30 }
 0x405   : > { %p4370_p0 = pnand %p4373_p13, %p4705_p6 }
 0x407   : > { %p4371_p1 = pneg %p4370_p0 }
 0x409   : > { %4578 = dma.done.wait (%p4371_p1), %s3668_s16, 1024  }
 0x40a   : > { %4580 = vsyncadd (%p4371_p1), %s3668_s16, 4294966272  ;;  %s6505_s12 = sld [smem:[#allocation5_spill]]  ;;  %p21_p2 = scmp.ge.s32.totalorder %s4688_s23, 4  }
 0x40b   : > { %s6506_s17 = smov %s4587_s18  ;;  %s6507_s18 = smov %s4591_s19 }
 0x40c   : > { %s6509_s20 = smov %s4688_s23  ;;  %23 = sbr.rel (!%p21_p2) target bundleno = 3 (0x3), region = 115 }
 0x410   : > { %s6508_s19 = smov %s6505_s12 }
 0x411   :  { %3673 = vsyncpa [#allocation3], 1 }
 0x412   :  { %3675 = vsyncpa [#allocation3 + $0x1], 1 }

</bundles_post_ra>
